<compile_context>
chip_gen: v7x
topology: tpu7x:2x2x1
jax: 0.10.0
libtpu: 0.0.40
codegen_flags: <defaults>
</compile_context>

<pallas_src>
import math

import jax
import jax.numpy as jnp
from jax import lax
from jax.experimental import pallas as pl
from jax.experimental.pallas import tpu as pltpu

LN_EPS = 1e-5
GELU_K = math.sqrt(2.0 / math.pi)
NEG_INF = -1e30  # large finite negative: avoids exp(-inf - (-inf)) = NaN


def _layernorm(h, w, b):
    # fp32 statistics
    mu = jnp.mean(h, axis=-1, keepdims=True)
    var = jnp.mean((h - mu) ** 2, axis=-1, keepdims=True)
    return (h - mu) * lax.rsqrt(var + LN_EPS) * w + b


def _gelu_tanh(x):
    # matches nn.GELU(approximate='tanh'), fp32
    return 0.5 * x * (1.0 + jnp.tanh(GELU_K * (x + 0.044715 * x * x * x)))


# ----------------------------------------------------------------------------
# Kernel A: LayerNorm1 + fused QKV projection -> head-major bf16 q/k/v.
# ----------------------------------------------------------------------------
def make_qkv_kernel(n_head: int, n_embd: int):
    C = n_embd
    H = n_head
    HD = C // H
    scale = 1.0 / math.sqrt(HD)

    def qkv_kernel(x_ref, ln1w_ref, ln1b_ref, wqkv_ref, bqkv_ref,
                   q_ref, k_ref, v_ref):
        x = x_ref[...].astype(jnp.float32)                      # (Tt, C)
        h = _layernorm(x, ln1w_ref[0], ln1b_ref[0])             # fp32
        # bf16 MXU operands, fp32 accumulation
        qkv = jnp.dot(h.astype(jnp.bfloat16), wqkv_ref[...],
                      preferred_element_type=jnp.float32) + bqkv_ref[0]
        # Emit head-major (H, Tt, HD): each head becomes a contiguous, aligned
        # tile for the attention kernel (head slicing happens once per token
        # here instead of once per KV step in the hot loop).
        for hh in range(H):
            sl_q = slice(0 * C + hh * HD, 0 * C + (hh + 1) * HD)
            sl_k = slice(1 * C + hh * HD, 1 * C + (hh + 1) * HD)
            sl_v = slice(2 * C + hh * HD, 2 * C + (hh + 1) * HD)
            # 1/sqrt(head_dim) folded into q.
            q_ref[hh] = (qkv[:, sl_q] * scale).astype(q_ref.dtype)
            k_ref[hh] = qkv[:, sl_k].astype(k_ref.dtype)
            v_ref[hh] = qkv[:, sl_v].astype(v_ref.dtype)

    return qkv_kernel


# ----------------------------------------------------------------------------
# Kernel B: flash-style causal attention with an in-kernel KV loop over
#           VMEM-resident K/V, then c_proj + residual + LN2 + MLP + residual.
# ----------------------------------------------------------------------------
def make_attn_mlp_kernel(n_head: int, n_embd: int, block_q: int, block_kv: int,
                         approx_reciprocal: bool = True):
    C = n_embd
    H = n_head
    HD = C // H
    head_unroll = 2 if H % 2 == 0 else 1

    def kernel(x_ref, q_ref, k_ref, v_ref,
               wproj_ref, bproj_ref, ln2w_ref, ln2b_ref,
               wfc_ref, bfc_ref, wmp_ref, bmp_ref,
               o_ref, m_sc, l_sc, acc_sc):
        qi = pl.program_id(1)
        q_start = qi * block_q

        # Per-(batch, q-tile) init: the whole KV loop lives inside this kernel
        # invocation, so no softmax state crosses grid steps.
        m_sc[...] = jnp.full_like(m_sc, NEG_INF)
        l_sc[...] = jnp.zeros_like(l_sc)
        acc_sc[...] = jnp.zeros_like(acc_sc)

        def kv_step(kv_idx, masked):
            k_start = pl.multiple_of(kv_idx * block_kv, block_kv)
            if masked:
                # Additive causal bias computed ONCE per KV tile (not per head)
                # and only for tiles that overlap the diagonal.
                row = lax.broadcasted_iota(jnp.int32, (block_q, block_kv), 0) + q_start
                col = lax.broadcasted_iota(jnp.int32, (block_q, block_kv), 1) + k_start
                bias = jnp.where(col <= row, 0.0, NEG_INF).astype(jnp.float32)

            def head_body(h, carry):
                q_h = q_ref[h]                                   # (bq, HD) bf16, pre-scaled
                k_h = k_ref[h, pl.ds(k_start, block_kv), :]      # (bk, HD) bf16
                v_h = v_ref[h, pl.ds(k_start, block_kv), :]      # (bk, HD) bf16
                # q @ k^T via dot_general contracting head_dim (no transpose copy)
                s = lax.dot_general(q_h, k_h, (((1,), (1,)), ((), ())),
                                    preferred_element_type=jnp.float32)
                if masked:
                    s = s + bias
                m_prev = m_sc[h]                                 # (bq, 1) f32
                m_new = jnp.maximum(m_prev, jnp.max(s, axis=-1, keepdims=True))
                alpha = jnp.exp(m_prev - m_new)
                p = jnp.exp(s - m_new)
                l_sc[h] = alpha * l_sc[h] + jnp.sum(p, axis=-1, keepdims=True)
                pv = jnp.dot(p.astype(jnp.bfloat16), v_h,
                             preferred_element_type=jnp.float32)
                acc_sc[h] = alpha * acc_sc[h] + pv
                m_sc[h] = m_new
                return carry

            lax.fori_loop(0, H, head_body, 0, unroll=head_unroll)

        # KV tiles strictly below the diagonal need no mask; only the tiles
        # overlapping the diagonal pay the select.  Tiles above the diagonal
        # are never visited (no wasted steps, no wasted DMAs).
        n_full = q_start // block_kv                   # fully-unmasked KV tiles
        n_kv = (q_start + block_q) // block_kv         # total causal KV tiles

        def _unmasked(j, c):
            kv_step(j, masked=False)
            return c

        def _masked(j, c):
            kv_step(j, masked=True)
            return c

        lax.fori_loop(0, n_full, _unmasked, 0)
        lax.fori_loop(n_full, n_kv, _masked, 0)

        # ---- finalize: per-head normalize (no concatenate), c_proj,
        #      residual, LN2, MLP, residual --------------------------------
        att = jnp.zeros((block_q, C), jnp.float32)
        for hh in range(H):
            if approx_reciprocal:
                inv_l = pl.reciprocal(l_sc[hh], approx=True)     # EUP slot
            else:
                inv_l = 1.0 / l_sc[hh]
            y_h = (acc_sc[hh] * inv_l).astype(jnp.bfloat16)      # (bq, HD)
            # head-major c_proj weight view (H, HD, C): no lane slicing here.
            att = att + jnp.dot(y_h, wproj_ref[hh],
                                preferred_element_type=jnp.float32)
        att = att + bproj_ref[0]

        x1 = x_ref[...].astype(jnp.float32) + att                # residual 1, fp32
        h2 = _layernorm(x1, ln2w_ref[0], ln2b_ref[0])
        ff = jnp.dot(h2.astype(jnp.bfloat16), wfc_ref[...],
                     preferred_element_type=jnp.float32) + bfc_ref[0]
        ff = _gelu_tanh(ff)
        ff = jnp.dot(ff.astype(jnp.bfloat16), wmp_ref[...],
                     preferred_element_type=jnp.float32) + bmp_ref[0]
        o_ref[...] = (x1 + ff).astype(o_ref.dtype)               # residual 2

    return kernel


# ----------------------------------------------------------------------------
# Wrapper
# ----------------------------------------------------------------------------
def _vmem_limit_bytes():
    cap = None
    try:
        info = pltpu.get_tpu_info()
        cap = int(getattr(info, "vmem_capacity_bytes", 0)) or None
    except Exception:
        cap = None
    if cap is None:
        kind = ""
        try:
            kind = jax.devices()[0].device_kind.lower()
        except Exception:
            pass
        # v7x has 64 MiB of VMEM per TensorCore; v5e/v6e have 128 MiB.
        cap = 64 * 1024 * 1024 if ("v7" in kind or "tpu7" in kind) else 128 * 1024 * 1024
    return int(cap * 7 // 8)


def gpt2_block_forward(x, params, n_head, *, block_q=512, block_kv=512,
                       single_buffer_weights=True, approx_reciprocal=True):
    """One GPT-2 transformer Block forward. x: (B, T, C) float32."""
    B, T, C = x.shape
    H = n_head
    assert C % H == 0
    HD = C // H
    block_q = min(block_q, T)
    block_kv = min(block_kv, block_q)
    assert T % block_q == 0, "T must be a multiple of block_q"
    assert block_q % block_kv == 0, "block_q must be a multiple of block_kv"

    bf16 = jnp.bfloat16
    f32 = jnp.float32

    # Big matrices go to the MXU as bf16 (fp32 accumulation inside the kernels).
    w_qkv = params['attn_w'].astype(bf16)                            # (C, 3C)
    w_aproj = params['attnproj_w'].astype(bf16).reshape(H, HD, C)    # head-major rows
    w_fc = params['fc_w'].astype(bf16)                               # (C, 4C)
    w_mproj = params['mlpproj_w'].astype(bf16)                       # (4C, C)
    # LN params / biases stay fp32.
    ln1w = params['ln1_w'].astype(f32)
    ln1b = params['ln1_b'].astype(f32)
    ln2w = params['ln2_w'].astype(f32)
    ln2b = params['ln2_b'].astype(f32)
    b_qkv = params['attn_b'].astype(f32)
    b_aproj = params['attnproj_b'].astype(f32)
    b_fc = params['fc_b'].astype(f32)
    b_mproj = params['mlpproj_b'].astype(f32)

    vmem_limit = _vmem_limit_bytes()

    def wspec(arr):
        # Constant index map -> fetched once across the grid.  Buffered(1)
        # avoids allocating a useless second VMEM buffer for resident weights
        # (matters most on v7x's 64 MiB VMEM).
        index_map = lambda *_, _nd=arr.ndim: (0,) * _nd
        if single_buffer_weights:
            return pl.BlockSpec(arr.shape, index_map,
                                pipeline_mode=pl.Buffered(1))
        return pl.BlockSpec(arr.shape, index_map)

    # ---- Kernel A: LN1 + fused QKV projection (head-major outputs) ---------
    num_t = T // block_q
    cost_a = pl.CostEstimate(
        flops=2 * B * T * C * 3 * C + 10 * B * T * C,
        transcendentals=B * T,
        bytes_accessed=4 * B * T * C + 2 * C * 3 * C + 6 * B * T * C)
    q, k, v = pl.pallas_call(
        make_qkv_kernel(H, C),
        grid=(B, num_t),
        in_specs=[pl.BlockSpec((None, block_q, C), lambda b, t: (b, t, 0)),
                  wspec(ln1w), wspec(ln1b), wspec(w_qkv), wspec(b_qkv)],
        out_specs=[pl.BlockSpec((None, H, block_q, HD), lambda b, t: (b, 0, t, 0))
                   for _ in range(3)],
        out_shape=[jax.ShapeDtypeStruct((B, H, T, HD), bf16) for _ in range(3)],
        compiler_params=pltpu.CompilerParams(
            dimension_semantics=("parallel", "parallel"),
            vmem_limit_bytes=vmem_limit),
        cost_estimate=cost_a,
    )(x, ln1w, ln1b, w_qkv, b_qkv)

    # ---- Kernel B: flash attention (in-kernel causal KV loop) + proj +
    #      residual + LN2 + MLP + residual ----------------------------------
    num_q = T // block_q

    def x_map(b, qi):
        return (b, qi, 0)

    def q_map(b, qi):
        return (b, 0, qi, 0)

    def kv_map(b, qi):
        # Independent of the q-tile: K/V for a batch are DMA'd once and stay
        # VMEM-resident across all of its q-tiles.
        return (b, 0, 0, 0)

    cost_b = pl.CostEstimate(
        flops=2 * B * T * T * C + 18 * B * T * C * C,
        transcendentals=B * H * T * T // 2 + 4 * B * T * C,
        bytes_accessed=14 * B * T * C + 2 * 9 * C * C)
    out = pl.pallas_call(
        make_attn_mlp_kernel(H, C, block_q, block_kv,
                             approx_reciprocal=approx_reciprocal),
        grid=(B, num_q),
        in_specs=[pl.BlockSpec((None, block_q, C), x_map),        # x (residual)
                  pl.BlockSpec((None, H, block_q, HD), q_map),    # q (pre-scaled)
                  pl.BlockSpec((None, H, T, HD), kv_map),         # k (full sequence)
                  pl.BlockSpec((None, H, T, HD), kv_map),         # v (full sequence)
                  wspec(w_aproj), wspec(b_aproj),
                  wspec(ln2w), wspec(ln2b),
                  wspec(w_fc), wspec(b_fc),
                  wspec(w_mproj), wspec(b_mproj)],
        out_specs=pl.BlockSpec((None, block_q, C), x_map),
        out_shape=jax.ShapeDtypeStruct((B, T, C), x.dtype),
        scratch_shapes=[pltpu.VMEM((H, block_q, 1), f32),    # running max (head-major)
                        pltpu.VMEM((H, block_q, 1), f32),    # running sum (head-major)
                        pltpu.VMEM((H, block_q, HD), f32)],  # head-major accumulator
        compiler_params=pltpu.CompilerParams(
            dimension_semantics=("parallel", "parallel"),
            vmem_limit_bytes=vmem_limit),
        cost_estimate=cost_b,
    )(x, q, k, v, w_aproj, b_aproj, ln2w, ln2b, w_fc, b_fc, w_mproj, b_mproj)
    return out


# ----------------------------------------------------------------------------
# Parameters + pure-JAX reference (PyTorch Block semantics, fp32)
# ----------------------------------------------------------------------------
def init_params(key, n_embd):
    C = n_embd
    ks = jax.random.split(key, 4)
    std = 0.02

    def dense(k, fan_in, fan_out):
        # stored as (in, out) so kernels compute x @ W + b (PyTorch does x @ W.T)
        return (jax.random.normal(k, (fan_in, fan_out), jnp.float32) * std,
                jnp.zeros((1, fan_out), jnp.float32))

    attn_w, attn_b = dense(ks[0], C, 3 * C)
    attnproj_w, attnproj_b = dense(ks[1], C, C)
    fc_w, fc_b = dense(ks[2], C, 4 * C)
    mlpproj_w, mlpproj_b = dense(ks[3], 4 * C, C)

    return dict(
        ln1_w=jnp.ones((1, C), jnp.float32), ln1_b=jnp.zeros((1, C), jnp.float32),
        attn_w=attn_w, attn_b=attn_b,
        attnproj_w=attnproj_w, attnproj_b=attnproj_b,
        ln2_w=jnp.ones((1, C), jnp.float32), ln2_b=jnp.zeros((1, C), jnp.float32),
        fc_w=fc_w, fc_b=fc_b,
        mlpproj_w=mlpproj_w, mlpproj_b=mlpproj_b,
    )


def reference_block(x, params, n_head):
    B, T, C = x.shape
    H = n_head
    HD = C // H

    def ln(h, w, b):
        mu = jnp.mean(h, axis=-1, keepdims=True)
        var = jnp.mean((h - mu) ** 2, axis=-1, keepdims=True)
        return (h - mu) / jnp.sqrt(var + LN_EPS) * w[0] + b[0]

    h = ln(x, params['ln1_w'], params['ln1_b'])
    qkv = h @ params['attn_w'] + params['attn_b'][0]
    q, k, v = jnp.split(qkv, 3, axis=-1)
    q = q.reshape(B, T, H, HD).transpose(0, 2, 1, 3)
    k = k.reshape(B, T, H, HD).transpose(0, 2, 1, 3)
    v = v.reshape(B, T, H, HD).transpose(0, 2, 1, 3)
    s = jnp.einsum('bhqd,bhkd->bhqk', q, k) / math.sqrt(HD)
    mask = jnp.tril(jnp.ones((T, T), bool))
    s = jnp.where(mask, s, -jnp.inf)
    p = jax.nn.softmax(s, axis=-1)
    y = jnp.einsum('bhqk,bhkd->bhqd', p, v)
    y = y.transpose(0, 2, 1, 3).reshape(B, T, C)
    y = y @ params['attnproj_w'] + params['attnproj_b'][0]
    x = x + y

    h2 = ln(x, params['ln2_w'], params['ln2_b'])
    ff = h2 @ params['fc_w'] + params['fc_b'][0]
    ff = 0.5 * ff * (1.0 + jnp.tanh(GELU_K * (ff + 0.044715 * ff ** 3)))
    ff = ff @ params['mlpproj_w'] + params['mlpproj_b'][0]
    return x + ff


if __name__ == "__main__":
    def run_case(Bb, T, C, NH, block_q, block_kv, tol):
        key = jax.random.PRNGKey(0)
        kx, kp = jax.random.split(key)
        x = jax.random.normal(kx, (Bb, T, C), jnp.float32)
        params = init_params(kp, C)
        ref = reference_block(x, params, NH)

        def run(single_buffer):
            out = gpt2_block_forward(x, params, NH, block_q=block_q,
                                     block_kv=block_kv,
                                     single_buffer_weights=single_buffer)
            return jax.block_until_ready(out)

        try:
            out = run(True)
        except Exception:
            # Fallback: default double-buffered weight BlockSpecs if this JAX
            # build rejects pipeline_mode=pl.Buffered(1).
            out = run(False)
        assert out.shape == (Bb, T, C)
        # bf16 MXU operands + approx reciprocal -> looser tolerance than fp32.
        if not jnp.allclose(out, ref, atol=tol, rtol=tol):
            err = float(jnp.max(jnp.abs(out - ref)))
            raise AssertionError(f"mismatch vs reference (max abs err {err:.3e})")

    # Small config: sub-128-lane head_dim, multiple masked KV tiles per q-tile
    # (block_kv < block_q) plus the unmasked fast path.
    run_case(2, 128, 64, 4, 64, 32, 2e-2)
    # GPT-2-base lane widths (C=768, H=12, HD=64) at a reduced sequence length.
    run_case(2, 512, 768, 12, 256, 256, 3e-2)

    print("KERNEL_OK")
</pallas_src>

<mosaic_0001>
module attributes {stable_mosaic.version = 11 : i64} {
  func.func @qkv_kernel(%arg0: i32, %arg1: i32, %arg2: memref<1x64x64xf32, #tpu.memory_space<vmem>>, %arg3: memref<1x64xf32, #tpu.memory_space<vmem>>, %arg4: memref<1x64xf32, #tpu.memory_space<vmem>>, %arg5: memref<64x192xbf16, #tpu.memory_space<vmem>>, %arg6: memref<1x192xf32, #tpu.memory_space<vmem>>, %arg7: memref<1x4x64x16xbf16, #tpu.memory_space<vmem>>, %arg8: memref<1x4x64x16xbf16, #tpu.memory_space<vmem>>, %arg9: memref<1x4x64x16xbf16, #tpu.memory_space<vmem>>) attributes {dimension_semantics = [#tpu.dimension_semantics<parallel>, #tpu.dimension_semantics<parallel>], iteration_bounds = array<i64: 2, 2>, scalar_prefetch = 0 : i64, scratch_operands = 0 : i64, tpu.core_type = #tpu.core_type<tc>, window_params = [{transform_indices = @transform_0, window_bounds = array<i64: 1, 64, 64>}, {pipeline_mode = #tpu.pipeline_mode<synchronous>, transform_indices = @transform_1, window_bounds = array<i64: 1, 64>}, {pipeline_mode = #tpu.pipeline_mode<synchronous>, transform_indices = @transform_2, window_bounds = array<i64: 1, 64>}, {pipeline_mode = #tpu.pipeline_mode<synchronous>, transform_indices = @transform_3, window_bounds = array<i64: 64, 192>}, {pipeline_mode = #tpu.pipeline_mode<synchronous>, transform_indices = @transform_4, window_bounds = array<i64: 1, 192>}, {transform_indices = @transform_5, window_bounds = array<i64: 1, 4, 64, 16>}, {transform_indices = @transform_6, window_bounds = array<i64: 1, 4, 64, 16>}, {transform_indices = @transform_7, window_bounds = array<i64: 1, 4, 64, 16>}]} {
    %c0 = arith.constant 0 : index
    %c0_0 = arith.constant 0 : index
    %c0_1 = arith.constant 0 : index
    %0 = vector.load %arg2[%c0, %c0_0, %c0_1] : memref<1x64x64xf32, #tpu.memory_space<vmem>>, vector<1x64x64xf32>
    %1 = vector.shape_cast %0 : vector<1x64x64xf32> to vector<64x64xf32>
    %c0_2 = arith.constant 0 : index
    %c0_3 = arith.constant 0 : index
    %2 = vector.load %arg3[%c0_2, %c0_3] : memref<1x64xf32, #tpu.memory_space<vmem>>, vector<1x64xf32>
    %3 = vector.shape_cast %2 : vector<1x64xf32> to vector<64xf32>
    %c0_4 = arith.constant 0 : index
    %c0_5 = arith.constant 0 : index
    %4 = vector.load %arg4[%c0_4, %c0_5] : memref<1x64xf32, #tpu.memory_space<vmem>>, vector<1x64xf32>
    %5 = vector.shape_cast %4 : vector<1x64xf32> to vector<64xf32>
    %cst = arith.constant dense<0.000000e+00> : vector<64xf32>
    %6 = vector.multi_reduction <add>, %1, %cst [1] : vector<64x64xf32> to vector<64xf32>
    %7 = vector.shape_cast %6 : vector<64xf32> to vector<64x1xf32>
    %cst_6 = arith.constant 6.400000e+01 : f32
    %8 = vector.broadcast %cst_6 : f32 to vector<64x1xf32>
    %9 = arith.divf %7, %8 : vector<64x1xf32>
    %10 = vector.broadcast %9 : vector<64x1xf32> to vector<64x64xf32>
    %11 = arith.subf %1, %10 : vector<64x64xf32>
    %12 = arith.mulf %11, %11 : vector<64x64xf32>
    %cst_7 = arith.constant dense<0.000000e+00> : vector<64xf32>
    %13 = vector.multi_reduction <add>, %12, %cst_7 [1] : vector<64x64xf32> to vector<64xf32>
    %14 = vector.shape_cast %13 : vector<64xf32> to vector<64x1xf32>
    %cst_8 = arith.constant 6.400000e+01 : f32
    %15 = vector.broadcast %cst_8 : f32 to vector<64x1xf32>
    %16 = arith.divf %14, %15 : vector<64x1xf32>
    %17 = vector.broadcast %9 : vector<64x1xf32> to vector<64x64xf32>
    %18 = arith.subf %1, %17 : vector<64x64xf32>
    %cst_9 = arith.constant 9.99999974E-6 : f32
    %19 = vector.broadcast %cst_9 : f32 to vector<64x1xf32>
    %20 = arith.addf %16, %19 : vector<64x1xf32>
    %21 = math.rsqrt %20 : vector<64x1xf32>
    %22 = vector.broadcast %21 : vector<64x1xf32> to vector<64x64xf32>
    %23 = arith.mulf %18, %22 : vector<64x64xf32>
    %24 = vector.shape_cast %3 : vector<64xf32> to vector<1x64xf32>
    %25 = vector.broadcast %24 : vector<1x64xf32> to vector<64x64xf32>
    %26 = arith.mulf %23, %25 : vector<64x64xf32>
    %27 = vector.shape_cast %5 : vector<64xf32> to vector<1x64xf32>
    %28 = vector.broadcast %27 : vector<1x64xf32> to vector<64x64xf32>
    %29 = arith.addf %26, %28 : vector<64x64xf32>
    %30 = arith.truncf %29 : vector<64x64xf32> to vector<64x64xbf16>
    %c0_10 = arith.constant 0 : index
    %c0_11 = arith.constant 0 : index
    %31 = vector.load %arg5[%c0_10, %c0_11] : memref<64x192xbf16, #tpu.memory_space<vmem>>, vector<64x192xbf16>
    %cst_12 = arith.constant dense<0.000000e+00> : vector<64x192xf32>
    %32 = tpu.matmul %30, %31, %cst_12 {dimension_numbers = #tpu.dot_dimension_numbers<[1], [0], [0], [1], [0, 0, 1, 1], [], []>} : vector<64x64xbf16>, vector<64x192xbf16>, vector<64x192xf32> -> vector<64x192xf32>
    %c0_13 = arith.constant 0 : index
    %c0_14 = arith.constant 0 : index
    %33 = vector.load %arg6[%c0_13, %c0_14] : memref<1x192xf32, #tpu.memory_space<vmem>>, vector<1x192xf32>
    %34 = vector.shape_cast %33 : vector<1x192xf32> to vector<192xf32>
    %35 = vector.shape_cast %34 : vector<192xf32> to vector<1x192xf32>
    %36 = vector.broadcast %35 : vector<1x192xf32> to vector<64x192xf32>
    %37 = arith.addf %32, %36 : vector<64x192xf32>
    %38 = vector.extract_strided_slice %37 {offsets = [0, 0], sizes = [64, 16], strides = [1, 1]} : vector<64x192xf32> to vector<64x16xf32>
    %cst_15 = arith.constant 2.500000e-01 : f32
    %39 = vector.broadcast %cst_15 : f32 to vector<64x16xf32>
    %40 = arith.mulf %38, %39 : vector<64x16xf32>
    %41 = arith.truncf %40 : vector<64x16xf32> to vector<64x16xbf16>
    %c0_16 = arith.constant 0 : index
    %c0_17 = arith.constant 0 : index
    %c0_18 = arith.constant 0 : index
    %c0_19 = arith.constant 0 : index
    %42 = vector.load %arg7[%c0_16, %c0_17, %c0_18, %c0_19] : memref<1x4x64x16xbf16, #tpu.memory_space<vmem>>, vector<1x1x64x16xbf16>
    %43 = vector.shape_cast %42 : vector<1x1x64x16xbf16> to vector<64x16xbf16>
    %44 = vector.shape_cast %41 : vector<64x16xbf16> to vector<1x1x64x16xbf16>
    tpu.vector_store %arg7[%c0_16, %c0_17, %c0_18, %c0_19], %44 {strides = array<i32>} : memref<1x4x64x16xbf16, #tpu.memory_space<vmem>>, vector<1x1x64x16xbf16>,
    %45 = vector.extract_strided_slice %37 {offsets = [0, 64], sizes = [64, 16], strides = [1, 1]} : vector<64x192xf32> to vector<64x16xf32>
    %46 = arith.truncf %45 : vector<64x16xf32> to vector<64x16xbf16>
    %c0_20 = arith.constant 0 : index
    %c0_21 = arith.constant 0 : index
    %c0_22 = arith.constant 0 : index
    %c0_23 = arith.constant 0 : index
    %47 = vector.load %arg8[%c0_20, %c0_21, %c0_22, %c0_23] : memref<1x4x64x16xbf16, #tpu.memory_space<vmem>>, vector<1x1x64x16xbf16>
    %48 = vector.shape_cast %47 : vector<1x1x64x16xbf16> to vector<64x16xbf16>
    %49 = vector.shape_cast %46 : vector<64x16xbf16> to vector<1x1x64x16xbf16>
    tpu.vector_store %arg8[%c0_20, %c0_21, %c0_22, %c0_23], %49 {strides = array<i32>} : memref<1x4x64x16xbf16, #tpu.memory_space<vmem>>, vector<1x1x64x16xbf16>,
    %50 = vector.extract_strided_slice %37 {offsets = [0, 128], sizes = [64, 16], strides = [1, 1]} : vector<64x192xf32> to vector<64x16xf32>
    %51 = arith.truncf %50 : vector<64x16xf32> to vector<64x16xbf16>
    %c0_24 = arith.constant 0 : index
    %c0_25 = arith.constant 0 : index
    %c0_26 = arith.constant 0 : index
    %c0_27 = arith.constant 0 : index
    %52 = vector.load %arg9[%c0_24, %c0_25, %c0_26, %c0_27] : memref<1x4x64x16xbf16, #tpu.memory_space<vmem>>, vector<1x1x64x16xbf16>
    %53 = vector.shape_cast %52 : vector<1x1x64x16xbf16> to vector<64x16xbf16>
    %54 = vector.shape_cast %51 : vector<64x16xbf16> to vector<1x1x64x16xbf16>
    tpu.vector_store %arg9[%c0_24, %c0_25, %c0_26, %c0_27], %54 {strides = array<i32>} : memref<1x4x64x16xbf16, #tpu.memory_space<vmem>>, vector<1x1x64x16xbf16>,
    %55 = vector.extract_strided_slice %37 {offsets = [0, 16], sizes = [64, 16], strides = [1, 1]} : vector<64x192xf32> to vector<64x16xf32>
    %cst_28 = arith.constant 2.500000e-01 : f32
    %56 = vector.broadcast %cst_28 : f32 to vector<64x16xf32>
    %57 = arith.mulf %55, %56 : vector<64x16xf32>
    %58 = arith.truncf %57 : vector<64x16xf32> to vector<64x16xbf16>
    %c0_29 = arith.constant 0 : index
    %c1 = arith.constant 1 : index
    %c0_30 = arith.constant 0 : index
    %c0_31 = arith.constant 0 : index
    %59 = vector.load %arg7[%c0_29, %c1, %c0_30, %c0_31] : memref<1x4x64x16xbf16, #tpu.memory_space<vmem>>, vector<1x1x64x16xbf16>
    %60 = vector.shape_cast %59 : vector<1x1x64x16xbf16> to vector<64x16xbf16>
    %61 = vector.shape_cast %58 : vector<64x16xbf16> to vector<1x1x64x16xbf16>
    tpu.vector_store %arg7[%c0_29, %c1, %c0_30, %c0_31], %61 {strides = array<i32>} : memref<1x4x64x16xbf16, #tpu.memory_space<vmem>>, vector<1x1x64x16xbf16>,
    %62 = vector.extract_strided_slice %37 {offsets = [0, 80], sizes = [64, 16], strides = [1, 1]} : vector<64x192xf32> to vector<64x16xf32>
    %63 = arith.truncf %62 : vector<64x16xf32> to vector<64x16xbf16>
    %c0_32 = arith.constant 0 : index
    %c1_33 = arith.constant 1 : index
    %c0_34 = arith.constant 0 : index
    %c0_35 = arith.constant 0 : index
    %64 = vector.load %arg8[%c0_32, %c1_33, %c0_34, %c0_35] : memref<1x4x64x16xbf16, #tpu.memory_space<vmem>>, vector<1x1x64x16xbf16>
    %65 = vector.shape_cast %64 : vector<1x1x64x16xbf16> to vector<64x16xbf16>
    %66 = vector.shape_cast %63 : vector<64x16xbf16> to vector<1x1x64x16xbf16>
    tpu.vector_store %arg8[%c0_32, %c1_33, %c0_34, %c0_35], %66 {strides = array<i32>} : memref<1x4x64x16xbf16, #tpu.memory_space<vmem>>, vector<1x1x64x16xbf16>,
    %67 = vector.extract_strided_slice %37 {offsets = [0, 144], sizes = [64, 16], strides = [1, 1]} : vector<64x192xf32> to vector<64x16xf32>
    %68 = arith.truncf %67 : vector<64x16xf32> to vector<64x16xbf16>
    %c0_36 = arith.constant 0 : index
    %c1_37 = arith.constant 1 : index
    %c0_38 = arith.constant 0 : index
    %c0_39 = arith.constant 0 : index
    %69 = vector.load %arg9[%c0_36, %c1_37, %c0_38, %c0_39] : memref<1x4x64x16xbf16, #tpu.memory_space<vmem>>, vector<1x1x64x16xbf16>
    %70 = vector.shape_cast %69 : vector<1x1x64x16xbf16> to vector<64x16xbf16>
    %71 = vector.shape_cast %68 : vector<64x16xbf16> to vector<1x1x64x16xbf16>
    tpu.vector_store %arg9[%c0_36, %c1_37, %c0_38, %c0_39], %71 {strides = array<i32>} : memref<1x4x64x16xbf16, #tpu.memory_space<vmem>>, vector<1x1x64x16xbf16>,
    %72 = vector.extract_strided_slice %37 {offsets = [0, 32], sizes = [64, 16], strides = [1, 1]} : vector<64x192xf32> to vector<64x16xf32>
    %cst_40 = arith.constant 2.500000e-01 : f32
    %73 = vector.broadcast %cst_40 : f32 to vector<64x16xf32>
    %74 = arith.mulf %72, %73 : vector<64x16xf32>
    %75 = arith.truncf %74 : vector<64x16xf32> to vector<64x16xbf16>
    %c0_41 = arith.constant 0 : index
    %c2 = arith.constant 2 : index
    %c0_42 = arith.constant 0 : index
    %c0_43 = arith.constant 0 : index
    %76 = vector.load %arg7[%c0_41, %c2, %c0_42, %c0_43] : memref<1x4x64x16xbf16, #tpu.memory_space<vmem>>, vector<1x1x64x16xbf16>
    %77 = vector.shape_cast %76 : vector<1x1x64x16xbf16> to vector<64x16xbf16>
    %78 = vector.shape_cast %75 : vector<64x16xbf16> to vector<1x1x64x16xbf16>
    tpu.vector_store %arg7[%c0_41, %c2, %c0_42, %c0_43], %78 {strides = array<i32>} : memref<1x4x64x16xbf16, #tpu.memory_space<vmem>>, vector<1x1x64x16xbf16>,
    %79 = vector.extract_strided_slice %37 {offsets = [0, 96], sizes = [64, 16], strides = [1, 1]} : vector<64x192xf32> to vector<64x16xf32>
    %80 = arith.truncf %79 : vector<64x16xf32> to vector<64x16xbf16>
    %c0_44 = arith.constant 0 : index
    %c2_45 = arith.constant 2 : index
    %c0_46 = arith.constant 0 : index
    %c0_47 = arith.constant 0 : index
    %81 = vector.load %arg8[%c0_44, %c2_45, %c0_46, %c0_47] : memref<1x4x64x16xbf16, #tpu.memory_space<vmem>>, vector<1x1x64x16xbf16>
    %82 = vector.shape_cast %81 : vector<1x1x64x16xbf16> to vector<64x16xbf16>
    %83 = vector.shape_cast %80 : vector<64x16xbf16> to vector<1x1x64x16xbf16>
    tpu.vector_store %arg8[%c0_44, %c2_45, %c0_46, %c0_47], %83 {strides = array<i32>} : memref<1x4x64x16xbf16, #tpu.memory_space<vmem>>, vector<1x1x64x16xbf16>,
    %84 = vector.extract_strided_slice %37 {offsets = [0, 160], sizes = [64, 16], strides = [1, 1]} : vector<64x192xf32> to vector<64x16xf32>
    %85 = arith.truncf %84 : vector<64x16xf32> to vector<64x16xbf16>
    %c0_48 = arith.constant 0 : index
    %c2_49 = arith.constant 2 : index
    %c0_50 = arith.constant 0 : index
    %c0_51 = arith.constant 0 : index
    %86 = vector.load %arg9[%c0_48, %c2_49, %c0_50, %c0_51] : memref<1x4x64x16xbf16, #tpu.memory_space<vmem>>, vector<1x1x64x16xbf16>
    %87 = vector.shape_cast %86 : vector<1x1x64x16xbf16> to vector<64x16xbf16>
    %88 = vector.shape_cast %85 : vector<64x16xbf16> to vector<1x1x64x16xbf16>
    tpu.vector_store %arg9[%c0_48, %c2_49, %c0_50, %c0_51], %88 {strides = array<i32>} : memref<1x4x64x16xbf16, #tpu.memory_space<vmem>>, vector<1x1x64x16xbf16>,
    %89 = vector.extract_strided_slice %37 {offsets = [0, 48], sizes = [64, 16], strides = [1, 1]} : vector<64x192xf32> to vector<64x16xf32>
    %cst_52 = arith.constant 2.500000e-01 : f32
    %90 = vector.broadcast %cst_52 : f32 to vector<64x16xf32>
    %91 = arith.mulf %89, %90 : vector<64x16xf32>
    %92 = arith.truncf %91 : vector<64x16xf32> to vector<64x16xbf16>
    %c0_53 = arith.constant 0 : index
    %c3 = arith.constant 3 : index
    %c0_54 = arith.constant 0 : index
    %c0_55 = arith.constant 0 : index
    %93 = vector.load %arg7[%c0_53, %c3, %c0_54, %c0_55] : memref<1x4x64x16xbf16, #tpu.memory_space<vmem>>, vector<1x1x64x16xbf16>
    %94 = vector.shape_cast %93 : vector<1x1x64x16xbf16> to vector<64x16xbf16>
    %95 = vector.shape_cast %92 : vector<64x16xbf16> to vector<1x1x64x16xbf16>
    tpu.vector_store %arg7[%c0_53, %c3, %c0_54, %c0_55], %95 {strides = array<i32>} : memref<1x4x64x16xbf16, #tpu.memory_space<vmem>>, vector<1x1x64x16xbf16>,
    %96 = vector.extract_strided_slice %37 {offsets = [0, 112], sizes = [64, 16], strides = [1, 1]} : vector<64x192xf32> to vector<64x16xf32>
    %97 = arith.truncf %96 : vector<64x16xf32> to vector<64x16xbf16>
    %c0_56 = arith.constant 0 : index
    %c3_57 = arith.constant 3 : index
    %c0_58 = arith.constant 0 : index
    %c0_59 = arith.constant 0 : index
    %98 = vector.load %arg8[%c0_56, %c3_57, %c0_58, %c0_59] : memref<1x4x64x16xbf16, #tpu.memory_space<vmem>>, vector<1x1x64x16xbf16>
    %99 = vector.shape_cast %98 : vector<1x1x64x16xbf16> to vector<64x16xbf16>
    %100 = vector.shape_cast %97 : vector<64x16xbf16> to vector<1x1x64x16xbf16>
    tpu.vector_store %arg8[%c0_56, %c3_57, %c0_58, %c0_59], %100 {strides = array<i32>} : memref<1x4x64x16xbf16, #tpu.memory_space<vmem>>, vector<1x1x64x16xbf16>,
    %101 = vector.extract_strided_slice %37 {offsets = [0, 176], sizes = [64, 16], strides = [1, 1]} : vector<64x192xf32> to vector<64x16xf32>
    %102 = arith.truncf %101 : vector<64x16xf32> to vector<64x16xbf16>
    %c0_60 = arith.constant 0 : index
    %c3_61 = arith.constant 3 : index
    %c0_62 = arith.constant 0 : index
    %c0_63 = arith.constant 0 : index
    %103 = vector.load %arg9[%c0_60, %c3_61, %c0_62, %c0_63] : memref<1x4x64x16xbf16, #tpu.memory_space<vmem>>, vector<1x1x64x16xbf16>
    %104 = vector.shape_cast %103 : vector<1x1x64x16xbf16> to vector<64x16xbf16>
    %105 = vector.shape_cast %102 : vector<64x16xbf16> to vector<1x1x64x16xbf16>
    tpu.vector_store %arg9[%c0_60, %c3_61, %c0_62, %c0_63], %105 {strides = array<i32>} : memref<1x4x64x16xbf16, #tpu.memory_space<vmem>>, vector<1x1x64x16xbf16>,
    return
  }
  func.func @transform_0(%arg0: i32, %arg1: i32) -> (i32, i32, i32) {
    %c0_i32 = arith.constant 0 : i32
    %c0_i32_0 = arith.constant 0 : i32
    return %arg0, %arg1, %c0_i32 : i32, i32, i32
  }
  func.func @transform_1(%arg0: i32, %arg1: i32) -> (i32, i32) {
    %c0_i32 = arith.constant 0 : i32
    %c0_i32_0 = arith.constant 0 : i32
    %c0_i32_1 = arith.constant 0 : i32
    return %c0_i32, %c0_i32_0 : i32, i32
  }
  func.func @transform_2(%arg0: i32, %arg1: i32) -> (i32, i32) {
    %c0_i32 = arith.constant 0 : i32
    %c0_i32_0 = arith.constant 0 : i32
    %c0_i32_1 = arith.constant 0 : i32
    return %c0_i32, %c0_i32_0 : i32, i32
  }
  func.func @transform_3(%arg0: i32, %arg1: i32) -> (i32, i32) {
    %c0_i32 = arith.constant 0 : i32
    %c0_i32_0 = arith.constant 0 : i32
    %c0_i32_1 = arith.constant 0 : i32
    return %c0_i32, %c0_i32_0 : i32, i32
  }
  func.func @transform_4(%arg0: i32, %arg1: i32) -> (i32, i32) {
    %c0_i32 = arith.constant 0 : i32
    %c0_i32_0 = arith.constant 0 : i32
    %c0_i32_1 = arith.constant 0 : i32
    return %c0_i32, %c0_i32_0 : i32, i32
  }
  func.func @transform_5(%arg0: i32, %arg1: i32) -> (i32, i32, i32, i32) {
    %c0_i32 = arith.constant 0 : i32
    %c0_i32_0 = arith.constant 0 : i32
    %c0_i32_1 = arith.constant 0 : i32
    return %arg0, %c0_i32, %arg1, %c0_i32_0 : i32, i32, i32, i32
  }
  func.func @transform_6(%arg0: i32, %arg1: i32) -> (i32, i32, i32, i32) {
    %c0_i32 = arith.constant 0 : i32
    %c0_i32_0 = arith.constant 0 : i32
    %c0_i32_1 = arith.constant 0 : i32
    return %arg0, %c0_i32, %arg1, %c0_i32_0 : i32, i32, i32, i32
  }
  func.func @transform_7(%arg0: i32, %arg1: i32) -> (i32, i32, i32, i32) {
    %c0_i32 = arith.constant 0 : i32
    %c0_i32_0 = arith.constant 0 : i32
    %c0_i32_1 = arith.constant 0 : i32
    return %arg0, %c0_i32, %arg1, %c0_i32_0 : i32, i32, i32, i32
  }
}

module attributes {stable_mosaic.version = 11 : i64} {
  func.func @qkv_kernel(%arg0: i32, %arg1: i32, %arg2: memref<1x64x64xf32, #tpu.memory_space<vmem>>, %arg3: memref<1x64xf32, #tpu.memory_space<vmem>>, %arg4: memref<1x64xf32, #tpu.memory_space<vmem>>, %arg5: memref<64x192xbf16, #tpu.memory_space<vmem>>, %arg6: memref<1x192xf32, #tpu.memory_space<vmem>>, %arg7: memref<1x4x64x16xbf16, #tpu.memory_space<vmem>>, %arg8: memref<1x4x64x16xbf16, #tpu.memory_space<vmem>>, %arg9: memref<1x4x64x16xbf16, #tpu.memory_space<vmem>>) attributes {dimension_semantics = [#tpu.dimension_semantics<parallel>, #tpu.dimension_semantics<parallel>], iteration_bounds = array<i64: 2, 2>, scalar_prefetch = 0 : i64, scratch_operands = 0 : i64, tpu.core_type = #tpu.core_type<tc>, window_params = [{transform_indices = @transform_0, window_bounds = array<i64: 1, 64, 64>}, {pipeline_mode = #tpu.pipeline_mode<synchronous>, transform_indices = @transform_1, window_bounds = array<i64: 1, 64>}, {pipeline_mode = #tpu.pipeline_mode<synchronous>, transform_indices = @transform_2, window_bounds = array<i64: 1, 64>}, {pipeline_mode = #tpu.pipeline_mode<synchronous>, transform_indices = @transform_3, window_bounds = array<i64: 64, 192>}, {pipeline_mode = #tpu.pipeline_mode<synchronous>, transform_indices = @transform_4, window_bounds = array<i64: 1, 192>}, {transform_indices = @transform_5, window_bounds = array<i64: 1, 4, 64, 16>}, {transform_indices = @transform_6, window_bounds = array<i64: 1, 4, 64, 16>}, {transform_indices = @transform_7, window_bounds = array<i64: 1, 4, 64, 16>}]} {
    %c0 = arith.constant 0 : index
    %c0_0 = arith.constant 0 : index
    %c0_1 = arith.constant 0 : index
    %0 = vector.load %arg2[%c0, %c0_0, %c0_1] : memref<1x64x64xf32, #tpu.memory_space<vmem>>, vector<1x64x64xf32>
    %1 = vector.shape_cast %0 : vector<1x64x64xf32> to vector<64x64xf32>
    %c0_2 = arith.constant 0 : index
    %c0_3 = arith.constant 0 : index
    %2 = vector.load %arg3[%c0_2, %c0_3] : memref<1x64xf32, #tpu.memory_space<vmem>>, vector<1x64xf32>
    %3 = vector.shape_cast %2 : vector<1x64xf32> to vector<64xf32>
    %c0_4 = arith.constant 0 : index
    %c0_5 = arith.constant 0 : index
    %4 = vector.load %arg4[%c0_4, %c0_5] : memref<1x64xf32, #tpu.memory_space<vmem>>, vector<1x64xf32>
    %5 = vector.shape_cast %4 : vector<1x64xf32> to vector<64xf32>
    %cst = arith.constant dense<0.000000e+00> : vector<64xf32>
    %6 = vector.multi_reduction <add>, %1, %cst [1] : vector<64x64xf32> to vector<64xf32>
    %7 = vector.shape_cast %6 : vector<64xf32> to vector<64x1xf32>
    %cst_6 = arith.constant 6.400000e+01 : f32
    %8 = vector.broadcast %cst_6 : f32 to vector<64x1xf32>
    %9 = arith.divf %7, %8 : vector<64x1xf32>
    %10 = vector.broadcast %9 : vector<64x1xf32> to vector<64x64xf32>
    %11 = arith.subf %1, %10 : vector<64x64xf32>
    %12 = arith.mulf %11, %11 : vector<64x64xf32>
    %cst_7 = arith.constant dense<0.000000e+00> : vector<64xf32>
    %13 = vector.multi_reduction <add>, %12, %cst_7 [1] : vector<64x64xf32> to vector<64xf32>
    %14 = vector.shape_cast %13 : vector<64xf32> to vector<64x1xf32>
    %cst_8 = arith.constant 6.400000e+01 : f32
    %15 = vector.broadcast %cst_8 : f32 to vector<64x1xf32>
    %16 = arith.divf %14, %15 : vector<64x1xf32>
    %17 = vector.broadcast %9 : vector<64x1xf32> to vector<64x64xf32>
    %18 = arith.subf %1, %17 : vector<64x64xf32>
    %cst_9 = arith.constant 9.99999974E-6 : f32
    %19 = vector.broadcast %cst_9 : f32 to vector<64x1xf32>
    %20 = arith.addf %16, %19 : vector<64x1xf32>
    %21 = math.rsqrt %20 : vector<64x1xf32>
    %22 = vector.broadcast %21 : vector<64x1xf32> to vector<64x64xf32>
    %23 = arith.mulf %18, %22 : vector<64x64xf32>
    %24 = vector.shape_cast %3 : vector<64xf32> to vector<1x64xf32>
    %25 = vector.broadcast %24 : vector<1x64xf32> to vector<64x64xf32>
    %26 = arith.mulf %23, %25 : vector<64x64xf32>
    %27 = vector.shape_cast %5 : vector<64xf32> to vector<1x64xf32>
    %28 = vector.broadcast %27 : vector<1x64xf32> to vector<64x64xf32>
    %29 = arith.addf %26, %28 : vector<64x64xf32>
    %30 = arith.truncf %29 : vector<64x64xf32> to vector<64x64xbf16>
    %c0_10 = arith.constant 0 : index
    %c0_11 = arith.constant 0 : index
    %31 = vector.load %arg5[%c0_10, %c0_11] : memref<64x192xbf16, #tpu.memory_space<vmem>>, vector<64x192xbf16>
    %cst_12 = arith.constant dense<0.000000e+00> : vector<64x192xf32>
    %32 = tpu.matmul %30, %31, %cst_12 {dimension_numbers = #tpu.dot_dimension_numbers<[1], [0], [0], [1], [0, 0, 1, 1], [], []>} : vector<64x64xbf16>, vector<64x192xbf16>, vector<64x192xf32> -> vector<64x192xf32>
    %c0_13 = arith.constant 0 : index
    %c0_14 = arith.constant 0 : index
    %33 = vector.load %arg6[%c0_13, %c0_14] : memref<1x192xf32, #tpu.memory_space<vmem>>, vector<1x192xf32>
    %34 = vector.shape_cast %33 : vector<1x192xf32> to vector<192xf32>
    %35 = vector.shape_cast %34 : vector<192xf32> to vector<1x192xf32>
    %36 = vector.broadcast %35 : vector<1x192xf32> to vector<64x192xf32>
    %37 = arith.addf %32, %36 : vector<64x192xf32>
    %38 = vector.extract_strided_slice %37 {offsets = [0, 0], sizes = [64, 16], strides = [1, 1]} : vector<64x192xf32> to vector<64x16xf32>
    %cst_15 = arith.constant 2.500000e-01 : f32
    %39 = vector.broadcast %cst_15 : f32 to vector<64x16xf32>
    %40 = arith.mulf %38, %39 : vector<64x16xf32>
    %41 = arith.truncf %40 : vector<64x16xf32> to vector<64x16xbf16>
    %c0_16 = arith.constant 0 : index
    %c0_17 = arith.constant 0 : index
    %c0_18 = arith.constant 0 : index
    %c0_19 = arith.constant 0 : index
    %42 = vector.load %arg7[%c0_16, %c0_17, %c0_18, %c0_19] : memref<1x4x64x16xbf16, #tpu.memory_space<vmem>>, vector<1x1x64x16xbf16>
    %43 = vector.shape_cast %42 : vector<1x1x64x16xbf16> to vector<64x16xbf16>
    %44 = vector.shape_cast %41 : vector<64x16xbf16> to vector<1x1x64x16xbf16>
    tpu.vector_store %arg7[%c0_16, %c0_17, %c0_18, %c0_19], %44 {strides = array<i32>} : memref<1x4x64x16xbf16, #tpu.memory_space<vmem>>, vector<1x1x64x16xbf16>,
    %45 = vector.extract_strided_slice %37 {offsets = [0, 64], sizes = [64, 16], strides = [1, 1]} : vector<64x192xf32> to vector<64x16xf32>
    %46 = arith.truncf %45 : vector<64x16xf32> to vector<64x16xbf16>
    %c0_20 = arith.constant 0 : index
    %c0_21 = arith.constant 0 : index
    %c0_22 = arith.constant 0 : index
    %c0_23 = arith.constant 0 : index
    %47 = vector.load %arg8[%c0_20, %c0_21, %c0_22, %c0_23] : memref<1x4x64x16xbf16, #tpu.memory_space<vmem>>, vector<1x1x64x16xbf16>
    %48 = vector.shape_cast %47 : vector<1x1x64x16xbf16> to vector<64x16xbf16>
    %49 = vector.shape_cast %46 : vector<64x16xbf16> to vector<1x1x64x16xbf16>
    tpu.vector_store %arg8[%c0_20, %c0_21, %c0_22, %c0_23], %49 {strides = array<i32>} : memref<1x4x64x16xbf16, #tpu.memory_space<vmem>>, vector<1x1x64x16xbf16>,
    %50 = vector.extract_strided_slice %37 {offsets = [0, 128], sizes = [64, 16], strides = [1, 1]} : vector<64x192xf32> to vector<64x16xf32>
    %51 = arith.truncf %50 : vector<64x16xf32> to vector<64x16xbf16>
    %c0_24 = arith.constant 0 : index
    %c0_25 = arith.constant 0 : index
    %c0_26 = arith.constant 0 : index
    %c0_27 = arith.constant 0 : index
    %52 = vector.load %arg9[%c0_24, %c0_25, %c0_26, %c0_27] : memref<1x4x64x16xbf16, #tpu.memory_space<vmem>>, vector<1x1x64x16xbf16>
    %53 = vector.shape_cast %52 : vector<1x1x64x16xbf16> to vector<64x16xbf16>
    %54 = vector.shape_cast %51 : vector<64x16xbf16> to vector<1x1x64x16xbf16>
    tpu.vector_store %arg9[%c0_24, %c0_25, %c0_26, %c0_27], %54 {strides = array<i32>} : memref<1x4x64x16xbf16, #tpu.memory_space<vmem>>, vector<1x1x64x16xbf16>,
    %55 = vector.extract_strided_slice %37 {offsets = [0, 16], sizes = [64, 16], strides = [1, 1]} : vector<64x192xf32> to vector<64x16xf32>
    %cst_28 = arith.constant 2.500000e-01 : f32
    %56 = vector.broadcast %cst_28 : f32 to vector<64x16xf32>
    %57 = arith.mulf %55, %56 : vector<64x16xf32>
    %58 = arith.truncf %57 : vector<64x16xf32> to vector<64x16xbf16>
    %c0_29 = arith.constant 0 : index
    %c1 = arith.constant 1 : index
    %c0_30 = arith.constant 0 : index
    %c0_31 = arith.constant 0 : index
    %59 = vector.load %arg7[%c0_29, %c1, %c0_30, %c0_31] : memref<1x4x64x16xbf16, #tpu.memory_space<vmem>>, vector<1x1x64x16xbf16>
    %60 = vector.shape_cast %59 : vector<1x1x64x16xbf16> to vector<64x16xbf16>
    %61 = vector.shape_cast %58 : vector<64x16xbf16> to vector<1x1x64x16xbf16>
    tpu.vector_store %arg7[%c0_29, %c1, %c0_30, %c0_31], %61 {strides = array<i32>} : memref<1x4x64x16xbf16, #tpu.memory_space<vmem>>, vector<1x1x64x16xbf16>,
    %62 = vector.extract_strided_slice %37 {offsets = [0, 80], sizes = [64, 16], strides = [1, 1]} : vector<64x192xf32> to vector<64x16xf32>
    %63 = arith.truncf %62 : vector<64x16xf32> to vector<64x16xbf16>
    %c0_32 = arith.constant 0 : index
    %c1_33 = arith.constant 1 : index
    %c0_34 = arith.constant 0 : index
    %c0_35 = arith.constant 0 : index
    %64 = vector.load %arg8[%c0_32, %c1_33, %c0_34, %c0_35] : memref<1x4x64x16xbf16, #tpu.memory_space<vmem>>, vector<1x1x64x16xbf16>
    %65 = vector.shape_cast %64 : vector<1x1x64x16xbf16> to vector<64x16xbf16>
    %66 = vector.shape_cast %63 : vector<64x16xbf16> to vector<1x1x64x16xbf16>
    tpu.vector_store %arg8[%c0_32, %c1_33, %c0_34, %c0_35], %66 {strides = array<i32>} : memref<1x4x64x16xbf16, #tpu.memory_space<vmem>>, vector<1x1x64x16xbf16>,
    %67 = vector.extract_strided_slice %37 {offsets = [0, 144], sizes = [64, 16], strides = [1, 1]} : vector<64x192xf32> to vector<64x16xf32>
    %68 = arith.truncf %67 : vector<64x16xf32> to vector<64x16xbf16>
    %c0_36 = arith.constant 0 : index
    %c1_37 = arith.constant 1 : index
    %c0_38 = arith.constant 0 : index
    %c0_39 = arith.constant 0 : index
    %69 = vector.load %arg9[%c0_36, %c1_37, %c0_38, %c0_39] : memref<1x4x64x16xbf16, #tpu.memory_space<vmem>>, vector<1x1x64x16xbf16>
    %70 = vector.shape_cast %69 : vector<1x1x64x16xbf16> to vector<64x16xbf16>
    %71 = vector.shape_cast %68 : vector<64x16xbf16> to vector<1x1x64x16xbf16>
    tpu.vector_store %arg9[%c0_36, %c1_37, %c0_38, %c0_39], %71 {strides = array<i32>} : memref<1x4x64x16xbf16, #tpu.memory_space<vmem>>, vector<1x1x64x16xbf16>,
    %72 = vector.extract_strided_slice %37 {offsets = [0, 32], sizes = [64, 16], strides = [1, 1]} : vector<64x192xf32> to vector<64x16xf32>
    %cst_40 = arith.constant 2.500000e-01 : f32
    %73 = vector.broadcast %cst_40 : f32 to vector<64x16xf32>
    %74 = arith.mulf %72, %73 : vector<64x16xf32>
    %75 = arith.truncf %74 : vector<64x16xf32> to vector<64x16xbf16>
    %c0_41 = arith.constant 0 : index
    %c2 = arith.constant 2 : index
    %c0_42 = arith.constant 0 : index
    %c0_43 = arith.constant 0 : index
    %76 = vector.load %arg7[%c0_41, %c2, %c0_42, %c0_43] : memref<1x4x64x16xbf16, #tpu.memory_space<vmem>>, vector<1x1x64x16xbf16>
    %77 = vector.shape_cast %76 : vector<1x1x64x16xbf16> to vector<64x16xbf16>
    %78 = vector.shape_cast %75 : vector<64x16xbf16> to vector<1x1x64x16xbf16>
    tpu.vector_store %arg7[%c0_41, %c2, %c0_42, %c0_43], %78 {strides = array<i32>} : memref<1x4x64x16xbf16, #tpu.memory_space<vmem>>, vector<1x1x64x16xbf16>,
    %79 = vector.extract_strided_slice %37 {offsets = [0, 96], sizes = [64, 16], strides = [1, 1]} : vector<64x192xf32> to vector<64x16xf32>
    %80 = arith.truncf %79 : vector<64x16xf32> to vector<64x16xbf16>
    %c0_44 = arith.constant 0 : index
    %c2_45 = arith.constant 2 : index
    %c0_46 = arith.constant 0 : index
    %c0_47 = arith.constant 0 : index
    %81 = vector.load %arg8[%c0_44, %c2_45, %c0_46, %c0_47] : memref<1x4x64x16xbf16, #tpu.memory_space<vmem>>, vector<1x1x64x16xbf16>
    %82 = vector.shape_cast %81 : vector<1x1x64x16xbf16> to vector<64x16xbf16>
    %83 = vector.shape_cast %80 : vector<64x16xbf16> to vector<1x1x64x16xbf16>
    tpu.vector_store %arg8[%c0_44, %c2_45, %c0_46, %c0_47], %83 {strides = array<i32>} : memref<1x4x64x16xbf16, #tpu.memory_space<vmem>>, vector<1x1x64x16xbf16>,
    %84 = vector.extract_strided_slice %37 {offsets = [0, 160], sizes = [64, 16], strides = [1, 1]} : vector<64x192xf32> to vector<64x16xf32>
    %85 = arith.truncf %84 : vector<64x16xf32> to vector<64x16xbf16>
    %c0_48 = arith.constant 0 : index
    %c2_49 = arith.constant 2 : index
    %c0_50 = arith.constant 0 : index
    %c0_51 = arith.constant 0 : index
    %86 = vector.load %arg9[%c0_48, %c2_49, %c0_50, %c0_51] : memref<1x4x64x16xbf16, #tpu.memory_space<vmem>>, vector<1x1x64x16xbf16>
    %87 = vector.shape_cast %86 : vector<1x1x64x16xbf16> to vector<64x16xbf16>
    %88 = vector.shape_cast %85 : vector<64x16xbf16> to vector<1x1x64x16xbf16>
    tpu.vector_store %arg9[%c0_48, %c2_49, %c0_50, %c0_51], %88 {strides = array<i32>} : memref<1x4x64x16xbf16, #tpu.memory_space<vmem>>, vector<1x1x64x16xbf16>,
    %89 = vector.extract_strided_slice %37 {offsets = [0, 48], sizes = [64, 16], strides = [1, 1]} : vector<64x192xf32> to vector<64x16xf32>
    %cst_52 = arith.constant 2.500000e-01 : f32
    %90 = vector.broadcast %cst_52 : f32 to vector<64x16xf32>
    %91 = arith.mulf %89, %90 : vector<64x16xf32>
    %92 = arith.truncf %91 : vector<64x16xf32> to vector<64x16xbf16>
    %c0_53 = arith.constant 0 : index
    %c3 = arith.constant 3 : index
    %c0_54 = arith.constant 0 : index
    %c0_55 = arith.constant 0 : index
    %93 = vector.load %arg7[%c0_53, %c3, %c0_54, %c0_55] : memref<1x4x64x16xbf16, #tpu.memory_space<vmem>>, vector<1x1x64x16xbf16>
    %94 = vector.shape_cast %93 : vector<1x1x64x16xbf16> to vector<64x16xbf16>
    %95 = vector.shape_cast %92 : vector<64x16xbf16> to vector<1x1x64x16xbf16>
    tpu.vector_store %arg7[%c0_53, %c3, %c0_54, %c0_55], %95 {strides = array<i32>} : memref<1x4x64x16xbf16, #tpu.memory_space<vmem>>, vector<1x1x64x16xbf16>,
    %96 = vector.extract_strided_slice %37 {offsets = [0, 112], sizes = [64, 16], strides = [1, 1]} : vector<64x192xf32> to vector<64x16xf32>
    %97 = arith.truncf %96 : vector<64x16xf32> to vector<64x16xbf16>
    %c0_56 = arith.constant 0 : index
    %c3_57 = arith.constant 3 : index
    %c0_58 = arith.constant 0 : index
    %c0_59 = arith.constant 0 : index
    %98 = vector.load %arg8[%c0_56, %c3_57, %c0_58, %c0_59] : memref<1x4x64x16xbf16, #tpu.memory_space<vmem>>, vector<1x1x64x16xbf16>
    %99 = vector.shape_cast %98 : vector<1x1x64x16xbf16> to vector<64x16xbf16>
    %100 = vector.shape_cast %97 : vector<64x16xbf16> to vector<1x1x64x16xbf16>
    tpu.vector_store %arg8[%c0_56, %c3_57, %c0_58, %c0_59], %100 {strides = array<i32>} : memref<1x4x64x16xbf16, #tpu.memory_space<vmem>>, vector<1x1x64x16xbf16>,
    %101 = vector.extract_strided_slice %37 {offsets = [0, 176], sizes = [64, 16], strides = [1, 1]} : vector<64x192xf32> to vector<64x16xf32>
    %102 = arith.truncf %101 : vector<64x16xf32> to vector<64x16xbf16>
    %c0_60 = arith.constant 0 : index
    %c3_61 = arith.constant 3 : index
    %c0_62 = arith.constant 0 : index
    %c0_63 = arith.constant 0 : index
    %103 = vector.load %arg9[%c0_60, %c3_61, %c0_62, %c0_63] : memref<1x4x64x16xbf16, #tpu.memory_space<vmem>>, vector<1x1x64x16xbf16>
    %104 = vector.shape_cast %103 : vector<1x1x64x16xbf16> to vector<64x16xbf16>
    %105 = vector.shape_cast %102 : vector<64x16xbf16> to vector<1x1x64x16xbf16>
    tpu.vector_store %arg9[%c0_60, %c3_61, %c0_62, %c0_63], %105 {strides = array<i32>} : memref<1x4x64x16xbf16, #tpu.memory_space<vmem>>, vector<1x1x64x16xbf16>,
    return
  }
  func.func @transform_0(%arg0: i32, %arg1: i32) -> (i32, i32, i32) {
    %c0_i32 = arith.constant 0 : i32
    %c0_i32_0 = arith.constant 0 : i32
    return %arg0, %arg1, %c0_i32 : i32, i32, i32
  }
  func.func @transform_1(%arg0: i32, %arg1: i32) -> (i32, i32) {
    %c0_i32 = arith.constant 0 : i32
    %c0_i32_0 = arith.constant 0 : i32
    %c0_i32_1 = arith.constant 0 : i32
    return %c0_i32, %c0_i32_0 : i32, i32
  }
  func.func @transform_2(%arg0: i32, %arg1: i32) -> (i32, i32) {
    %c0_i32 = arith.constant 0 : i32
    %c0_i32_0 = arith.constant 0 : i32
    %c0_i32_1 = arith.constant 0 : i32
    return %c0_i32, %c0_i32_0 : i32, i32
  }
  func.func @transform_3(%arg0: i32, %arg1: i32) -> (i32, i32) {
    %c0_i32 = arith.constant 0 : i32
    %c0_i32_0 = arith.constant 0 : i32
    %c0_i32_1 = arith.constant 0 : i32
    return %c0_i32, %c0_i32_0 : i32, i32
  }
  func.func @transform_4(%arg0: i32, %arg1: i32) -> (i32, i32) {
    %c0_i32 = arith.constant 0 : i32
    %c0_i32_0 = arith.constant 0 : i32
    %c0_i32_1 = arith.constant 0 : i32
    return %c0_i32, %c0_i32_0 : i32, i32
  }
  func.func @transform_5(%arg0: i32, %arg1: i32) -> (i32, i32, i32, i32) {
    %c0_i32 = arith.constant 0 : i32
    %c0_i32_0 = arith.constant 0 : i32
    %c0_i32_1 = arith.constant 0 : i32
    return %arg0, %c0_i32, %arg1, %c0_i32_0 : i32, i32, i32, i32
  }
  func.func @transform_6(%arg0: i32, %arg1: i32) -> (i32, i32, i32, i32) {
    %c0_i32 = arith.constant 0 : i32
    %c0_i32_0 = arith.constant 0 : i32
    %c0_i32_1 = arith.constant 0 : i32
    return %arg0, %c0_i32, %arg1, %c0_i32_0 : i32, i32, i32, i32
  }
  func.func @transform_7(%arg0: i32, %arg1: i32) -> (i32, i32, i32, i32) {
    %c0_i32 = arith.constant 0 : i32
    %c0_i32_0 = arith.constant 0 : i32
    %c0_i32_1 = arith.constant 0 : i32
    return %arg0, %c0_i32, %arg1, %c0_i32_0 : i32, i32, i32, i32
  }
}

</mosaic_0001>

<bundles_post_ra>
// kernel: tpu_custom_call.1
= control target key start
LH: loop header
LB: loop body
LE: loop exit
PB: predicated region body
PF: predicated region fallthrough
CT: control target
= control target key end

     0   :  { %s3016_s0 = inlined_call_operand.hbm [shape: f32[2,128,64], index: 0, kind: input, shape index: {}]   ;;  %s3017_s1 = inlined_call_operand.hbm [shape: f32[1,64], index: 1, kind: input, shape index: {}]   ;;  %s3018_s2 = inlined_call_operand.hbm [shape: f32[1,64], index: 2, kind: input, shape index: {}]   ;;  %s3019_s3 = inlined_call_operand.hbm [shape: bf16[64,192], index: 3, kind: input, shape index: {}]   ;;  %s3020_s4 = inlined_call_operand.hbm [shape: f32[1,192], index: 4, kind: input, shape index: {}]   ;;  %s3021_s5 = inlined_call_operand.hbm [shape: bf16[2,4,128,16], index: 5, kind: output, shape index: {0}]   ;;  %s3022_s6 = inlined_call_operand.hbm [shape: bf16[2,4,128,16], index: 6, kind: output, shape index: {1}]   ;;  %s3023_s7 = inlined_call_operand.hbm [shape: bf16[2,4,128,16], index: 7, kind: output, shape index: {2}]  }
   0x1   :  { %3033 = sst [smem:[#allocation29_spill]] %s3017_s1 }
   0x2   :  { %3034 = sst [smem:[#allocation30_spill]] %s3018_s2 }
   0x3   :  { %3035 = sst [smem:[#allocation31_spill]] %s3019_s3 }
   0x4   :  { %3036 = sst [smem:[#allocation32_spill]] %s3020_s4 }
   0x5   :  { %3037 = sst [smem:[#allocation33_spill]] %s3022_s6 }
   0x6   :  { %3038 = sst [smem:[#allocation34_spill]] %s3023_s7 }
   0x7   :  { %13 = vsyncpa [#allocation3], 0 }
   0x8   :  { %15 = vsyncpa [#allocation3 + $0x1], 0 }
   0x9   :  { %16 = vsyncpa [#allocation6], 0 }
   0xa   :  { %17 = vsyncpa [#allocation9], 0 }
   0xb   :  { %18 = vsyncpa [#allocation4], 0 }
   0xc   :  { %20 = vsyncpa [#allocation4 + $0x1], 0 }
   0xd   :  { %21 = vsyncpa [#allocation13], 0 }
   0xe   :  { %23 = vsyncpa [#allocation13 + $0x1], 0  ;;  %s2158_s24 = smov 0   ;;  %s2160_s25 = smov 0  }
   0xf   :  { %s2162_s26 = smov 0   ;;  %s2164_s27 = smov 0  }
  0x10   :  { %s2166_s28 = smov 0   ;;  %s2168_s29 = smov 0  }
  0x11   :  { %s2170_s30 = smov 0   ;;  %s2172_s8 = smov 0  }
  0x12 LB: > { %3039 = sst [smem:[#allocation26_spill]] %s2052_s24  ;;  %s2199_s9 = sadd.s32 4294967295, %s2080_s8   ;;  %s2080_s8 = sphi %s2172_s8, %s29_s8   ;;  %s2076_s30 = sphi %s2170_s30, %s3076_s30   ;;  %s2072_s29 = sphi %s2168_s29, %s3075_s29   ;;  %s2068_s28 = sphi %s2166_s28, %s3074_s28   ;;  %s2064_s27 = sphi %s2164_s27, %s3073_s27   ;;  %s2060_s26 = sphi %s2162_s26, %s3072_s26   ;;  %s2056_s25 = sphi %s2160_s25, %s3071_s25   ;;  %s2052_s24 = sphi %s2158_s24, %s3070_s24  }
  0x13   : > { %s3024_s10 = sadd.s32 4294967294, %s2080_s8   ;;  %p63_p0 = scmp.ne.s32.totalorder %s2056_s25, %s2052_s24 }
  0x14   : > { %p3026_p1 = scmp.eq.s32.totalorder %s2199_s9, 0  ;;  %p179_p3 = scmp.eq.s32.totalorder %s3024_s10, 3 }
  0x15   : > { %p1475_p5 = scmp.ge.s32.totalorder %s2080_s8, 1  ;;  %p242_p7 = scmp.lt.s32.totalorder %s2080_s8, 5 }
  0x16   : > { %p2210_p4 = por %p3026_p1, %p63_p0  ;;  %p2215_p6 = por %p179_p3, %p63_p0 }
  0x17   : > { %p2220_p8 = pnand %p1475_p5, %p242_p7  ;;  %s2082_s14 = smov [#allocation5]  }
  0x18   : > { %s3040_s11 = scalar_select %p2210_p4, 1, 0 }
  0x19   : > { %s3041_s12 = scalar_select %p2215_p6, 1, 0 }
  0x1a   : > { %s3043_s13 = scalar_select %p2220_p8, 1, 0 }
  0x1b   : > { %3042 = sst [smem:[#allocation27_spill]] %s3041_s12  ;;  %s255_s15 = sshll.u32 %s2082_s14, 4  ;;  %s256_s15 = int_to_ptr.vmem [resolvable:$true] %s255_s15 }
  0x1c   : > { %p1692_p9 = pneg %p2220_p8  ;;  %s2083_s16 = smov [#allocation8]  }
  0x1d   : > { %s276_s17 = sshll.u32 %s2083_s16, 4  ;;  %s2084_s19 = smov [#allocation7]   ;;  %s2232_s17 = int_to_ptr.vmem [resolvable:$true] %s276_s17 }
  0x1e   : > { %p2228_p10 = pnand %p1692_p9, %p3026_p1  ;;  %s2234_s20 = sshll.u32 %s2084_s19, 4  ;;  %s267_s20 = int_to_ptr.vmem [resolvable:$true] %s2234_s20 }
  0x1f   : > { %s3045_s1 = sld [smem:[#allocation29_spill]] }
  0x20   : > { %p2244_p12 = pneg %p2228_p10 }
  0x25   : > { %s1856_s23 = scalar_lea.hbm %s3045_s1, 16 }
  0x26   : > { %p1857_p11 = scmp.ne.s32.totalorder %s3045_s1, %s1856_s23  ;;  %p1863_p3 = scmp.lt.u32.totalorder %s1856_s23, %s3045_s1 }
  0x28   : > { %p1859_p13 = pnand %p2244_p12, %p1857_p11 }
  0x2a   : > { %p1860_p0 = pneg %p1859_p13 }
  0x2c   : > { %p1865_p5 = pnand %p1863_p3, %p1860_p0 }
  0x2e   : > { %1868 = shalt.err (!%p1865_p5)
}
  0x2f   : > { %s1869_s21 = scalar_lea.vmem %s256_s15, 16  ;;  %s1876_s10 = scalar_lea.vmem %s256_s15, 32 }
  0x30   : > { %p1870_p7 = scmp.ne.s32.totalorder %s256_s15, %s1869_s21  ;;  %p1877_p2 = scmp.lt.s32.totalorder %s256_s15, %s256_s15 }
  0x31   : > { %p1878_p6 = scmp.lt.s32.totalorder %s1876_s10, %s1869_s21 }
  0x32   : > { %p1872_p9 = pnand %p1870_p7, %p2244_p12 }
  0x33   : > { %p1879_p4 = por %p1878_p6, %p1877_p2 }
  0x34   : > { %p1873_p1 = pneg %p1872_p9 }
  0x36   : > { %p1880_p8 = pnand %p1879_p4, %p1873_p1 }
  0x38   : > { %1883 = shalt.err (!%p1880_p8)
}
  0x39   : > { %1695 = dma.hbm_to_vmem [thread:$0]  (!%p2228_p10), %s3045_s1, 16, %s256_s15, [#allocation6]  }
  0x3a   : > { %s3047_s3 = sld [smem:[#allocation31_spill]] }
  0x40   : > { %s1884_s19 = scalar_lea.hbm %s3047_s3, 1024 }
  0x41   : > { %p1885_p11 = scmp.ne.s32.totalorder %s3047_s3, %s1884_s19  ;;  %p1891_p1 = scmp.lt.u32.totalorder %s1884_s19, %s3047_s3 }
  0x43   : > { %p1887_p13 = pnand %p1885_p11, %p2244_p12 }
  0x45   : > { %p1888_p2 = pneg %p1887_p13 }
  0x47   : > { %p1893_p4 = pnand %p1891_p1, %p1888_p2 }
  0x49   : > { %1896 = shalt.err (!%p1893_p4)
}
  0x4a   : > { %s1897_s15 = scalar_lea.vmem %s2232_s17, 1024  ;;  %p1905_p3 = scmp.lt.s32.totalorder %s2232_s17, %s2232_s17 }
  0x4b   : > { %p1898_p6 = scmp.ne.s32.totalorder %s2232_s17, %s1897_s15  ;;  %p1906_p5 = scmp.lt.s32.totalorder %s1897_s15, %s1897_s15 }
  0x4d   : > { %p1900_p8 = pnand %p1898_p6, %p2244_p12  ;;  %p1907_p7 = por %p1906_p5, %p1905_p3 }
  0x4f   : > { %p1901_p0 = pneg %p1900_p8 }
  0x51   : > { %p1908_p9 = pnand %p1907_p7, %p1901_p0 }
  0x53   : > { %1911 = shalt.err (!%p1908_p9)
}
  0x54   : > { %s3030_s7 = smov 128   ;;  %s3031_s24 = smov 8  }
  0x55   : > { %1701 = dma.hbm_to_vmem [thread:$0]  (!%p2228_p10), %s3047_s3, 1024, %s2232_s17, [#allocation9], %s3030_s7, %s3030_s7, %s3031_s24  }
  0x56   : > { %s3048_s2 = sld [smem:[#allocation30_spill]] }
  0x5c   : > { %s1912_s19 = scalar_lea.hbm %s3048_s2, 16 }
  0x5d   : > { %p1913_p11 = scmp.ne.s32.totalorder %s3048_s2, %s1912_s19  ;;  %p1919_p1 = scmp.lt.u32.totalorder %s1912_s19, %s3048_s2 }
  0x5f   : > { %p1915_p13 = pnand %p1913_p11, %p2244_p12 }
  0x61   : > { %p1916_p2 = pneg %p1915_p13 }
  0x63   : > { %p1921_p4 = pnand %p1919_p1, %p1916_p2 }
  0x65   : > { %1924 = shalt.err (!%p1921_p4)
}
  0x66   : > { %s1925_s22 = scalar_lea.vmem %s267_s20, 16  ;;  %s1932_s17 = scalar_lea.vmem %s267_s20, 32 }
  0x67   : > { %p1926_p6 = scmp.ne.s32.totalorder %s267_s20, %s1925_s22  ;;  %p1933_p3 = scmp.lt.s32.totalorder %s267_s20, %s267_s20 }
  0x68   : > { %p1934_p5 = scmp.lt.s32.totalorder %s1932_s17, %s1925_s22 }
  0x69   : > { %p1928_p8 = pnand %p1926_p6, %p2244_p12 }
  0x6a   : > { %p1935_p7 = por %p1934_p5, %p1933_p3 }
  0x6b   : > { %p1929_p0 = pneg %p1928_p8 }
  0x6d   : > { %p1936_p9 = pnand %p1935_p7, %p1929_p0 }
  0x6f   : > { %1939 = shalt.err (!%p1936_p9)
}
  0x70   : > { %1698 = dma.hbm_to_vmem [thread:$0]  (!%p2228_p10), %s3048_s2, 16, %s267_s20, [#allocation6]  }
  0x71   : > { %s2087_s1 = smov [#allocation10]   ;;  %s3049_s4 = sld [smem:[#allocation32_spill]] }
  0x72   : > { %s290_s23 = sshll.u32 %s2087_s1, 4  ;;  %s291_s23 = int_to_ptr.vmem [resolvable:$true] %s290_s23 }
  0x77   : > { %s1940_s10 = scalar_lea.hbm %s3049_s4, 32 }
  0x78   : > { %p1941_p11 = scmp.ne.s32.totalorder %s3049_s4, %s1940_s10  ;;  %p1947_p1 = scmp.lt.u32.totalorder %s1940_s10, %s3049_s4 }
  0x7a   : > { %p1943_p13 = pnand %p1941_p11, %p2244_p12 }
  0x7c   : > { %p1944_p2 = pneg %p1943_p13 }
  0x7e   : > { %p1949_p4 = pnand %p1947_p1, %p1944_p2 }
  0x80   : > { %1952 = shalt.err (!%p1949_p4)
}
  0x81   : > { %s1953_s20 = scalar_lea.vmem %s291_s23, 32  ;;  %p1961_p3 = scmp.lt.s32.totalorder %s291_s23, %s291_s23 }
  0x82   : > { %p1954_p6 = scmp.ne.s32.totalorder %s291_s23, %s1953_s20  ;;  %p1962_p5 = scmp.lt.s32.totalorder %s1953_s20, %s1953_s20 }
  0x84   : > { %p1956_p8 = pnand %p1954_p6, %p2244_p12  ;;  %p1963_p7 = por %p1962_p5, %p1961_p3 }
  0x86   : > { %p1957_p0 = pneg %p1956_p8 }
  0x88   : > { %p1964_p9 = pnand %p1963_p7, %p1957_p0 }
  0x8a   : > { %1967 = shalt.err (!%p1964_p9)
}
  0x8b   : > { %1704 = dma.hbm_to_vmem [thread:$0]  (!%p2228_p10), %s3049_s4, 32, %s291_s23, [#allocation9]  }
  0x8c   : > { %s38_s16 = sadd.s32 1, %s2072_s29  ;;  %s41_s12 = sadd.s32 1, %s2076_s30 }
  0x8d   : > { %p39_p12 = scmp.ge.s32.totalorder %s38_s16, 2  ;;  %s50_s18 = sadd.s32 1, %s2060_s26 }
  0x8e   : > { %p57_p11 = scmp.ne.s32.totalorder %s2060_s26, %s2056_s25  ;;  %p58_p13 = scmp.eq.s32.totalorder %s2080_s8, 0 }
  0x8f   : > { %s3078_s16 = smov (%p39_p12, %s38_s16), 0  ;;  %s3080_s12 = smov (!%p39_p12, %s41_s12), %s2076_s30 }
  0x90   : > { %3050 = sst [smem:[#allocation28_spill]] %s3078_s16  ;;  %s46_s1 = ssub.s32 %s2072_s29, %s3078_s16 }
  0x91   : > { %p2334_p2 = por %p58_p13, %p57_p11  ;;  %p43_p10 = scmp.ge.s32.totalorder %s3080_s12, 2 }
  0x92   : > { %p3052_p1 = scmp.eq.s32.totalorder %s2199_s9, 3  ;;  %p1723_p6 = scmp.lt.s32.totalorder %s2080_s8, 4 }
  0x93   : > { %s301_s21 = sand.u32 1, %s2060_s26   ;;  %s3082_s12 = smov (%p43_p10, %s3080_s12), 0 }
  0x94   : > { %p2340_p4 = por %p3052_p1, %p57_p11  ;;  %s1481_s10 = sshll.u32 %s301_s21, 6 }
  0x95   : > { %s45_s15 = ssub.s32 %s2076_s30, %s3082_s12  ;;  %s1482_s17 = sshll.u32 %s2072_s29, 3 }
  0x96   : > { %s47_s22 = sor.u32 %s46_s1, %s45_s15  ;;  %s1483_s20 = sshll.u32 %s2076_s30, 4 }
  0x97   : > { %p48_p8 = scmp.eq.s32.totalorder %s47_s22, 0  ;;  %s311_s7 = sadd.s32 %s1483_s20, %s1482_s17 }
  0x98   : > { %s305_s14 = scalar_lea.vmem [#allocation2], %s1481_s10  ;;  %s1484_s3 = sshll.u32 %s311_s7, 7 }
  0x99   : > { %s314_s24 = sshll.u32 %s305_s14, 4  ;;  %s2360_s6 = scalar_lea.hbm %s3016_s0, %s1484_s3  ;;  %s2355_s24 = int_to_ptr.vmem [resolvable:$true] %s314_s24 }
  0x9a   : > { %s2353_s2 = scalar_select %p48_p8, %s2060_s26, %s50_s18  }
  0x9b   : > { %p2366_p0 = pnand %p1723_p6, %p2334_p2  ;;  %s2370_s18 = scalar_lea.sflag [#allocation3], %s301_s21 }
  0x9c   : > { %s1968_s10 = scalar_lea.hbm %s2360_s6, 1024  ;;  %s1973_s16 = scalar_lea.hbm %s3016_s0, 4096 }
  0x9d   : > { %p1969_p3 = scmp.ne.s32.totalorder %s2360_s6, %s1968_s10  ;;  %p1970_p5 = pneg %p2366_p0 }
  0x9e   : > { %p1974_p12 = scmp.lt.u32.totalorder %s2360_s6, %s3016_s0  ;;  %p1975_p11 = scmp.lt.u32.totalorder %s1973_s16, %s1968_s10 }
  0x9f   : > { %p1971_p7 = pnand %p1970_p5, %p1969_p3  ;;  %p1977_p2 = scmp.lt.u32.totalorder %s1968_s10, %s2360_s6 }
  0xa0   : > { %p1976_p13 = por %p1975_p11, %p1974_p12 }
  0xa1   : > { %p1972_p9 = pneg %p1971_p7 }
  0xa2   : > { %p1978_p10 = por %p1977_p2, %p1976_p13 }
  0xa4   : > { %p1979_p1 = pnand %p1978_p10, %p1972_p9 }
  0xa6   : > { %1982 = shalt.err (!%p1979_p1)
}
  0xa7   : > { %s1983_s21 = scalar_lea.vmem %s2355_s24, 1024  ;;  %s2088_s22 = smov [#allocation2]  }
  0xa8   : > { %p1984_p6 = scmp.ne.s32.totalorder %s2355_s24, %s1983_s21  ;;  %s1988_s17 = sshll.u32 %s2088_s22, 4  ;;  %s1989_s17 = int_to_ptr.vmem [resolvable:$false] %s1988_s17 }
  0xa9   : > { %s1990_s20 = scalar_lea.vmem %s1989_s17, 2048  ;;  %p1991_p7 = scmp.lt.s32.totalorder %s2355_s24, %s1989_s17 }
  0xaa   : > { %p1986_p8 = pnand %p1984_p6, %p1970_p5  ;;  %p1992_p12 = scmp.lt.s32.totalorder %s1990_s20, %s1983_s21 }
  0xac   : > { %p1987_p3 = pneg %p1986_p8  ;;  %p1993_p11 = por %p1992_p12, %p1991_p7 }
  0xae   : > { %p1994_p13 = pnand %p1993_p11, %p1987_p3 }
  0xb0   : > { %1997 = shalt.err (!%p1994_p13)
}
  0xb1   : > { %s3055_s7 = smov 8   ;;  %s3056_s14 = smov 128  }
  0xb2   : > { %1708 = dma.hbm_to_vmem [thread:$0]  (!%p2366_p0), %s2360_s6, 1024, %s2355_s24, %s2370_s18, %s3056_s14, %s3056_s14, %s3055_s7  }
  0xb3   : > { %p3057_p5 = scmp.ne.s32.totalorder %s3043_s13, 0 }
  0xb4   : > { %s2404_s10 = sand.u32 (!%p3057_p5), 1, %s2056_s25   ;;  %p3058_p9 = scmp.ne.s32.totalorder (!%p3057_p5), %s3040_s11, 0 }
  0xb5   : > { %326 = sbr.rel (%p3057_p5) target bundleno = 1039 (0x40f), region = 40  ;;  %s1486_s3 = sshll.u32 (!%p3057_p5), %s2404_s10, 6 }
  0xb6   : > { %s329_s4 = scalar_lea.sflag (!%p3057_p5), [#allocation3], %s2404_s10  ;;  %s332_s16 = scalar_lea.vmem (!%p3057_p5), [#allocation2], %s1486_s3 }
  0xbc   : > { %2031 = dma.done.wait (%p3058_p9), %s329_s4, 1024  }
  0xbd   : > { %2033 = vsyncadd (%p3058_p9), %s329_s4, 4294966272  ;;  %p3059_p2 = scmp.eq.s32.totalorder %s2199_s9, 0 }
  0xbf   : > { %2035 = dma.done.wait (%p3059_p2), [#allocation6], 32   ;;  %p3060_p0 = pmov %p3059_p2 }
  0xc1   : > { %2037 = vsyncadd (%p3060_p0), [#allocation6], 4294967264  ;;  %p3061_p10 = pmov %p3060_p0 }
  0xc2   : > { %p3062_p1 = pmov %p3060_p0 }
  0xc3   : > { %2039 = dma.done.wait (%p3061_p10), [#allocation9], 1056  }
  0xc4   : > { %2041 = vsyncadd (%p3062_p1), [#allocation9], 4294966240  ;;  %vm404_vm0 = vcmask 523264   ;;  %v394_v0 = vld [vmem:[%s332_s16] sm:$0xff]  ;;  %v395_v2 = vld [vmem:[%s332_s16 + $0x8] sm:$0xff]  ;;  %s2489_s6 = sshll.u32 %s2404_s10, 7 }
  0xc5   : > { %v398_v1 = vld [vmem:[%s332_s16 + $0x20] sm:$0xff]  ;;  %v405_v3 = vsel %vm404_vm0, %v394_v0, 0.0  ;;  %v399_v5 = vld [vmem:[%s332_s16 + $0x28] sm:$0xff]  ;;  %v396_v6 = vld [vmem:[%s332_s16 + $0x10] sm:$0xff]  ;;  %v408_v8 = vsel %vm404_vm0, %v395_v2, 0.0  ;;  %vm727_vm1 = vcmask 125952  }
  0xc6   : > { %v417_v4 = vsel %vm404_vm0, %v398_v1, 0.0  ;;  %406 = vadd.xlane.f32.xlu0 %v405_v3  ;;  %v397_v7 = vld [vmem:[%s332_s16 + $0x18] sm:$0xff]  ;;  %v420_v9 = vsel %vm404_vm0, %v399_v5, 0.0  ;;  %v411_v10 = vsel %vm404_vm0, %v396_v6, 0.0  ;;  %v400_v12 = vld [vmem:[%s332_s16 + $0x30] sm:$0xff]  ;;  %s2090_s11 = smov 64  }
  0xc7   : > { %418 = vadd.xlane.f32.xlu1 %v417_v4  ;;  %v414_v11 = vsel %vm404_vm0, %v397_v7, 0.0  ;;  %v401_v13 = vld [vmem:[%s332_s16 + $0x38] sm:$0xff]  ;;  %v423_v14 = vsel %vm404_vm0, %v400_v12, 0.0  ;;  %v1828_v56 = vld [vmem:[#allocation8 + $0x4] ss:$8 sps:$4 sm:$0xff]   ;;  %s2507_s13 = scalar_lea.vmem [#allocation14], %s2489_s6 }
  0xc8   : > { %v426_v15 = vsel %vm404_vm0, %v401_v13, 0.0  ;;  %v1830_v57 = vld [vmem:[#allocation8] ss:$8 sps:$4 sm:$0xff]   ;;  %614 = vmatprep.subr.bf16.mxu0 %v1828_v56  ;;  %1642 = vmatprep.subr.bf16.mxu1 %v1828_v56  ;;  %v1831_v58 = vld [vmem:[#allocation8 + $0x14] ss:$8 sps:$4 sm:$0xff]   ;;  %s2516_s24 = scalar_lea.vmem [#allocation11], %s2489_s6 }
  0xc9   : > { %615 = vmatpush1.bf16.msra.mxu0 %v1830_v57  ;;  %1646 = vmatpush1.bf16.msra.mxu1 %v1830_v57  ;;  %v1833_v59 = vld [vmem:[#allocation8 + $0x10] ss:$8 sps:$4 sm:$0xff]   ;;  %v1834_v60 = vld [vmem:[#allocation8 + $0x24] ss:$8 sps:$4 sm:$0xff]   ;;  %v1836_v61 = vld [vmem:[#allocation8 + $0x20] ss:$8 sps:$4 sm:$0xff]  }
  0xca   : > { %409 = vadd.xlane.f32.xlu0 %v408_v8  ;;  %616 = vmatprep.subr.bf16.mxu0 %v1831_v58  ;;  %v1837_v62 = vld [vmem:[#allocation8 + $0x34] ss:$8 sps:$4 sm:$0xff]   ;;  %v1839_v63 = vld [vmem:[#allocation8 + $0x30] ss:$8 sps:$4 sm:$0xff]   ;;  %s2091_s1 = smov 48   ;;  %s2092_s18 = smov 32  }
  0xcb   : > { %421 = vadd.xlane.f32.xlu1 %v420_v9  ;;  %1643 = vmatprep.subr.bf16.mxu1 %v1831_v58  ;;  %s2093_s19 = smov 16   ;;  %s2094_s15 = smov 112  }
  0xcc   : > { %s2095_s21 = smov 96   ;;  %s2096_s22 = smov 80  }
  0xcd   : > { %617 = vmatpush1.bf16.msra.mxu0 %v1833_v59  ;;  %1647 = vmatpush1.bf16.msra.mxu1 %v1833_v59  ;;  %s2711_s17 = scalar_lea.vmem [#allocation12], %s2489_s6  ;;  %s1134_s20 = sand.u32 1, %s2199_s9  }
  0xce   : > { %412 = vadd.xlane.f32.xlu0 %v411_v10  ;;  %618 = vmatprep.subr.bf16.mxu0 %v1834_v60  ;;  %s1130_s7 = scalar_lea.sflag [#allocation4], %s2404_s10  ;;  %s2921_s14 = scalar_lea.sflag [#allocation13], %s1134_s20 }
  0xcf   : > { %415 = vadd.xlane.f32.xlu1 %v414_v11  ;;  %1644 = vmatprep.subr.bf16.mxu1 %v1834_v60 }
  0xd1   : > { %619 = vmatpush1.bf16.msra.mxu0 %v1836_v61  ;;  %1648 = vmatpush1.bf16.msra.mxu1 %v1836_v61 }
  0xd2   : > { %424 = vadd.xlane.f32.xlu0 %v423_v14  ;;  %620 = vmatprep.subr.bf16.mxu0 %v1837_v62 }
  0xd3   : > { %427 = vadd.xlane.f32.xlu1 %v426_v15  ;;  %1645 = vmatprep.subr.bf16.mxu1 %v1837_v62 }
  0xd5   : > { %621 = vmatpush1.bf16.msra.mxu0 %v1839_v63  ;;  %1649 = vmatpush1.bf16.msra.mxu1 %v1839_v63 }
 0x153   : > { %v407_v16 = vpop.xlane.xlu0 %406 }
 0x154   : > { %v419_v17 = vpop.xlane.xlu1 %418  ;;  %v430_v18 = vmul.f32 0.015625, %v407_v16 }
 0x155   : > { %v434_v19 = vmul.f32 0.015625, %v419_v17 }
 0x156   : > { %v2428_v20 = vsub.f32 %v394_v0, %v430_v18  ;;  %v2089_v0 = vmov 0  }
 0x157   : > { %v2430_v21 = vsub.f32 %v398_v1, %v434_v19  ;;  %v410_v22 = vpop.xlane.xlu0 %409  ;;  %646 = vmatprep.mubr.bf16.mxu0 %v2089_v0  ;;  %666 = vmatprep.mubr.bf16.mxu1 %v2089_v0 }
 0x158   : > { %v422_v23 = vpop.xlane.xlu1 %421  ;;  %v431_v24 = vmul.f32 0.015625, %v410_v22  ;;  %v446_v26 = vmul.f32 %v2428_v20, %v2428_v20 }
 0x159   : > { %v435_v25 = vmul.f32 0.015625, %v422_v23  ;;  %v450_v27 = vmul.f32 %v2430_v21, %v2430_v21 }
 0x15a   : > { %v2436_v28 = vsub.f32 %v395_v2, %v431_v24  ;;  %v454_v30 = vsel %vm404_vm0, %v446_v26, 0.0 }
 0x15b   : > { %v2438_v29 = vsub.f32 %v399_v5, %v435_v25  ;;  %455 = vadd.xlane.f32.xlu0 %v454_v30  ;;  %v413_v31 = vpop.xlane.xlu0 %412  ;;  %v466_v33 = vsel %vm404_vm0, %v450_v27, 0.0  ;;  %v1494_v30 = vld [vmem:[#allocation5] ss:$0 sm:$0xff] }
 0x15c   : > { %v416_v32 = vpop.xlane.xlu1 %415  ;;  %v432_v34 = vmul.f32 0.015625, %v413_v31  ;;  %v447_v36 = vmul.f32 %v2436_v28, %v2436_v28 }
 0x15d   : > { %v433_v35 = vmul.f32 0.015625, %v416_v32  ;;  %v451_v37 = vmul.f32 %v2438_v29, %v2438_v29 }
 0x15e   : > { %v2446_v38 = vsub.f32 %v396_v6, %v432_v34  ;;  %v457_v40 = vsel %vm404_vm0, %v447_v36, 0.0 }
 0x15f   : > { %v2448_v39 = vsub.f32 %v397_v7, %v433_v35  ;;  %467 = vadd.xlane.f32.xlu0 %v466_v33  ;;  %458 = vadd.xlane.f32.xlu1 %v457_v40  ;;  %v425_v41 = vpop.xlane.xlu0 %424  ;;  %v469_v43 = vsel %vm404_vm0, %v451_v37, 0.0  ;;  %v1495_v37 = vld [vmem:[#allocation7] ss:$0 sm:$0xff] }
 0x160   : > { %v428_v42 = vpop.xlane.xlu1 %427  ;;  %v436_v44 = vmul.f32 0.015625, %v425_v41  ;;  %v448_v46 = vmul.f32 %v2446_v38, %v2446_v38 }
 0x161   : > { %v437_v45 = vmul.f32 0.015625, %v428_v42  ;;  %v449_v47 = vmul.f32 %v2448_v39, %v2448_v39 }
 0x162   : > { %v2456_v48 = vsub.f32 %v400_v12, %v436_v44  ;;  %v460_v50 = vsel %vm404_vm0, %v448_v46, 0.0 }
 0x163   : > { %v2458_v49 = vsub.f32 %v401_v13, %v437_v45  ;;  %470 = vadd.xlane.f32.xlu1 %v469_v43  ;;  %461 = vadd.xlane.f32.xlu0 %v460_v50  ;;  %v463_v51 = vsel %vm404_vm0, %v449_v47, 0.0 }
 0x164   : > { %v452_v52 = vmul.f32 %v2456_v48, %v2456_v48 }
 0x165   : > { %v453_v53 = vmul.f32 %v2458_v49, %v2458_v49 }
 0x166   : > { %v472_v54 = vsel %vm404_vm0, %v452_v52, 0.0 }
 0x167   : > { %464 = vadd.xlane.f32.xlu1 %v463_v51  ;;  %473 = vadd.xlane.f32.xlu0 %v472_v54  ;;  %v475_v55 = vsel %vm404_vm0, %v453_v53, 0.0 }
 0x16b   : > { %476 = vadd.xlane.f32.xlu1 %v475_v55 }
 0x1e8   : > { %v456_v1 = vpop.xlane.xlu0 %455 }
 0x1e9   : > { %v478_v2 = vmul.f32 0.015625, %v456_v1  ;;  %v552_v1 = vlaneseq }
 0x1eb   : > { %v486_v3 = vadd.f32 1e-05, %v478_v2  ;;  %v553_v2 = vshrl.u32 %v552_v1, 7 }
 0x1ec   : > { %v459_v4 = vpop.xlane.xlu1 %458  ;;  %v468_v5 = vpop.xlane.xlu0 %467 }
 0x1ed   : > { %1840 = vrsqrt.f32 %v486_v3  ;;  %v479_v6 = vmul.f32 0.015625, %v459_v4  ;;  %v482_v7 = vmul.f32 0.015625, %v468_v5  ;;  %v550_v3 = vld [vmem:[#allocation10] sm:$0x3]  ;;  %v558_v4 = vsub.s32 1, %v553_v2 }
 0x1ef   : > { %v487_v8 = vadd.f32 1e-05, %v479_v6  ;;  %v490_v9 = vadd.f32 1e-05, %v482_v7  ;;  %v2486_v6 = vrot.slane %v550_v3, %v558_v4 }
 0x1f0   : > { %v471_v10 = vpop.xlane.xlu1 %470  ;;  %v462_v11 = vpop.xlane.xlu0 %461 }
 0x1f1   : > { %1842 = vrsqrt.f32 %v487_v8  ;;  %v483_v12 = vmul.f32 0.015625, %v471_v10  ;;  %v480_v13 = vmul.f32 0.015625, %v462_v11 }
 0x1f2   : > { %1844 = vrsqrt.f32 %v490_v9 }
 0x1f3   : > { %v491_v14 = vadd.f32 1e-05, %v483_v12  ;;  %v488_v15 = vadd.f32 1e-05, %v480_v13 }
 0x1f4   : > { %v465_v16 = vpop.xlane.xlu1 %464  ;;  %v474_v17 = vpop.xlane.xlu0 %473 }
 0x1f5   : > { %1846 = vrsqrt.f32 %v491_v14  ;;  %v481_v18 = vmul.f32 0.015625, %v465_v16  ;;  %v484_v19 = vmul.f32 0.015625, %v474_v17 }
 0x1f6   : > { %1848 = vrsqrt.f32 %v488_v15 }
 0x1f7   : > { %v1841_v22 = vpop.eup %1840  ;;  %v489_v23 = vadd.f32 1e-05, %v481_v18  ;;  %v492_v24 = vadd.f32 1e-05, %v484_v19 }
 0x1f8   : > { %v502_v25 = vmul.f32 %v1841_v22, %v2428_v20  ;;  %v477_v26 = vpop.xlane.xlu1 %476 }
 0x1f9   : > { %1850 = vrsqrt.f32 %v489_v23  ;;  %v485_v27 = vmul.f32 0.015625, %v477_v26 }
 0x1fa   : > { %1852 = vrsqrt.f32 %v492_v24  ;;  %v516_v35 = vmul.f32 %v1494_v30, %v502_v25 }
 0x1fb   : > { %v1843_v31 = vpop.eup %1842  ;;  %v493_v32 = vadd.f32 1e-05, %v485_v27 }
 0x1fc   : > { %v1845_v33 = vpop.eup %1844  ;;  %v503_v34 = vmul.f32 %v1843_v31, %v2436_v28  ;;  %v530_v43 = vadd.f32 %v1495_v37, %v516_v35 }
 0x1fd   : > { %v506_v36 = vmul.f32 %v1845_v33, %v2430_v21  ;;  %1854 = vrsqrt.f32 %v493_v32 }
 0x1fe   : > { %v517_v40 = vmul.f32 %v1494_v30, %v503_v34 }
 0x1ff   : > { %v1847_v41 = vpop.eup %1846  ;;  %v520_v45 = vmul.f32 %v1494_v30, %v506_v36 }
 0x200   : > { %v1849_v42 = vpop.eup %1848  ;;  %v507_v20 = vmul.f32 %v1847_v41, %v2438_v29  ;;  %v531_v44 = vadd.f32 %v1495_v37, %v517_v40 }
 0x201   : > { %v504_v46 = vmul.f32 %v1849_v42, %v2446_v38  ;;  %v534_v21 = vadd.f32 %v1495_v37, %v520_v45 }
 0x202   : > { %v538_v47 = vpack.c.bf16 %v531_v44, %v530_v43  ;;  %v521_v50 = vmul.f32 %v1494_v30, %v507_v20 }
 0x203   : > { %v1851_v51 = vpop.eup %1850  ;;  %v518_v54 = vmul.f32 %v1494_v30, %v504_v46 }
 0x204   : > { %v1853_v52 = vpop.eup %1852  ;;  %v505_v28 = vmul.f32 %v1851_v51, %v2448_v39  ;;  %1504 = vmatmul.mubr.msk.bf16.vlgmr.msra.gmra.mrb[0].mxu0 %vm404_vm0, %v538_v47  ;;  %v535_v53 = vadd.f32 %v1495_v37, %v521_v50 }
 0x205   : > { %v508_v55 = vmul.f32 %v1853_v52, %v2456_v48  ;;  %656 = vmatprep.mubr.bf16.mxu0 %v2089_v0  ;;  %v532_v58 = vadd.f32 %v1495_v37, %v518_v54 }
 0x206   : > { %v540_v29 = vpack.c.bf16 %v535_v53, %v534_v21  ;;  %v519_v56 = vmul.f32 %v1494_v30, %v505_v28 }
 0x207   : > { %v1855_v57 = vpop.eup %1854  ;;  %v522_v60 = vmul.f32 %v1494_v30, %v508_v55 }
 0x208   : > { %v509_v38 = vmul.f32 %v1855_v57, %v2458_v49  ;;  %1506 = vmatmul.mubr.msk.bf16.vlgmr.msra.gmra.mrb[0].mxu1 %vm404_vm0, %v540_v29  ;;  %v533_v59 = vadd.f32 %v1495_v37, %v519_v56  ;;  %v554_v49 = vsub.s32 0, %v553_v2 }
 0x209   : > { %676 = vmatprep.mubr.bf16.mxu1 %v2089_v0  ;;  %v536_v48 = vadd.f32 %v1495_v37, %v522_v60 }
 0x20a   : > { %v539_v39 = vpack.c.bf16 %v533_v59, %v532_v58  ;;  %v523_v61 = vmul.f32 %v1494_v30, %v509_v38  ;;  %v2484_v5 = vrot.slane %v550_v3, %v554_v49 }
 0x20c   : > { %1505 = vmatmul.mubr.msk.bf16.gmra.mrb[4].mxu0 %vm404_vm0, %v539_v39  ;;  %v537_v62 = vadd.f32 %v1495_v37, %v523_v61 }
 0x20e   : > { %v541_v63 = vpack.c.bf16 %v537_v62, %v536_v48 }
 0x210   : > { %1507 = vmatmul.mubr.msk.bf16.gmra.mrb[4].mxu1 %vm404_vm0, %v541_v63 }
 0x2d7   : > { %v648_v0 = vpop.f32.mrb[0].mxu0 }
 0x2d8   : > { %v649_v7 = vadd.f32 %v648_v0, %v2484_v5  ;;  %v650_v8 = vpop.f32.mrb[1].mxu0 }
 0x2d9   : > { %v651_v9 = vadd.f32 %v650_v8, %v2486_v6  ;;  %v652_v10 = vpop.f32.mrb[2].mxu0 }
 0x2da   : > { %v687_v11 = vmul.f32 0.25, %v649_v7  ;;  %v2493_v12 = vpack.c.bf16 %v649_v7, %v649_v7  ;;  %v653_v13 = vadd.f32 %v652_v10, %v2484_v5  ;;  %v654_v14 = vpop.f32.mrb[3].mxu0 }
 0x2db   : > { %v2496_v15 = vpack.c.bf16 %v651_v9, %v651_v9  ;;  %v655_v16 = vadd.f32 %v654_v14, %v2486_v6  ;;  %v668_v17 = vpop.f32.mrb[0].mxu1 }
 0x2dc   : > { %v2499_v18 = vpack.c.bf16 %v687_v11, %v687_v11  ;;  %v688_v19 = vmul.f32 0.25, %v653_v13  ;;  %v2501_v22 = vpack.c.bf16 %v653_v13, %v653_v13  ;;  %v669_v23 = vadd.f32 %v668_v17, %v2484_v5  ;;  %760 = vrot.lane.b32.xlu0 %v2493_v12, %s2090_s11  ;;  %v670_v24 = vpop.f32.mrb[1].mxu1 }
 0x2dd   : > { %824 = vst.msk [vmem:[%s2507_s13] sm:$0xf] %vm727_vm1, %v2496_v15  ;;  %v2512_v25 = vpack.c.bf16 %v655_v16, %v655_v16  ;;  %v671_v26 = vadd.f32 %v670_v24, %v2486_v6  ;;  %v672_v27 = vpop.f32.mrb[2].mxu1 }
 0x2de   : > { %728 = vst.msk [vmem:[%s2516_s24] sm:$0xf] %vm727_vm1, %v2499_v18  ;;  %v2521_v30 = vpack.c.bf16 %v688_v19, %v688_v19  ;;  %v691_v31 = vmul.f32 0.25, %v669_v23  ;;  %v2523_v32 = vpack.c.bf16 %v669_v23, %v669_v23  ;;  %v673_v33 = vadd.f32 %v672_v27, %v2484_v5  ;;  %762 = vrot.lane.b32.xlu1 %v2501_v22, %s2090_s11  ;;  %v674_v34 = vpop.f32.mrb[3].mxu1 }
 0x2df   : > { %825 = vst.msk [vmem:[%s2507_s13 + $0x4] sm:$0xf] %vm727_vm1, %v2512_v25  ;;  %v2531_v35 = vpack.c.bf16 %v671_v26, %v671_v26  ;;  %v675_v36 = vadd.f32 %v674_v34, %v2486_v6  ;;  %v658_v37 = vpop.f32.mrb[4].mxu0 }
 0x2e0   : > { %729 = vst.msk [vmem:[%s2516_s24 + $0x4] sm:$0xf] %vm727_vm1, %v2521_v30  ;;  %v2537_v40 = vpack.c.bf16 %v691_v31, %v691_v31  ;;  %v692_v41 = vmul.f32 0.25, %v673_v33  ;;  %v1631_v42 = vpack.c.bf16 %v673_v33, %v673_v33  ;;  %v2540_v20 = vadd.f32 %v658_v37, %v2484_v5  ;;  %768 = vrot.lane.b32.xlu0 %v2523_v32, %s2090_s11  ;;  %v660_v43 = vpop.f32.mrb[5].mxu0 }
 0x2e1   : > { %828 = vst.msk [vmem:[%s2507_s13 + $0x10] sm:$0xf] %vm727_vm1, %v2531_v35  ;;  %v2547_v44 = vpack.c.bf16 %v675_v36, %v675_v36  ;;  %v661_v45 = vadd.f32 %v660_v43, %v2486_v6  ;;  %v662_v46 = vpop.f32.mrb[6].mxu0 }
 0x2e2   : > { %732 = vst.msk [vmem:[%s2516_s24 + $0x10] sm:$0xf] %vm727_vm1, %v2537_v40  ;;  %v2553_v47 = vpack.c.bf16 %v692_v41, %v692_v41  ;;  %v689_v50 = vmul.f32 0.25, %v2540_v20  ;;  %v2557_v51 = vadd.f32 %v662_v46, %v2484_v5  ;;  %770 = vrot.lane.b32.xlu1 %v1631_v42, %s2090_s11  ;;  %v664_v52 = vpop.f32.mrb[7].mxu0  ;;  %v1628_v4 = vpack.c.bf16 %v2540_v20, %v2540_v20 }
 0x2e3   : > { %829 = vst.msk [vmem:[%s2507_s13 + $0x14] sm:$0xf] %vm727_vm1, %v2547_v44  ;;  %v2563_v28 = vpack.c.bf16 %v661_v45, %v661_v45  ;;  %v665_v21 = vadd.f32 %v664_v52, %v2486_v6  ;;  %v678_v53 = vpop.f32.mrb[4].mxu1 }
 0x2e4   : > { %733 = vst.msk [vmem:[%s2516_s24 + $0x14] sm:$0xf] %vm727_vm1, %v2553_v47  ;;  %v2569_v54 = vpack.c.bf16 %v689_v50, %v689_v50  ;;  %v690_v55 = vmul.f32 0.25, %v2557_v51  ;;  %v2573_v29 = vadd.f32 %v678_v53, %v2484_v5  ;;  %865 = vrot.lane.b32.xlu0 %v2493_v12, %s2091_s1  ;;  %v680_v56 = vpop.f32.mrb[5].mxu1 }
 0x2e5   : > { %826 = vst.msk [vmem:[%s2507_s13 + $0x8] sm:$0xf] %vm727_vm1, %v2563_v28  ;;  %v2580_v57 = vpack.c.bf16 %v665_v21, %v665_v21  ;;  %v681_v38 = vadd.f32 %v680_v56, %v2486_v6  ;;  %v682_v58 = vpop.f32.mrb[6].mxu1 }
 0x2e6   : > { %730 = vst.msk [vmem:[%s2516_s24 + $0x8] sm:$0xf] %vm727_vm1, %v2569_v54  ;;  %v2586_v59 = vpack.c.bf16 %v690_v55, %v690_v55  ;;  %v693_v60 = vmul.f32 0.25, %v2573_v29  ;;  %v683_v39 = vadd.f32 %v682_v58, %v2484_v5  ;;  %867 = vrot.lane.b32.xlu1 %v2501_v22, %s2091_s1  ;;  %v684_v61 = vpop.f32.mrb[7].mxu1  ;;  %v1632_v3 = vpack.c.bf16 %v2573_v29, %v2573_v29 }
 0x2e7   : > { %827 = vst.msk [vmem:[%s2507_s13 + $0xc] sm:$0xf] %vm727_vm1, %v2580_v57  ;;  %v2595_v48 = vpack.c.bf16 %v681_v38, %v681_v38  ;;  %v685_v62 = vadd.f32 %v684_v61, %v2486_v6  ;;  %v1629_v5 = vpack.c.bf16 %v2557_v51, %v2557_v51 }
 0x2e8   : > { %731 = vst.msk [vmem:[%s2516_s24 + $0xc] sm:$0xf] %vm727_vm1, %v2586_v59  ;;  %v2601_v63 = vpack.c.bf16 %v693_v60, %v693_v60  ;;  %v694_v1 = vmul.f32 0.25, %v683_v39  ;;  %873 = vrot.lane.b32.xlu0 %v2523_v32, %s2091_s1  ;;  %v1633_v6 = vpack.c.bf16 %v683_v39, %v683_v39 }
 0x2e9   : > { %830 = vst.msk [vmem:[%s2507_s13 + $0x18] sm:$0xf] %vm727_vm1, %v2595_v48  ;;  %v2608_v2 = vpack.c.bf16 %v685_v62, %v685_v62 }
 0x2ea   : > { %734 = vst.msk [vmem:[%s2516_s24 + $0x18] sm:$0xf] %vm727_vm1, %v2601_v63  ;;  %v2613_v49 = vpack.c.bf16 %v694_v1, %v694_v1  ;;  %875 = vrot.lane.b32.xlu1 %v1631_v42, %s2091_s1 }
 0x2eb   : > { %831 = vst.msk [vmem:[%s2507_s13 + $0x1c] sm:$0xf] %vm727_vm1, %v2608_v2 }
 0x2ec   : > { %735 = vst.msk [vmem:[%s2516_s24 + $0x1c] sm:$0xf] %vm727_vm1, %v2613_v49  ;;  %964 = vrot.lane.b32.xlu0 %v2493_v12, %s2092_s18 }
 0x2ee   : > { %966 = vrot.lane.b32.xlu1 %v2501_v22, %s2092_s18 }
 0x2f0   : > { %972 = vrot.lane.b32.xlu0 %v2523_v32, %s2092_s18 }
 0x2f2   : > { %974 = vrot.lane.b32.xlu1 %v1631_v42, %s2092_s18 }
 0x2f4   : > { %1063 = vrot.lane.b32.xlu0 %v2493_v12, %s2093_s19 }
 0x2f6   : > { %1065 = vrot.lane.b32.xlu1 %v2501_v22, %s2093_s19 }
 0x2f8   : > { %1071 = vrot.lane.b32.xlu0 %v2523_v32, %s2093_s19 }
 0x2fa   : > { %1073 = vrot.lane.b32.xlu1 %v1631_v42, %s2093_s19 }
 0x2fc   : > { %898 = vrot.lane.b32.xlu0 %v2496_v15, %s2094_s15 }
 0x2fe   : > { %900 = vrot.lane.b32.xlu1 %v2512_v25, %s2094_s15 }
 0x300   : > { %906 = vrot.lane.b32.xlu0 %v2531_v35, %s2094_s15 }
 0x302   : > { %908 = vrot.lane.b32.xlu1 %v2547_v44, %s2094_s15 }
 0x304   : > { %997 = vrot.lane.b32.xlu0 %v2496_v15, %s2095_s21 }
 0x306   : > { %999 = vrot.lane.b32.xlu1 %v2512_v25, %s2095_s21 }
 0x308   : > { %1005 = vrot.lane.b32.xlu0 %v2531_v35, %s2095_s21 }
 0x30a   : > { %1007 = vrot.lane.b32.xlu1 %v2547_v44, %s2095_s21 }
 0x30c   : > { %1096 = vrot.lane.b32.xlu0 %v2496_v15, %s2096_s22 }
 0x30e   : > { %1098 = vrot.lane.b32.xlu1 %v2512_v25, %s2096_s22 }
 0x310   : > { %1104 = vrot.lane.b32.xlu0 %v2531_v35, %s2096_s22 }
 0x312   : > { %1106 = vrot.lane.b32.xlu1 %v2547_v44, %s2096_s22 }
 0x314   : > { %832 = vrot.lane.b32.xlu0 %v2499_v18, %s2094_s15 }
 0x316   : > { %834 = vrot.lane.b32.xlu1 %v2521_v30, %s2094_s15 }
 0x318   : > { %840 = vrot.lane.b32.xlu0 %v2537_v40, %s2094_s15 }
 0x31a   : > { %842 = vrot.lane.b32.xlu1 %v2553_v47, %s2094_s15 }
 0x31c   : > { %931 = vrot.lane.b32.xlu0 %v2499_v18, %s2095_s21 }
 0x31e   : > { %933 = vrot.lane.b32.xlu1 %v2521_v30, %s2095_s21 }
 0x320   : > { %939 = vrot.lane.b32.xlu0 %v2537_v40, %s2095_s21 }
 0x322   : > { %941 = vrot.lane.b32.xlu1 %v2553_v47, %s2095_s21 }
 0x324   : > { %1030 = vrot.lane.b32.xlu0 %v2499_v18, %s2096_s22 }
 0x326   : > { %1032 = vrot.lane.b32.xlu1 %v2521_v30, %s2096_s22 }
 0x328   : > { %1038 = vrot.lane.b32.xlu0 %v2537_v40, %s2096_s22 }
 0x32a   : > { %1040 = vrot.lane.b32.xlu1 %v2553_v47, %s2096_s22 }
 0x32c   : > { %772 = vrot.lane.b32.xlu0 %v1632_v3, %s2090_s11 }
 0x32e   : > { %764 = vrot.lane.b32.xlu1 %v1628_v4, %s2090_s11 }
 0x330   : > { %869 = vrot.lane.b32.xlu0 %v1628_v4, %s2091_s1 }
 0x332   : > { %766 = vrot.lane.b32.xlu1 %v1629_v5, %s2090_s11 }
 0x334   : > { %877 = vrot.lane.b32.xlu0 %v1632_v3, %s2091_s1 }
 0x336   : > { %774 = vrot.lane.b32.xlu1 %v1633_v6, %s2090_s11 }
 0x338   : > { %968 = vrot.lane.b32.xlu0 %v1628_v4, %s2092_s18 }
 0x33a   : > { %871 = vrot.lane.b32.xlu1 %v1629_v5, %s2091_s1 }
 0x33c   : > { %976 = vrot.lane.b32.xlu0 %v1632_v3, %s2092_s18 }
 0x33e   : > { %879 = vrot.lane.b32.xlu1 %v1633_v6, %s2091_s1 }
 0x340   : > { %1067 = vrot.lane.b32.xlu0 %v1628_v4, %s2093_s19 }
 0x342   : > { %970 = vrot.lane.b32.xlu1 %v1629_v5, %s2092_s18 }
 0x344   : > { %1075 = vrot.lane.b32.xlu0 %v1632_v3, %s2093_s19 }
 0x346   : > { %978 = vrot.lane.b32.xlu1 %v1633_v6, %s2092_s18 }
 0x348   : > { %902 = vrot.lane.b32.xlu0 %v2563_v28, %s2094_s15 }
 0x34a   : > { %1069 = vrot.lane.b32.xlu1 %v1629_v5, %s2093_s19 }
 0x34c   : > { %910 = vrot.lane.b32.xlu0 %v2595_v48, %s2094_s15 }
 0x34e   : > { %1077 = vrot.lane.b32.xlu1 %v1633_v6, %s2093_s19  ;;  %v761_v0 = vpop.permute.xlu0 %760 }
 0x34f   : > { %784 = vst.msk [vmem:[%s2711_s17] sm:$0xf] %vm727_vm1, %v761_v0 }
 0x350   : > { %v763_v7 = vpop.permute.xlu1 %762  ;;  %1001 = vrot.lane.b32.xlu0 %v2563_v28, %s2095_s21 }
 0x351   : > { %785 = vst.msk [vmem:[%s2711_s17 + $0x4] sm:$0xf] %vm727_vm1, %v763_v7 }
 0x352   : > { %904 = vrot.lane.b32.xlu1 %v2580_v57, %s2094_s15  ;;  %v769_v8 = vpop.permute.xlu0 %768 }
 0x353   : > { %788 = vst.msk [vmem:[%s2711_s17 + $0x10] sm:$0xf] %vm727_vm1, %v769_v8 }
 0x354   : > { %v771_v9 = vpop.permute.xlu1 %770  ;;  %1009 = vrot.lane.b32.xlu0 %v2595_v48, %s2095_s21 }
 0x355   : > { %789 = vst.msk [vmem:[%s2711_s17 + $0x14] sm:$0xf] %vm727_vm1, %v771_v9 }
 0x356   : > { %912 = vrot.lane.b32.xlu1 %v2608_v2, %s2094_s15  ;;  %v866_v10 = vpop.permute.xlu0 %865 }
 0x357   : > { %1540 = vst.msk [vmem:[%s2711_s17 + $0x20] sm:$0xf] %vm727_vm1, %v866_v10 }
 0x358   : > { %v868_v11 = vpop.permute.xlu1 %867  ;;  %1100 = vrot.lane.b32.xlu0 %v2563_v28, %s2096_s22 }
 0x359   : > { %1541 = vst.msk [vmem:[%s2711_s17 + $0x24] sm:$0xf] %vm727_vm1, %v868_v11 }
 0x35a   : > { %1003 = vrot.lane.b32.xlu1 %v2580_v57, %s2095_s21  ;;  %v874_v12 = vpop.permute.xlu0 %873 }
 0x35b   : > { %1544 = vst.msk [vmem:[%s2711_s17 + $0x30] sm:$0xf] %vm727_vm1, %v874_v12 }
 0x35c   : > { %v876_v13 = vpop.permute.xlu1 %875  ;;  %836 = vrot.lane.b32.xlu0 %v2569_v54, %s2094_s15 }
 0x35d   : > { %1545 = vst.msk [vmem:[%s2711_s17 + $0x34] sm:$0xf] %vm727_vm1, %v876_v13 }
 0x35e   : > { %1011 = vrot.lane.b32.xlu1 %v2608_v2, %s2095_s21  ;;  %v965_v14 = vpop.permute.xlu0 %964 }
 0x35f   : > { %1564 = vst.msk [vmem:[%s2711_s17 + $0x40] sm:$0xf] %vm727_vm1, %v965_v14 }
 0x360   : > { %v967_v15 = vpop.permute.xlu1 %966  ;;  %844 = vrot.lane.b32.xlu0 %v2601_v63, %s2094_s15 }
 0x361   : > { %1565 = vst.msk [vmem:[%s2711_s17 + $0x44] sm:$0xf] %vm727_vm1, %v967_v15 }
 0x362   : > { %1102 = vrot.lane.b32.xlu1 %v2580_v57, %s2096_s22  ;;  %v973_v16 = vpop.permute.xlu0 %972 }
 0x363   : > { %1568 = vst.msk [vmem:[%s2711_s17 + $0x50] sm:$0xf] %vm727_vm1, %v973_v16 }
 0x364   : > { %v975_v17 = vpop.permute.xlu1 %974  ;;  %935 = vrot.lane.b32.xlu0 %v2569_v54, %s2095_s21 }
 0x365   : > { %1569 = vst.msk [vmem:[%s2711_s17 + $0x54] sm:$0xf] %vm727_vm1, %v975_v17 }
 0x366   : > { %838 = vrot.lane.b32.xlu1 %v2586_v59, %s2094_s15  ;;  %v1064_v18 = vpop.permute.xlu0 %1063 }
 0x367   : > { %1588 = vst.msk [vmem:[%s2711_s17 + $0x60] sm:$0xf] %vm727_vm1, %v1064_v18 }
 0x368   : > { %v1066_v19 = vpop.permute.xlu1 %1065  ;;  %943 = vrot.lane.b32.xlu0 %v2601_v63, %s2095_s21 }
 0x369   : > { %1589 = vst.msk [vmem:[%s2711_s17 + $0x64] sm:$0xf] %vm727_vm1, %v1066_v19 }
 0x36a   : > { %846 = vrot.lane.b32.xlu1 %v2613_v49, %s2094_s15  ;;  %v1072_v22 = vpop.permute.xlu0 %1071 }
 0x36b   : > { %1592 = vst.msk [vmem:[%s2711_s17 + $0x70] sm:$0xf] %vm727_vm1, %v1072_v22 }
 0x36c   : > { %v1074_v23 = vpop.permute.xlu1 %1073  ;;  %1034 = vrot.lane.b32.xlu0 %v2569_v54, %s2096_s22 }
 0x36d   : > { %1593 = vst.msk [vmem:[%s2711_s17 + $0x74] sm:$0xf] %vm727_vm1, %v1074_v23 }
 0x36e   : > { %937 = vrot.lane.b32.xlu1 %v2586_v59, %s2095_s21  ;;  %v899_v24 = vpop.permute.xlu0 %898 }
 0x36f   : > { %1548 = vst.msk [vmem:[%s2507_s13 + $0x20] sm:$0xf] %vm727_vm1, %v899_v24 }
 0x370   : > { %v901_v25 = vpop.permute.xlu1 %900  ;;  %1042 = vrot.lane.b32.xlu0 %v2601_v63, %s2096_s22 }
 0x371   : > { %1549 = vst.msk [vmem:[%s2507_s13 + $0x24] sm:$0xf] %vm727_vm1, %v901_v25 }
 0x372   : > { %945 = vrot.lane.b32.xlu1 %v2613_v49, %s2095_s21  ;;  %v907_v26 = vpop.permute.xlu0 %906 }
 0x373   : > { %1552 = vst.msk [vmem:[%s2507_s13 + $0x30] sm:$0xf] %vm727_vm1, %v907_v26 }
 0x374   : > { %v909_v27 = vpop.permute.xlu1 %908  ;;  %1108 = vrot.lane.b32.xlu0 %v2595_v48, %s2096_s22 }
 0x375   : > { %1553 = vst.msk [vmem:[%s2507_s13 + $0x34] sm:$0xf] %vm727_vm1, %v909_v27 }
 0x376   : > { %1036 = vrot.lane.b32.xlu1 %v2586_v59, %s2096_s22  ;;  %v998_v30 = vpop.permute.xlu0 %997 }
 0x377   : > { %1572 = vst.msk [vmem:[%s2507_s13 + $0x40] sm:$0xf] %vm727_vm1, %v998_v30 }
 0x378   : > { %v1000_v31 = vpop.permute.xlu1 %999 }
 0x379   : > { %1573 = vst.msk [vmem:[%s2507_s13 + $0x44] sm:$0xf] %vm727_vm1, %v1000_v31 }
 0x37a   : > { %1044 = vrot.lane.b32.xlu1 %v2613_v49, %s2096_s22  ;;  %v1006_v32 = vpop.permute.xlu0 %1005 }
 0x37b   : > { %1576 = vst.msk [vmem:[%s2507_s13 + $0x50] sm:$0xf] %vm727_vm1, %v1006_v32 }
 0x37c   : > { %v1008_v33 = vpop.permute.xlu1 %1007 }
 0x37d   : > { %1577 = vst.msk [vmem:[%s2507_s13 + $0x54] sm:$0xf] %vm727_vm1, %v1008_v33 }
 0x37e   : > { %1110 = vrot.lane.b32.xlu1 %v2608_v2, %s2096_s22  ;;  %v1097_v34 = vpop.permute.xlu0 %1096 }
 0x37f   : > { %1596 = vst.msk [vmem:[%s2507_s13 + $0x60] sm:$0xf] %vm727_vm1, %v1097_v34 }
 0x380   : > { %v1099_v35 = vpop.permute.xlu1 %1098 }
 0x381   : > { %1597 = vst.msk [vmem:[%s2507_s13 + $0x64] sm:$0xf] %vm727_vm1, %v1099_v35 }
 0x382   : > { %v1105_v36 = vpop.permute.xlu0 %1104 }
 0x383   : > { %1600 = vst.msk [vmem:[%s2507_s13 + $0x70] sm:$0xf] %vm727_vm1, %v1105_v36 }
 0x384   : > { %v1107_v37 = vpop.permute.xlu1 %1106 }
 0x385   : > { %1601 = vst.msk [vmem:[%s2507_s13 + $0x74] sm:$0xf] %vm727_vm1, %v1107_v37 }
 0x386   : > { %v833_v40 = vpop.permute.xlu0 %832 }
 0x387   : > { %1532 = vst.msk [vmem:[%s2516_s24 + $0x20] sm:$0xf] %vm727_vm1, %v833_v40 }
 0x388   : > { %v835_v41 = vpop.permute.xlu1 %834 }
 0x389   : > { %1533 = vst.msk [vmem:[%s2516_s24 + $0x24] sm:$0xf] %vm727_vm1, %v835_v41 }
 0x38a   : > { %v841_v42 = vpop.permute.xlu0 %840 }
 0x38b   : > { %1536 = vst.msk [vmem:[%s2516_s24 + $0x30] sm:$0xf] %vm727_vm1, %v841_v42 }
 0x38c   : > { %v843_v20 = vpop.permute.xlu1 %842 }
 0x38d   : > { %1537 = vst.msk [vmem:[%s2516_s24 + $0x34] sm:$0xf] %vm727_vm1, %v843_v20 }
 0x38e   : > { %v932_v43 = vpop.permute.xlu0 %931 }
 0x38f   : > { %1556 = vst.msk [vmem:[%s2516_s24 + $0x40] sm:$0xf] %vm727_vm1, %v932_v43 }
 0x390   : > { %v934_v44 = vpop.permute.xlu1 %933 }
 0x391   : > { %1557 = vst.msk [vmem:[%s2516_s24 + $0x44] sm:$0xf] %vm727_vm1, %v934_v44 }
 0x392   : > { %v940_v45 = vpop.permute.xlu0 %939 }
 0x393   : > { %1560 = vst.msk [vmem:[%s2516_s24 + $0x50] sm:$0xf] %vm727_vm1, %v940_v45 }
 0x394   : > { %v942_v46 = vpop.permute.xlu1 %941 }
 0x395   : > { %1561 = vst.msk [vmem:[%s2516_s24 + $0x54] sm:$0xf] %vm727_vm1, %v942_v46 }
 0x396   : > { %v1031_v47 = vpop.permute.xlu0 %1030 }
 0x397   : > { %1580 = vst.msk [vmem:[%s2516_s24 + $0x60] sm:$0xf] %vm727_vm1, %v1031_v47 }
 0x398   : > { %v1033_v50 = vpop.permute.xlu1 %1032 }
 0x399   : > { %1581 = vst.msk [vmem:[%s2516_s24 + $0x64] sm:$0xf] %vm727_vm1, %v1033_v50 }
 0x39a   : > { %v1039_v51 = vpop.permute.xlu0 %1038 }
 0x39b   : > { %1584 = vst.msk [vmem:[%s2516_s24 + $0x70] sm:$0xf] %vm727_vm1, %v1039_v51 }
 0x39c   : > { %v1041_v52 = vpop.permute.xlu1 %1040 }
 0x39d   : > { %1585 = vst.msk [vmem:[%s2516_s24 + $0x74] sm:$0xf] %vm727_vm1, %v1041_v52 }
 0x39e   : > { %v773_v28 = vpop.permute.xlu0 %772 }
 0x39f   : > { %790 = vst.msk [vmem:[%s2711_s17 + $0x18] sm:$0xf] %vm727_vm1, %v773_v28 }
 0x3a0   : > { %v765_v21 = vpop.permute.xlu1 %764 }
 0x3a1   : > { %786 = vst.msk [vmem:[%s2711_s17 + $0x8] sm:$0xf] %vm727_vm1, %v765_v21 }
 0x3a2   : > { %v870_v53 = vpop.permute.xlu0 %869 }
 0x3a3   : > { %1542 = vst.msk [vmem:[%s2711_s17 + $0x28] sm:$0xf] %vm727_vm1, %v870_v53 }
 0x3a4   : > { %v767_v54 = vpop.permute.xlu1 %766 }
 0x3a5   : > { %787 = vst.msk [vmem:[%s2711_s17 + $0xc] sm:$0xf] %vm727_vm1, %v767_v54 }
 0x3a6   : > { %v878_v55 = vpop.permute.xlu0 %877 }
 0x3a7   : > { %1546 = vst.msk [vmem:[%s2711_s17 + $0x38] sm:$0xf] %vm727_vm1, %v878_v55 }
 0x3a8   : > { %v775_v29 = vpop.permute.xlu1 %774 }
 0x3a9   : > { %791 = vst.msk [vmem:[%s2711_s17 + $0x1c] sm:$0xf] %vm727_vm1, %v775_v29 }
 0x3aa   : > { %v969_v56 = vpop.permute.xlu0 %968 }
 0x3ab   : > { %1566 = vst.msk [vmem:[%s2711_s17 + $0x48] sm:$0xf] %vm727_vm1, %v969_v56 }
 0x3ac   : > { %v872_v57 = vpop.permute.xlu1 %871 }
 0x3ad   : > { %1543 = vst.msk [vmem:[%s2711_s17 + $0x2c] sm:$0xf] %vm727_vm1, %v872_v57 }
 0x3ae   : > { %v977_v38 = vpop.permute.xlu0 %976 }
 0x3af   : > { %1570 = vst.msk [vmem:[%s2711_s17 + $0x58] sm:$0xf] %vm727_vm1, %v977_v38 }
 0x3b0   : > { %v880_v58 = vpop.permute.xlu1 %879 }
 0x3b1   : > { %1547 = vst.msk [vmem:[%s2711_s17 + $0x3c] sm:$0xf] %vm727_vm1, %v880_v58 }
 0x3b2   : > { %v1068_v59 = vpop.permute.xlu0 %1067 }
 0x3b3   : > { %1590 = vst.msk [vmem:[%s2711_s17 + $0x68] sm:$0xf] %vm727_vm1, %v1068_v59 }
 0x3b4   : > { %v971_v60 = vpop.permute.xlu1 %970 }
 0x3b5   : > { %1567 = vst.msk [vmem:[%s2711_s17 + $0x4c] sm:$0xf] %vm727_vm1, %v971_v60 }
 0x3b6   : > { %v1076_v39 = vpop.permute.xlu0 %1075 }
 0x3b7   : > { %1594 = vst.msk [vmem:[%s2711_s17 + $0x78] sm:$0xf] %vm727_vm1, %v1076_v39 }
 0x3b8   : > { %v979_v61 = vpop.permute.xlu1 %978 }
 0x3b9   : > { %1571 = vst.msk [vmem:[%s2711_s17 + $0x5c] sm:$0xf] %vm727_vm1, %v979_v61 }
 0x3ba   : > { %v903_v48 = vpop.permute.xlu0 %902 }
 0x3bb   : > { %1550 = vst.msk [vmem:[%s2507_s13 + $0x28] sm:$0xf] %vm727_vm1, %v903_v48 }
 0x3bc   : > { %v1070_v62 = vpop.permute.xlu1 %1069 }
 0x3bd   : > { %1591 = vst.msk [vmem:[%s2711_s17 + $0x6c] sm:$0xf] %vm727_vm1, %v1070_v62 }
 0x3be   : > { %v911_v63 = vpop.permute.xlu0 %910 }
 0x3bf   : > { %1554 = vst.msk [vmem:[%s2507_s13 + $0x38] sm:$0xf] %vm727_vm1, %v911_v63 }
 0x3c0   : > { %v1078_v1 = vpop.permute.xlu1 %1077 }
 0x3c1   : > { %1595 = vst.msk [vmem:[%s2711_s17 + $0x7c] sm:$0xf] %vm727_vm1, %v1078_v1 }
 0x3c2   : > { %v1002_v2 = vpop.permute.xlu0 %1001 }
 0x3c3   : > { %1574 = vst.msk [vmem:[%s2507_s13 + $0x48] sm:$0xf] %vm727_vm1, %v1002_v2 }
 0x3c4   : > { %v905_v49 = vpop.permute.xlu1 %904 }
 0x3c5   : > { %1551 = vst.msk [vmem:[%s2507_s13 + $0x2c] sm:$0xf] %vm727_vm1, %v905_v49 }
 0x3c6   : > { %v1010_v3 = vpop.permute.xlu0 %1009 }
 0x3c7   : > { %1578 = vst.msk [vmem:[%s2507_s13 + $0x58] sm:$0xf] %vm727_vm1, %v1010_v3 }
 0x3c8   : > { %v913_v4 = vpop.permute.xlu1 %912 }
 0x3c9   : > { %1555 = vst.msk [vmem:[%s2507_s13 + $0x3c] sm:$0xf] %vm727_vm1, %v913_v4 }
 0x3ca   : > { %v1101_v5 = vpop.permute.xlu0 %1100 }
 0x3cb   : > { %1598 = vst.msk [vmem:[%s2507_s13 + $0x68] sm:$0xf] %vm727_vm1, %v1101_v5 }
 0x3cc   : > { %v1004_v6 = vpop.permute.xlu1 %1003 }
 0x3cd   : > { %1575 = vst.msk [vmem:[%s2507_s13 + $0x4c] sm:$0xf] %vm727_vm1, %v1004_v6 }
 0x3ce   : > { %v837_v0 = vpop.permute.xlu0 %836 }
 0x3cf   : > { %1534 = vst.msk [vmem:[%s2516_s24 + $0x28] sm:$0xf] %vm727_vm1, %v837_v0 }
 0x3d0   : > { %v1012_v7 = vpop.permute.xlu1 %1011 }
 0x3d1   : > { %1579 = vst.msk [vmem:[%s2507_s13 + $0x5c] sm:$0xf] %vm727_vm1, %v1012_v7 }
 0x3d2   : > { %v845_v8 = vpop.permute.xlu0 %844 }
 0x3d3   : > { %1538 = vst.msk [vmem:[%s2516_s24 + $0x38] sm:$0xf] %vm727_vm1, %v845_v8 }
 0x3d4   : > { %v1103_v9 = vpop.permute.xlu1 %1102 }
 0x3d5   : > { %1599 = vst.msk [vmem:[%s2507_s13 + $0x6c] sm:$0xf] %vm727_vm1, %v1103_v9 }
 0x3d6   : > { %v936_v10 = vpop.permute.xlu0 %935 }
 0x3d7   : > { %1558 = vst.msk [vmem:[%s2516_s24 + $0x48] sm:$0xf] %vm727_vm1, %v936_v10 }
 0x3d8   : > { %v839_v11 = vpop.permute.xlu1 %838 }
 0x3d9   : > { %1535 = vst.msk [vmem:[%s2516_s24 + $0x2c] sm:$0xf] %vm727_vm1, %v839_v11 }
 0x3da   : > { %v944_v12 = vpop.permute.xlu0 %943 }
 0x3db   : > { %1562 = vst.msk [vmem:[%s2516_s24 + $0x58] sm:$0xf] %vm727_vm1, %v944_v12 }
 0x3dc   : > { %v847_v13 = vpop.permute.xlu1 %846 }
 0x3dd   : > { %1539 = vst.msk [vmem:[%s2516_s24 + $0x3c] sm:$0xf] %vm727_vm1, %v847_v13 }
 0x3de   : > { %v1035_v14 = vpop.permute.xlu0 %1034 }
 0x3df   : > { %1582 = vst.msk [vmem:[%s2516_s24 + $0x68] sm:$0xf] %vm727_vm1, %v1035_v14 }
 0x3e0   : > { %v938_v15 = vpop.permute.xlu1 %937 }
 0x3e1   : > { %1559 = vst.msk [vmem:[%s2516_s24 + $0x4c] sm:$0xf] %vm727_vm1, %v938_v15 }
 0x3e2   : > { %v1043_v16 = vpop.permute.xlu0 %1042 }
 0x3e3   : > { %1586 = vst.msk [vmem:[%s2516_s24 + $0x78] sm:$0xf] %vm727_vm1, %v1043_v16 }
 0x3e4   : > { %v946_v17 = vpop.permute.xlu1 %945 }
 0x3e5   : > { %1563 = vst.msk [vmem:[%s2516_s24 + $0x5c] sm:$0xf] %vm727_vm1, %v946_v17 }
 0x3e6   : > { %v1109_v18 = vpop.permute.xlu0 %1108 }
 0x3e7   : > { %1602 = vst.msk [vmem:[%s2507_s13 + $0x78] sm:$0xf] %vm727_vm1, %v1109_v18 }
 0x3e8   : > { %v1037_v19 = vpop.permute.xlu1 %1036 }
 0x3e9   : > { %1583 = vst.msk [vmem:[%s2516_s24 + $0x6c] sm:$0xf] %vm727_vm1, %v1037_v19 }
 0x3ec   : > { %v1045_v22 = vpop.permute.xlu1 %1044 }
 0x3ed   : > { %1587 = vst.msk [vmem:[%s2516_s24 + $0x7c] sm:$0xf] %vm727_vm1, %v1045_v22 }
 0x3f0   : > { %v1111_v23 = vpop.permute.xlu1 %1110 }
 0x3f1   : > { %1603 = vst.msk [vmem:[%s2507_s13 + $0x7c] sm:$0xf] %vm727_vm1, %v1111_v23 }
 0x3f2   : > { %s1607_s3 = sshll.u32 %s2064_s27, 3  ;;  %s1608_s4 = sshll.u32 %s2068_s28, 6 }
 0x3f3   : > { %s1152_s16 = sadd.s32 %s1608_s4, %s1607_s3  ;;  %s1171_s6 = sshll.u32 %s2516_s24, 4  ;;  %s1172_s6 = int_to_ptr.vmem [resolvable:$true] %s1171_s6 }
 0x3f4   : > { %s2926_s11 = sshll.u32 %s1152_s16, 6  ;;  %s2097_s18 = smov 512  }
 0x3f5   : > { %s1154_s1 = scalar_lea.hbm %s3021_s5, %s2926_s11  ;;  %1668 = sst [smem:[#allocation16]] (%p2340_p4), %s2097_s18 }
 0x3f6   : > { %s2098_s19 = smov 1024   ;;  %s2099_s27 = smov 8  }
 0x3f7   : > { %1669 = sst [smem:[#allocation16 + $0x1]] (%p2340_p4), %s2098_s19  ;;  %s2100_s28 = smov 64  }
 0x3f8   : > { %1670 = sst [smem:[#allocation16 + $0x2]] (%p2340_p4), %s2099_s27  ;;  %s2101_s24 = smov 4  }
 0x3f9   : > { %1671 = sst [smem:[#allocation16 + $0x3]] (%p2340_p4), %s2100_s28  ;;  %s2102_s15 = smov [#allocation15]  }
 0x3fa   : > { %1672 = sst [smem:[#allocation16 + $0x4]] (%p2340_p4), %s2100_s28  ;;  %s2103_s21 = smov 0  }
 0x3fb   : > { %1673 = sst [smem:[#allocation16 + $0x5]] (%p2340_p4), %s2101_s24 }
 0x3fc   : > { %1674 = dma.general (%p2340_p4), %s1172_s6, 2048, %s1154_s1, %s1130_s7, %s2102_s15, [#allocation16], %s2103_s21, 0  }
 0x3fd   : > { %s3063_s3 = sld [smem:[#allocation33_spill]]  ;;  %s1218_s16 = sshll.u32 %s2711_s17, 4  ;;  %s1219_s16 = int_to_ptr.vmem [resolvable:$true] %s1218_s16 }
 0x3fe   : > { %s2104_s9 = smov 512   ;;  %s2105_s7 = smov 1024  }
 0x3ff   : > { %1675 = sst [smem:[#allocation18]] (%p2340_p4), %s2104_s9  ;;  %s2106_s6 = smov 8  }
 0x400   : > { %1676 = sst [smem:[#allocation18 + $0x1]] (%p2340_p4), %s2105_s7  ;;  %s2107_s10 = smov 64  }
 0x401   : > { %1677 = sst [smem:[#allocation18 + $0x2]] (%p2340_p4), %s2106_s6  ;;  %s2108_s1 = smov 4  }
 0x402   : > { %1678 = sst [smem:[#allocation18 + $0x3]] (%p2340_p4), %s2107_s10  ;;  %s2109_s18 = smov [#allocation17]  }
 0x403   : > { %s1201_s4 = scalar_lea.hbm %s3063_s3, %s2926_s11  ;;  %1679 = sst [smem:[#allocation18 + $0x4]] (%p2340_p4), %s2107_s10 }
 0x404   : > { %1680 = sst [smem:[#allocation18 + $0x5]] (%p2340_p4), %s2108_s1  ;;  %s2110_s17 = smov 0  }
 0x405   : > { %1681 = dma.general (%p2340_p4), %s1219_s16, 2048, %s1201_s4, %s2921_s14, %s2109_s18, [#allocation18], %s2110_s17, 0  }
 0x406   : > { %s3064_s28 = sld [smem:[#allocation34_spill]]  ;;  %s1265_s15 = sshll.u32 %s2507_s13, 4  ;;  %s1266_s15 = int_to_ptr.vmem [resolvable:$true] %s1265_s15 }
 0x407   : > { %s2111_s21 = smov 512   ;;  %s2112_s22 = smov 1024  }
 0x408   : > { %1682 = sst [smem:[#allocation20]] (%p2340_p4), %s2111_s21  ;;  %s2113_s20 = smov 8  }
 0x409   : > { %1683 = sst [smem:[#allocation20 + $0x1]] (%p2340_p4), %s2112_s22  ;;  %s2114_s3 = smov 64  }
 0x40a   : > { %1684 = sst [smem:[#allocation20 + $0x2]] (%p2340_p4), %s2113_s20  ;;  %s2115_s4 = smov 4  }
 0x40b   : > { %1685 = sst [smem:[#allocation20 + $0x3]] (%p2340_p4), %s2114_s3  ;;  %s2117_s13 = smov 0  }
 0x40c   : > { %s1248_s24 = scalar_lea.hbm %s3064_s28, %s2926_s11  ;;  %1686 = sst [smem:[#allocation20 + $0x4]] (%p2340_p4), %s2114_s3 }
 0x40d   : > { %1687 = sst [smem:[#allocation20 + $0x5]] (%p2340_p4), %s2115_s4  ;;  %s2116_s11 = smov [#allocation19]  }
 0x40e   : > { %1688 = dma.general (%p2340_p4), %s1266_s15, 2048, %s1248_s24, %s2921_s14, %s2116_s11, [#allocation20], %s2117_s13, 0  }
 0x40f PF: > { %s3065_s16 = sld [smem:[#allocation26_spill]]  ;;  %s3066_s9 = sld [smem:[#allocation27_spill]] }
 0x410   : > { %p1728_p6 = scmp.ge.s32.totalorder %s2080_s8, 2 }
 0x415   : > { %s1293_s7 = sand.u32 1, %s3065_s16   ;;  %p3067_p8 = scmp.ne.s32.totalorder %s3066_s9, 0 }
 0x416   : > { %s1294_s6 = scalar_lea.sflag [#allocation4], %s1293_s7 }
 0x417   : > { %p1710_p3 = pnand %p1728_p6, %p3067_p8 }
 0x419   : > { %2043 = dma.done.wait (!%p1710_p3), %s1294_s6, 2048  }
 0x41a   : > { %2045 = vsyncadd (!%p1710_p3), %s1294_s6, 4294965248  ;;  %s3068_s10 = sadd.s32 4294967294, %s2080_s8  }
 0x41b   : > { %s1302_s1 = sand.u32 1, %s3068_s10  }
 0x41c   : > { %s1303_s18 = scalar_lea.sflag [#allocation13], %s1302_s1 }
 0x41d   : > { %2047 = dma.done.wait (!%p1710_p3), %s1303_s18, 4096  }
 0x41e   : > { %2049 = vsyncadd (!%p1710_p3), %s1303_s18, 4294963200  ;;  %s29_s8 = sadd.s32 1, %s2080_s8   ;;  %s3069_s23 = sld [smem:[#allocation28_spill]] }
 0x41f   : > { %p26_p4 = scmp.ge.s32.totalorder %s29_s8, 6   ;;  %s3070_s24 = smov %s2056_s25 }
 0x420   : > { %s3071_s25 = smov %s2060_s26  ;;  %s3072_s26 = smov %s2353_s2 }
 0x421   : > { %s3073_s27 = smov %s2072_s29  ;;  %s3074_s28 = smov %s2076_s30 }
 0x422   : > { %s3076_s30 = smov %s3082_s12  ;;  %28 = sbr.rel (!%p26_p4) target bundleno = 18 (0x12), region = 157 }
 0x424   : > { %s3075_s29 = smov %s3069_s23 }
 0x429   :  { %1317 = vsyncpa [#allocation3], 1 }
 0x42a   :  { %1319 = vsyncpa [#allocation3 + $0x1], 1 }
 0x42b   :  { %1320 = vsyncpa [#allocation6], 1 }
 0x42c   :  { %1321 = vsyncpa [#allocation9], 1 }
 0x42d   :  { %1322 = vsyncpa [#allocation4], 1 }
 0x42e   :  { %1324 = vsyncpa [#allocation4 + $0x1], 1 }
 0x42f   :  { %1325 = vsyncpa [#allocation13], 1 }
 0x430   :  { %1327 = vsyncpa [#allocation13 + $0x1], 1 }

// kernel: tpu_custom_call.1
= control target key start
LH: loop header
LB: loop body
LE: loop exit
PB: predicated region body
PF: predicated region fallthrough
CT: control target
= control target key end

     0   :  { %s3016_s0 = inlined_call_operand.hbm [shape: f32[2,128,64], index: 0, kind: input, shape index: {}]   ;;  %s3017_s1 = inlined_call_operand.hbm [shape: f32[1,64], index: 1, kind: input, shape index: {}]   ;;  %s3018_s2 = inlined_call_operand.hbm [shape: f32[1,64], index: 2, kind: input, shape index: {}]   ;;  %s3019_s3 = inlined_call_operand.hbm [shape: bf16[64,192], index: 3, kind: input, shape index: {}]   ;;  %s3020_s4 = inlined_call_operand.hbm [shape: f32[1,192], index: 4, kind: input, shape index: {}]   ;;  %s3021_s5 = inlined_call_operand.hbm [shape: bf16[2,4,128,16], index: 5, kind: output, shape index: {0}]   ;;  %s3022_s6 = inlined_call_operand.hbm [shape: bf16[2,4,128,16], index: 6, kind: output, shape index: {1}]   ;;  %s3023_s7 = inlined_call_operand.hbm [shape: bf16[2,4,128,16], index: 7, kind: output, shape index: {2}]  }
   0x1   :  { %3033 = sst [smem:[#allocation29_spill]] %s3017_s1 }
   0x2   :  { %3034 = sst [smem:[#allocation30_spill]] %s3018_s2 }
   0x3   :  { %3035 = sst [smem:[#allocation31_spill]] %s3019_s3 }
   0x4   :  { %3036 = sst [smem:[#allocation32_spill]] %s3020_s4 }
   0x5   :  { %3037 = sst [smem:[#allocation33_spill]] %s3022_s6 }
   0x6   :  { %3038 = sst [smem:[#allocation34_spill]] %s3023_s7 }
   0x7   :  { %13 = vsyncpa [#allocation3], 0 }
   0x8   :  { %15 = vsyncpa [#allocation3 + $0x1], 0 }
   0x9   :  { %16 = vsyncpa [#allocation6], 0 }
   0xa   :  { %17 = vsyncpa [#allocation9], 0 }
   0xb   :  { %18 = vsyncpa [#allocation4], 0 }
   0xc   :  { %20 = vsyncpa [#allocation4 + $0x1], 0 }
   0xd   :  { %21 = vsyncpa [#allocation13], 0 }
   0xe   :  { %23 = vsyncpa [#allocation13 + $0x1], 0  ;;  %s2158_s24 = smov 0   ;;  %s2160_s25 = smov 0  }
   0xf   :  { %s2162_s26 = smov 0   ;;  %s2164_s27 = smov 0  }
  0x10   :  { %s2166_s28 = smov 0   ;;  %s2168_s29 = smov 0  }
  0x11   :  { %s2170_s30 = smov 0   ;;  %s2172_s8 = smov 0  }
  0x12 LB: > { %3039 = sst [smem:[#allocation26_spill]] %s2052_s24  ;;  %s2199_s9 = sadd.s32 4294967295, %s2080_s8   ;;  %s2080_s8 = sphi %s2172_s8, %s29_s8   ;;  %s2076_s30 = sphi %s2170_s30, %s3076_s30   ;;  %s2072_s29 = sphi %s2168_s29, %s3075_s29   ;;  %s2068_s28 = sphi %s2166_s28, %s3074_s28   ;;  %s2064_s27 = sphi %s2164_s27, %s3073_s27   ;;  %s2060_s26 = sphi %s2162_s26, %s3072_s26   ;;  %s2056_s25 = sphi %s2160_s25, %s3071_s25   ;;  %s2052_s24 = sphi %s2158_s24, %s3070_s24  }
  0x13   : > { %s3024_s10 = sadd.s32 4294967294, %s2080_s8   ;;  %p63_p0 = scmp.ne.s32.totalorder %s2056_s25, %s2052_s24 }
  0x14   : > { %p3026_p1 = scmp.eq.s32.totalorder %s2199_s9, 0  ;;  %p179_p3 = scmp.eq.s32.totalorder %s3024_s10, 3 }
  0x15   : > { %p1475_p5 = scmp.ge.s32.totalorder %s2080_s8, 1  ;;  %p242_p7 = scmp.lt.s32.totalorder %s2080_s8, 5 }
  0x16   : > { %p2210_p4 = por %p3026_p1, %p63_p0  ;;  %p2215_p6 = por %p179_p3, %p63_p0 }
  0x17   : > { %p2220_p8 = pnand %p1475_p5, %p242_p7  ;;  %s2082_s14 = smov [#allocation5]  }
  0x18   : > { %s3040_s11 = scalar_select %p2210_p4, 1, 0 }
  0x19   : > { %s3041_s12 = scalar_select %p2215_p6, 1, 0 }
  0x1a   : > { %s3043_s13 = scalar_select %p2220_p8, 1, 0 }
  0x1b   : > { %3042 = sst [smem:[#allocation27_spill]] %s3041_s12  ;;  %s255_s15 = sshll.u32 %s2082_s14, 4  ;;  %s256_s15 = int_to_ptr.vmem [resolvable:$true] %s255_s15 }
  0x1c   : > { %p1692_p9 = pneg %p2220_p8  ;;  %s2083_s16 = smov [#allocation8]  }
  0x1d   : > { %s276_s17 = sshll.u32 %s2083_s16, 4  ;;  %s2084_s19 = smov [#allocation7]   ;;  %s2232_s17 = int_to_ptr.vmem [resolvable:$true] %s276_s17 }
  0x1e   : > { %p2228_p10 = pnand %p1692_p9, %p3026_p1  ;;  %s2234_s20 = sshll.u32 %s2084_s19, 4  ;;  %s267_s20 = int_to_ptr.vmem [resolvable:$true] %s2234_s20 }
  0x1f   : > { %s3045_s1 = sld [smem:[#allocation29_spill]] }
  0x20   : > { %p2244_p12 = pneg %p2228_p10 }
  0x25   : > { %s1856_s23 = scalar_lea.hbm %s3045_s1, 16 }
  0x26   : > { %p1857_p11 = scmp.ne.s32.totalorder %s3045_s1, %s1856_s23  ;;  %p1863_p3 = scmp.lt.u32.totalorder %s1856_s23, %s3045_s1 }
  0x28   : > { %p1859_p13 = pnand %p2244_p12, %p1857_p11 }
  0x2a   : > { %p1860_p0 = pneg %p1859_p13 }
  0x2c   : > { %p1865_p5 = pnand %p1863_p3, %p1860_p0 }
  0x2e   : > { %1868 = shalt.err (!%p1865_p5)
}
  0x2f   : > { %s1869_s21 = scalar_lea.vmem %s256_s15, 16  ;;  %s1876_s10 = scalar_lea.vmem %s256_s15, 32 }
  0x30   : > { %p1870_p7 = scmp.ne.s32.totalorder %s256_s15, %s1869_s21  ;;  %p1877_p2 = scmp.lt.s32.totalorder %s256_s15, %s256_s15 }
  0x31   : > { %p1878_p6 = scmp.lt.s32.totalorder %s1876_s10, %s1869_s21 }
  0x32   : > { %p1872_p9 = pnand %p1870_p7, %p2244_p12 }
  0x33   : > { %p1879_p4 = por %p1878_p6, %p1877_p2 }
  0x34   : > { %p1873_p1 = pneg %p1872_p9 }
  0x36   : > { %p1880_p8 = pnand %p1879_p4, %p1873_p1 }
  0x38   : > { %1883 = shalt.err (!%p1880_p8)
}
  0x39   : > { %1695 = dma.hbm_to_vmem [thread:$0]  (!%p2228_p10), %s3045_s1, 16, %s256_s15, [#allocation6]  }
  0x3a   : > { %s3047_s3 = sld [smem:[#allocation31_spill]] }
  0x40   : > { %s1884_s19 = scalar_lea.hbm %s3047_s3, 1024 }
  0x41   : > { %p1885_p11 = scmp.ne.s32.totalorder %s3047_s3, %s1884_s19  ;;  %p1891_p1 = scmp.lt.u32.totalorder %s1884_s19, %s3047_s3 }
  0x43   : > { %p1887_p13 = pnand %p1885_p11, %p2244_p12 }
  0x45   : > { %p1888_p2 = pneg %p1887_p13 }
  0x47   : > { %p1893_p4 = pnand %p1891_p1, %p1888_p2 }
  0x49   : > { %1896 = shalt.err (!%p1893_p4)
}
  0x4a   : > { %s1897_s15 = scalar_lea.vmem %s2232_s17, 1024  ;;  %p1905_p3 = scmp.lt.s32.totalorder %s2232_s17, %s2232_s17 }
  0x4b   : > { %p1898_p6 = scmp.ne.s32.totalorder %s2232_s17, %s1897_s15  ;;  %p1906_p5 = scmp.lt.s32.totalorder %s1897_s15, %s1897_s15 }
  0x4d   : > { %p1900_p8 = pnand %p1898_p6, %p2244_p12  ;;  %p1907_p7 = por %p1906_p5, %p1905_p3 }
  0x4f   : > { %p1901_p0 = pneg %p1900_p8 }
  0x51   : > { %p1908_p9 = pnand %p1907_p7, %p1901_p0 }
  0x53   : > { %1911 = shalt.err (!%p1908_p9)
}
  0x54   : > { %s3030_s7 = smov 128   ;;  %s3031_s24 = smov 8  }
  0x55   : > { %1701 = dma.hbm_to_vmem [thread:$0]  (!%p2228_p10), %s3047_s3, 1024, %s2232_s17, [#allocation9], %s3030_s7, %s3030_s7, %s3031_s24  }
  0x56   : > { %s3048_s2 = sld [smem:[#allocation30_spill]] }
  0x5c   : > { %s1912_s19 = scalar_lea.hbm %s3048_s2, 16 }
  0x5d   : > { %p1913_p11 = scmp.ne.s32.totalorder %s3048_s2, %s1912_s19  ;;  %p1919_p1 = scmp.lt.u32.totalorder %s1912_s19, %s3048_s2 }
  0x5f   : > { %p1915_p13 = pnand %p1913_p11, %p2244_p12 }
  0x61   : > { %p1916_p2 = pneg %p1915_p13 }
  0x63   : > { %p1921_p4 = pnand %p1919_p1, %p1916_p2 }
  0x65   : > { %1924 = shalt.err (!%p1921_p4)
}
  0x66   : > { %s1925_s22 = scalar_lea.vmem %s267_s20, 16  ;;  %s1932_s17 = scalar_lea.vmem %s267_s20, 32 }
  0x67   : > { %p1926_p6 = scmp.ne.s32.totalorder %s267_s20, %s1925_s22  ;;  %p1933_p3 = scmp.lt.s32.totalorder %s267_s20, %s267_s20 }
  0x68   : > { %p1934_p5 = scmp.lt.s32.totalorder %s1932_s17, %s1925_s22 }
  0x69   : > { %p1928_p8 = pnand %p1926_p6, %p2244_p12 }
  0x6a   : > { %p1935_p7 = por %p1934_p5, %p1933_p3 }
  0x6b   : > { %p1929_p0 = pneg %p1928_p8 }
  0x6d   : > { %p1936_p9 = pnand %p1935_p7, %p1929_p0 }
  0x6f   : > { %1939 = shalt.err (!%p1936_p9)
}
  0x70   : > { %1698 = dma.hbm_to_vmem [thread:$0]  (!%p2228_p10), %s3048_s2, 16, %s267_s20, [#allocation6]  }
  0x71   : > { %s2087_s1 = smov [#allocation10]   ;;  %s3049_s4 = sld [smem:[#allocation32_spill]] }
  0x72   : > { %s290_s23 = sshll.u32 %s2087_s1, 4  ;;  %s291_s23 = int_to_ptr.vmem [resolvable:$true] %s290_s23 }
  0x77   : > { %s1940_s10 = scalar_lea.hbm %s3049_s4, 32 }
  0x78   : > { %p1941_p11 = scmp.ne.s32.totalorder %s3049_s4, %s1940_s10  ;;  %p1947_p1 = scmp.lt.u32.totalorder %s1940_s10, %s3049_s4 }
  0x7a   : > { %p1943_p13 = pnand %p1941_p11, %p2244_p12 }
  0x7c   : > { %p1944_p2 = pneg %p1943_p13 }
  0x7e   : > { %p1949_p4 = pnand %p1947_p1, %p1944_p2 }
  0x80   : > { %1952 = shalt.err (!%p1949_p4)
}
  0x81   : > { %s1953_s20 = scalar_lea.vmem %s291_s23, 32  ;;  %p1961_p3 = scmp.lt.s32.totalorder %s291_s23, %s291_s23 }
  0x82   : > { %p1954_p6 = scmp.ne.s32.totalorder %s291_s23, %s1953_s20  ;;  %p1962_p5 = scmp.lt.s32.totalorder %s1953_s20, %s1953_s20 }
  0x84   : > { %p1956_p8 = pnand %p1954_p6, %p2244_p12  ;;  %p1963_p7 = por %p1962_p5, %p1961_p3 }
  0x86   : > { %p1957_p0 = pneg %p1956_p8 }
  0x88   : > { %p1964_p9 = pnand %p1963_p7, %p1957_p0 }
  0x8a   : > { %1967 = shalt.err (!%p1964_p9)
}
  0x8b   : > { %1704 = dma.hbm_to_vmem [thread:$0]  (!%p2228_p10), %s3049_s4, 32, %s291_s23, [#allocation9]  }
  0x8c   : > { %s38_s16 = sadd.s32 1, %s2072_s29  ;;  %s41_s12 = sadd.s32 1, %s2076_s30 }
  0x8d   : > { %p39_p12 = scmp.ge.s32.totalorder %s38_s16, 2  ;;  %s50_s18 = sadd.s32 1, %s2060_s26 }
  0x8e   : > { %p57_p11 = scmp.ne.s32.totalorder %s2060_s26, %s2056_s25  ;;  %p58_p13 = scmp.eq.s32.totalorder %s2080_s8, 0 }
  0x8f   : > { %s3078_s16 = smov (%p39_p12, %s38_s16), 0  ;;  %s3080_s12 = smov (!%p39_p12, %s41_s12), %s2076_s30 }
  0x90   : > { %3050 = sst [smem:[#allocation28_spill]] %s3078_s16  ;;  %s46_s1 = ssub.s32 %s2072_s29, %s3078_s16 }
  0x91   : > { %p2334_p2 = por %p58_p13, %p57_p11  ;;  %p43_p10 = scmp.ge.s32.totalorder %s3080_s12, 2 }
  0x92   : > { %p3052_p1 = scmp.eq.s32.totalorder %s2199_s9, 3  ;;  %p1723_p6 = scmp.lt.s32.totalorder %s2080_s8, 4 }
  0x93   : > { %s301_s21 = sand.u32 1, %s2060_s26   ;;  %s3082_s12 = smov (%p43_p10, %s3080_s12), 0 }
  0x94   : > { %p2340_p4 = por %p3052_p1, %p57_p11  ;;  %s1481_s10 = sshll.u32 %s301_s21, 6 }
  0x95   : > { %s45_s15 = ssub.s32 %s2076_s30, %s3082_s12  ;;  %s1482_s17 = sshll.u32 %s2072_s29, 3 }
  0x96   : > { %s47_s22 = sor.u32 %s46_s1, %s45_s15  ;;  %s1483_s20 = sshll.u32 %s2076_s30, 4 }
  0x97   : > { %p48_p8 = scmp.eq.s32.totalorder %s47_s22, 0  ;;  %s311_s7 = sadd.s32 %s1483_s20, %s1482_s17 }
  0x98   : > { %s305_s14 = scalar_lea.vmem [#allocation2], %s1481_s10  ;;  %s1484_s3 = sshll.u32 %s311_s7, 7 }
  0x99   : > { %s314_s24 = sshll.u32 %s305_s14, 4  ;;  %s2360_s6 = scalar_lea.hbm %s3016_s0, %s1484_s3  ;;  %s2355_s24 = int_to_ptr.vmem [resolvable:$true] %s314_s24 }
  0x9a   : > { %s2353_s2 = scalar_select %p48_p8, %s2060_s26, %s50_s18  }
  0x9b   : > { %p2366_p0 = pnand %p1723_p6, %p2334_p2  ;;  %s2370_s18 = scalar_lea.sflag [#allocation3], %s301_s21 }
  0x9c   : > { %s1968_s10 = scalar_lea.hbm %s2360_s6, 1024  ;;  %s1973_s16 = scalar_lea.hbm %s3016_s0, 4096 }
  0x9d   : > { %p1969_p3 = scmp.ne.s32.totalorder %s2360_s6, %s1968_s10  ;;  %p1970_p5 = pneg %p2366_p0 }
  0x9e   : > { %p1974_p12 = scmp.lt.u32.totalorder %s2360_s6, %s3016_s0  ;;  %p1975_p11 = scmp.lt.u32.totalorder %s1973_s16, %s1968_s10 }
  0x9f   : > { %p1971_p7 = pnand %p1970_p5, %p1969_p3  ;;  %p1977_p2 = scmp.lt.u32.totalorder %s1968_s10, %s2360_s6 }
  0xa0   : > { %p1976_p13 = por %p1975_p11, %p1974_p12 }
  0xa1   : > { %p1972_p9 = pneg %p1971_p7 }
  0xa2   : > { %p1978_p10 = por %p1977_p2, %p1976_p13 }
  0xa4   : > { %p1979_p1 = pnand %p1978_p10, %p1972_p9 }
  0xa6   : > { %1982 = shalt.err (!%p1979_p1)
}
  0xa7   : > { %s1983_s21 = scalar_lea.vmem %s2355_s24, 1024  ;;  %s2088_s22 = smov [#allocation2]  }
  0xa8   : > { %p1984_p6 = scmp.ne.s32.totalorder %s2355_s24, %s1983_s21  ;;  %s1988_s17 = sshll.u32 %s2088_s22, 4  ;;  %s1989_s17 = int_to_ptr.vmem [resolvable:$false] %s1988_s17 }
  0xa9   : > { %s1990_s20 = scalar_lea.vmem %s1989_s17, 2048  ;;  %p1991_p7 = scmp.lt.s32.totalorder %s2355_s24, %s1989_s17 }
  0xaa   : > { %p1986_p8 = pnand %p1984_p6, %p1970_p5  ;;  %p1992_p12 = scmp.lt.s32.totalorder %s1990_s20, %s1983_s21 }
  0xac   : > { %p1987_p3 = pneg %p1986_p8  ;;  %p1993_p11 = por %p1992_p12, %p1991_p7 }
  0xae   : > { %p1994_p13 = pnand %p1993_p11, %p1987_p3 }
  0xb0   : > { %1997 = shalt.err (!%p1994_p13)
}
  0xb1   : > { %s3055_s7 = smov 8   ;;  %s3056_s14 = smov 128  }
  0xb2   : > { %1708 = dma.hbm_to_vmem [thread:$0]  (!%p2366_p0), %s2360_s6, 1024, %s2355_s24, %s2370_s18, %s3056_s14, %s3056_s14, %s3055_s7  }
  0xb3   : > { %p3057_p5 = scmp.ne.s32.totalorder %s3043_s13, 0 }
  0xb4   : > { %s2404_s10 = sand.u32 (!%p3057_p5), 1, %s2056_s25   ;;  %p3058_p9 = scmp.ne.s32.totalorder (!%p3057_p5), %s3040_s11, 0 }
  0xb5   : > { %326 = sbr.rel (%p3057_p5) target bundleno = 1039 (0x40f), region = 40  ;;  %s1486_s3 = sshll.u32 (!%p3057_p5), %s2404_s10, 6 }
  0xb6   : > { %s329_s4 = scalar_lea.sflag (!%p3057_p5), [#allocation3], %s2404_s10  ;;  %s332_s16 = scalar_lea.vmem (!%p3057_p5), [#allocation2], %s1486_s3 }
  0xbc   : > { %2031 = dma.done.wait (%p3058_p9), %s329_s4, 1024  }
  0xbd   : > { %2033 = vsyncadd (%p3058_p9), %s329_s4, 4294966272  ;;  %p3059_p2 = scmp.eq.s32.totalorder %s2199_s9, 0 }
  0xbf   : > { %2035 = dma.done.wait (%p3059_p2), [#allocation6], 32   ;;  %p3060_p0 = pmov %p3059_p2 }
  0xc1   : > { %2037 = vsyncadd (%p3060_p0), [#allocation6], 4294967264  ;;  %p3061_p10 = pmov %p3060_p0 }
  0xc2   : > { %p3062_p1 = pmov %p3060_p0 }
  0xc3   : > { %2039 = dma.done.wait (%p3061_p10), [#allocation9], 1056  }
  0xc4   : > { %2041 = vsyncadd (%p3062_p1), [#allocation9], 4294966240  ;;  %vm404_vm0 = vcmask 523264   ;;  %v394_v0 = vld [vmem:[%s332_s16] sm:$0xff]  ;;  %v395_v2 = vld [vmem:[%s332_s16 + $0x8] sm:$0xff]  ;;  %s2489_s6 = sshll.u32 %s2404_s10, 7 }
  0xc5   : > { %v398_v1 = vld [vmem:[%s332_s16 + $0x20] sm:$0xff]  ;;  %v405_v3 = vsel %vm404_vm0, %v394_v0, 0.0  ;;  %v399_v5 = vld [vmem:[%s332_s16 + $0x28] sm:$0xff]  ;;  %v396_v6 = vld [vmem:[%s332_s16 + $0x10] sm:$0xff]  ;;  %v408_v8 = vsel %vm404_vm0, %v395_v2, 0.0  ;;  %vm727_vm1 = vcmask 125952  }
  0xc6   : > { %v417_v4 = vsel %vm404_vm0, %v398_v1, 0.0  ;;  %406 = vadd.xlane.f32.xlu0 %v405_v3  ;;  %v397_v7 = vld [vmem:[%s332_s16 + $0x18] sm:$0xff]  ;;  %v420_v9 = vsel %vm404_vm0, %v399_v5, 0.0  ;;  %v411_v10 = vsel %vm404_vm0, %v396_v6, 0.0  ;;  %v400_v12 = vld [vmem:[%s332_s16 + $0x30] sm:$0xff]  ;;  %s2090_s11 = smov 64  }
  0xc7   : > { %418 = vadd.xlane.f32.xlu1 %v417_v4  ;;  %v414_v11 = vsel %vm404_vm0, %v397_v7, 0.0  ;;  %v401_v13 = vld [vmem:[%s332_s16 + $0x38] sm:$0xff]  ;;  %v423_v14 = vsel %vm404_vm0, %v400_v12, 0.0  ;;  %v1828_v56 = vld [vmem:[#allocation8 + $0x4] ss:$8 sps:$4 sm:$0xff]   ;;  %s2507_s13 = scalar_lea.vmem [#allocation14], %s2489_s6 }
  0xc8   : > { %v426_v15 = vsel %vm404_vm0, %v401_v13, 0.0  ;;  %v1830_v57 = vld [vmem:[#allocation8] ss:$8 sps:$4 sm:$0xff]   ;;  %614 = vmatprep.subr.bf16.mxu0 %v1828_v56  ;;  %1642 = vmatprep.subr.bf16.mxu1 %v1828_v56  ;;  %v1831_v58 = vld [vmem:[#allocation8 + $0x14] ss:$8 sps:$4 sm:$0xff]   ;;  %s2516_s24 = scalar_lea.vmem [#allocation11], %s2489_s6 }
  0xc9   : > { %615 = vmatpush1.bf16.msra.mxu0 %v1830_v57  ;;  %1646 = vmatpush1.bf16.msra.mxu1 %v1830_v57  ;;  %v1833_v59 = vld [vmem:[#allocation8 + $0x10] ss:$8 sps:$4 sm:$0xff]   ;;  %v1834_v60 = vld [vmem:[#allocation8 + $0x24] ss:$8 sps:$4 sm:$0xff]   ;;  %v1836_v61 = vld [vmem:[#allocation8 + $0x20] ss:$8 sps:$4 sm:$0xff]  }
  0xca   : > { %409 = vadd.xlane.f32.xlu0 %v408_v8  ;;  %616 = vmatprep.subr.bf16.mxu0 %v1831_v58  ;;  %v1837_v62 = vld [vmem:[#allocation8 + $0x34] ss:$8 sps:$4 sm:$0xff]   ;;  %v1839_v63 = vld [vmem:[#allocation8 + $0x30] ss:$8 sps:$4 sm:$0xff]   ;;  %s2091_s1 = smov 48   ;;  %s2092_s18 = smov 32  }
  0xcb   : > { %421 = vadd.xlane.f32.xlu1 %v420_v9  ;;  %1643 = vmatprep.subr.bf16.mxu1 %v1831_v58  ;;  %s2093_s19 = smov 16   ;;  %s2094_s15 = smov 112  }
  0xcc   : > { %s2095_s21 = smov 96   ;;  %s2096_s22 = smov 80  }
  0xcd   : > { %617 = vmatpush1.bf16.msra.mxu0 %v1833_v59  ;;  %1647 = vmatpush1.bf16.msra.mxu1 %v1833_v59  ;;  %s2711_s17 = scalar_lea.vmem [#allocation12], %s2489_s6  ;;  %s1134_s20 = sand.u32 1, %s2199_s9  }
  0xce   : > { %412 = vadd.xlane.f32.xlu0 %v411_v10  ;;  %618 = vmatprep.subr.bf16.mxu0 %v1834_v60  ;;  %s1130_s7 = scalar_lea.sflag [#allocation4], %s2404_s10  ;;  %s2921_s14 = scalar_lea.sflag [#allocation13], %s1134_s20 }
  0xcf   : > { %415 = vadd.xlane.f32.xlu1 %v414_v11  ;;  %1644 = vmatprep.subr.bf16.mxu1 %v1834_v60 }
  0xd1   : > { %619 = vmatpush1.bf16.msra.mxu0 %v1836_v61  ;;  %1648 = vmatpush1.bf16.msra.mxu1 %v1836_v61 }
  0xd2   : > { %424 = vadd.xlane.f32.xlu0 %v423_v14  ;;  %620 = vmatprep.subr.bf16.mxu0 %v1837_v62 }
  0xd3   : > { %427 = vadd.xlane.f32.xlu1 %v426_v15  ;;  %1645 = vmatprep.subr.bf16.mxu1 %v1837_v62 }
  0xd5   : > { %621 = vmatpush1.bf16.msra.mxu0 %v1839_v63  ;;  %1649 = vmatpush1.bf16.msra.mxu1 %v1839_v63 }
 0x153   : > { %v407_v16 = vpop.xlane.xlu0 %406 }
 0x154   : > { %v419_v17 = vpop.xlane.xlu1 %418  ;;  %v430_v18 = vmul.f32 0.015625, %v407_v16 }
 0x155   : > { %v434_v19 = vmul.f32 0.015625, %v419_v17 }
 0x156   : > { %v2428_v20 = vsub.f32 %v394_v0, %v430_v18  ;;  %v2089_v0 = vmov 0  }
 0x157   : > { %v2430_v21 = vsub.f32 %v398_v1, %v434_v19  ;;  %v410_v22 = vpop.xlane.xlu0 %409  ;;  %646 = vmatprep.mubr.bf16.mxu0 %v2089_v0  ;;  %666 = vmatprep.mubr.bf16.mxu1 %v2089_v0 }
 0x158   : > { %v422_v23 = vpop.xlane.xlu1 %421  ;;  %v431_v24 = vmul.f32 0.015625, %v410_v22  ;;  %v446_v26 = vmul.f32 %v2428_v20, %v2428_v20 }
 0x159   : > { %v435_v25 = vmul.f32 0.015625, %v422_v23  ;;  %v450_v27 = vmul.f32 %v2430_v21, %v2430_v21 }
 0x15a   : > { %v2436_v28 = vsub.f32 %v395_v2, %v431_v24  ;;  %v454_v30 = vsel %vm404_vm0, %v446_v26, 0.0 }
 0x15b   : > { %v2438_v29 = vsub.f32 %v399_v5, %v435_v25  ;;  %455 = vadd.xlane.f32.xlu0 %v454_v30  ;;  %v413_v31 = vpop.xlane.xlu0 %412  ;;  %v466_v33 = vsel %vm404_vm0, %v450_v27, 0.0  ;;  %v1494_v30 = vld [vmem:[#allocation5] ss:$0 sm:$0xff] }
 0x15c   : > { %v416_v32 = vpop.xlane.xlu1 %415  ;;  %v432_v34 = vmul.f32 0.015625, %v413_v31  ;;  %v447_v36 = vmul.f32 %v2436_v28, %v2436_v28 }
 0x15d   : > { %v433_v35 = vmul.f32 0.015625, %v416_v32  ;;  %v451_v37 = vmul.f32 %v2438_v29, %v2438_v29 }
 0x15e   : > { %v2446_v38 = vsub.f32 %v396_v6, %v432_v34  ;;  %v457_v40 = vsel %vm404_vm0, %v447_v36, 0.0 }
 0x15f   : > { %v2448_v39 = vsub.f32 %v397_v7, %v433_v35  ;;  %467 = vadd.xlane.f32.xlu0 %v466_v33  ;;  %458 = vadd.xlane.f32.xlu1 %v457_v40  ;;  %v425_v41 = vpop.xlane.xlu0 %424  ;;  %v469_v43 = vsel %vm404_vm0, %v451_v37, 0.0  ;;  %v1495_v37 = vld [vmem:[#allocation7] ss:$0 sm:$0xff] }
 0x160   : > { %v428_v42 = vpop.xlane.xlu1 %427  ;;  %v436_v44 = vmul.f32 0.015625, %v425_v41  ;;  %v448_v46 = vmul.f32 %v2446_v38, %v2446_v38 }
 0x161   : > { %v437_v45 = vmul.f32 0.015625, %v428_v42  ;;  %v449_v47 = vmul.f32 %v2448_v39, %v2448_v39 }
 0x162   : > { %v2456_v48 = vsub.f32 %v400_v12, %v436_v44  ;;  %v460_v50 = vsel %vm404_vm0, %v448_v46, 0.0 }
 0x163   : > { %v2458_v49 = vsub.f32 %v401_v13, %v437_v45  ;;  %470 = vadd.xlane.f32.xlu1 %v469_v43  ;;  %461 = vadd.xlane.f32.xlu0 %v460_v50  ;;  %v463_v51 = vsel %vm404_vm0, %v449_v47, 0.0 }
 0x164   : > { %v452_v52 = vmul.f32 %v2456_v48, %v2456_v48 }
 0x165   : > { %v453_v53 = vmul.f32 %v2458_v49, %v2458_v49 }
 0x166   : > { %v472_v54 = vsel %vm404_vm0, %v452_v52, 0.0 }
 0x167   : > { %464 = vadd.xlane.f32.xlu1 %v463_v51  ;;  %473 = vadd.xlane.f32.xlu0 %v472_v54  ;;  %v475_v55 = vsel %vm404_vm0, %v453_v53, 0.0 }
 0x16b   : > { %476 = vadd.xlane.f32.xlu1 %v475_v55 }
 0x1e8   : > { %v456_v1 = vpop.xlane.xlu0 %455 }
 0x1e9   : > { %v478_v2 = vmul.f32 0.015625, %v456_v1  ;;  %v552_v1 = vlaneseq }
 0x1eb   : > { %v486_v3 = vadd.f32 1e-05, %v478_v2  ;;  %v553_v2 = vshrl.u32 %v552_v1, 7 }
 0x1ec   : > { %v459_v4 = vpop.xlane.xlu1 %458  ;;  %v468_v5 = vpop.xlane.xlu0 %467 }
 0x1ed   : > { %1840 = vrsqrt.f32 %v486_v3  ;;  %v479_v6 = vmul.f32 0.015625, %v459_v4  ;;  %v482_v7 = vmul.f32 0.015625, %v468_v5  ;;  %v550_v3 = vld [vmem:[#allocation10] sm:$0x3]  ;;  %v558_v4 = vsub.s32 1, %v553_v2 }
 0x1ef   : > { %v487_v8 = vadd.f32 1e-05, %v479_v6  ;;  %v490_v9 = vadd.f32 1e-05, %v482_v7  ;;  %v2486_v6 = vrot.slane %v550_v3, %v558_v4 }
 0x1f0   : > { %v471_v10 = vpop.xlane.xlu1 %470  ;;  %v462_v11 = vpop.xlane.xlu0 %461 }
 0x1f1   : > { %1842 = vrsqrt.f32 %v487_v8  ;;  %v483_v12 = vmul.f32 0.015625, %v471_v10  ;;  %v480_v13 = vmul.f32 0.015625, %v462_v11 }
 0x1f2   : > { %1844 = vrsqrt.f32 %v490_v9 }
 0x1f3   : > { %v491_v14 = vadd.f32 1e-05, %v483_v12  ;;  %v488_v15 = vadd.f32 1e-05, %v480_v13 }
 0x1f4   : > { %v465_v16 = vpop.xlane.xlu1 %464  ;;  %v474_v17 = vpop.xlane.xlu0 %473 }
 0x1f5   : > { %1846 = vrsqrt.f32 %v491_v14  ;;  %v481_v18 = vmul.f32 0.015625, %v465_v16  ;;  %v484_v19 = vmul.f32 0.015625, %v474_v17 }
 0x1f6   : > { %1848 = vrsqrt.f32 %v488_v15 }
 0x1f7   : > { %v1841_v22 = vpop.eup %1840  ;;  %v489_v23 = vadd.f32 1e-05, %v481_v18  ;;  %v492_v24 = vadd.f32 1e-05, %v484_v19 }
 0x1f8   : > { %v502_v25 = vmul.f32 %v1841_v22, %v2428_v20  ;;  %v477_v26 = vpop.xlane.xlu1 %476 }
 0x1f9   : > { %1850 = vrsqrt.f32 %v489_v23  ;;  %v485_v27 = vmul.f32 0.015625, %v477_v26 }
 0x1fa   : > { %1852 = vrsqrt.f32 %v492_v24  ;;  %v516_v35 = vmul.f32 %v1494_v30, %v502_v25 }
 0x1fb   : > { %v1843_v31 = vpop.eup %1842  ;;  %v493_v32 = vadd.f32 1e-05, %v485_v27 }
 0x1fc   : > { %v1845_v33 = vpop.eup %1844  ;;  %v503_v34 = vmul.f32 %v1843_v31, %v2436_v28  ;;  %v530_v43 = vadd.f32 %v1495_v37, %v516_v35 }
 0x1fd   : > { %v506_v36 = vmul.f32 %v1845_v33, %v2430_v21  ;;  %1854 = vrsqrt.f32 %v493_v32 }
 0x1fe   : > { %v517_v40 = vmul.f32 %v1494_v30, %v503_v34 }
 0x1ff   : > { %v1847_v41 = vpop.eup %1846  ;;  %v520_v45 = vmul.f32 %v1494_v30, %v506_v36 }
 0x200   : > { %v1849_v42 = vpop.eup %1848  ;;  %v507_v20 = vmul.f32 %v1847_v41, %v2438_v29  ;;  %v531_v44 = vadd.f32 %v1495_v37, %v517_v40 }
 0x201   : > { %v504_v46 = vmul.f32 %v1849_v42, %v2446_v38  ;;  %v534_v21 = vadd.f32 %v1495_v37, %v520_v45 }
 0x202   : > { %v538_v47 = vpack.c.bf16 %v531_v44, %v530_v43  ;;  %v521_v50 = vmul.f32 %v1494_v30, %v507_v20 }
 0x203   : > { %v1851_v51 = vpop.eup %1850  ;;  %v518_v54 = vmul.f32 %v1494_v30, %v504_v46 }
 0x204   : > { %v1853_v52 = vpop.eup %1852  ;;  %v505_v28 = vmul.f32 %v1851_v51, %v2448_v39  ;;  %1504 = vmatmul.mubr.msk.bf16.vlgmr.msra.gmra.mrb[0].mxu0 %vm404_vm0, %v538_v47  ;;  %v535_v53 = vadd.f32 %v1495_v37, %v521_v50 }
 0x205   : > { %v508_v55 = vmul.f32 %v1853_v52, %v2456_v48  ;;  %656 = vmatprep.mubr.bf16.mxu0 %v2089_v0  ;;  %v532_v58 = vadd.f32 %v1495_v37, %v518_v54 }
 0x206   : > { %v540_v29 = vpack.c.bf16 %v535_v53, %v534_v21  ;;  %v519_v56 = vmul.f32 %v1494_v30, %v505_v28 }
 0x207   : > { %v1855_v57 = vpop.eup %1854  ;;  %v522_v60 = vmul.f32 %v1494_v30, %v508_v55 }
 0x208   : > { %v509_v38 = vmul.f32 %v1855_v57, %v2458_v49  ;;  %1506 = vmatmul.mubr.msk.bf16.vlgmr.msra.gmra.mrb[0].mxu1 %vm404_vm0, %v540_v29  ;;  %v533_v59 = vadd.f32 %v1495_v37, %v519_v56  ;;  %v554_v49 = vsub.s32 0, %v553_v2 }
 0x209   : > { %676 = vmatprep.mubr.bf16.mxu1 %v2089_v0  ;;  %v536_v48 = vadd.f32 %v1495_v37, %v522_v60 }
 0x20a   : > { %v539_v39 = vpack.c.bf16 %v533_v59, %v532_v58  ;;  %v523_v61 = vmul.f32 %v1494_v30, %v509_v38  ;;  %v2484_v5 = vrot.slane %v550_v3, %v554_v49 }
 0x20c   : > { %1505 = vmatmul.mubr.msk.bf16.gmra.mrb[4].mxu0 %vm404_vm0, %v539_v39  ;;  %v537_v62 = vadd.f32 %v1495_v37, %v523_v61 }
 0x20e   : > { %v541_v63 = vpack.c.bf16 %v537_v62, %v536_v48 }
 0x210   : > { %1507 = vmatmul.mubr.msk.bf16.gmra.mrb[4].mxu1 %vm404_vm0, %v541_v63 }
 0x2d7   : > { %v648_v0 = vpop.f32.mrb[0].mxu0 }
 0x2d8   : > { %v649_v7 = vadd.f32 %v648_v0, %v2484_v5  ;;  %v650_v8 = vpop.f32.mrb[1].mxu0 }
 0x2d9   : > { %v651_v9 = vadd.f32 %v650_v8, %v2486_v6  ;;  %v652_v10 = vpop.f32.mrb[2].mxu0 }
 0x2da   : > { %v687_v11 = vmul.f32 0.25, %v649_v7  ;;  %v2493_v12 = vpack.c.bf16 %v649_v7, %v649_v7  ;;  %v653_v13 = vadd.f32 %v652_v10, %v2484_v5  ;;  %v654_v14 = vpop.f32.mrb[3].mxu0 }
 0x2db   : > { %v2496_v15 = vpack.c.bf16 %v651_v9, %v651_v9  ;;  %v655_v16 = vadd.f32 %v654_v14, %v2486_v6  ;;  %v668_v17 = vpop.f32.mrb[0].mxu1 }
 0x2dc   : > { %v2499_v18 = vpack.c.bf16 %v687_v11, %v687_v11  ;;  %v688_v19 = vmul.f32 0.25, %v653_v13  ;;  %v2501_v22 = vpack.c.bf16 %v653_v13, %v653_v13  ;;  %v669_v23 = vadd.f32 %v668_v17, %v2484_v5  ;;  %760 = vrot.lane.b32.xlu0 %v2493_v12, %s2090_s11  ;;  %v670_v24 = vpop.f32.mrb[1].mxu1 }
 0x2dd   : > { %824 = vst.msk [vmem:[%s2507_s13] sm:$0xf] %vm727_vm1, %v2496_v15  ;;  %v2512_v25 = vpack.c.bf16 %v655_v16, %v655_v16  ;;  %v671_v26 = vadd.f32 %v670_v24, %v2486_v6  ;;  %v672_v27 = vpop.f32.mrb[2].mxu1 }
 0x2de   : > { %728 = vst.msk [vmem:[%s2516_s24] sm:$0xf] %vm727_vm1, %v2499_v18  ;;  %v2521_v30 = vpack.c.bf16 %v688_v19, %v688_v19  ;;  %v691_v31 = vmul.f32 0.25, %v669_v23  ;;  %v2523_v32 = vpack.c.bf16 %v669_v23, %v669_v23  ;;  %v673_v33 = vadd.f32 %v672_v27, %v2484_v5  ;;  %762 = vrot.lane.b32.xlu1 %v2501_v22, %s2090_s11  ;;  %v674_v34 = vpop.f32.mrb[3].mxu1 }
 0x2df   : > { %825 = vst.msk [vmem:[%s2507_s13 + $0x4] sm:$0xf] %vm727_vm1, %v2512_v25  ;;  %v2531_v35 = vpack.c.bf16 %v671_v26, %v671_v26  ;;  %v675_v36 = vadd.f32 %v674_v34, %v2486_v6  ;;  %v658_v37 = vpop.f32.mrb[4].mxu0 }
 0x2e0   : > { %729 = vst.msk [vmem:[%s2516_s24 + $0x4] sm:$0xf] %vm727_vm1, %v2521_v30  ;;  %v2537_v40 = vpack.c.bf16 %v691_v31, %v691_v31  ;;  %v692_v41 = vmul.f32 0.25, %v673_v33  ;;  %v1631_v42 = vpack.c.bf16 %v673_v33, %v673_v33  ;;  %v2540_v20 = vadd.f32 %v658_v37, %v2484_v5  ;;  %768 = vrot.lane.b32.xlu0 %v2523_v32, %s2090_s11  ;;  %v660_v43 = vpop.f32.mrb[5].mxu0 }
 0x2e1   : > { %828 = vst.msk [vmem:[%s2507_s13 + $0x10] sm:$0xf] %vm727_vm1, %v2531_v35  ;;  %v2547_v44 = vpack.c.bf16 %v675_v36, %v675_v36  ;;  %v661_v45 = vadd.f32 %v660_v43, %v2486_v6  ;;  %v662_v46 = vpop.f32.mrb[6].mxu0 }
 0x2e2   : > { %732 = vst.msk [vmem:[%s2516_s24 + $0x10] sm:$0xf] %vm727_vm1, %v2537_v40  ;;  %v2553_v47 = vpack.c.bf16 %v692_v41, %v692_v41  ;;  %v689_v50 = vmul.f32 0.25, %v2540_v20  ;;  %v2557_v51 = vadd.f32 %v662_v46, %v2484_v5  ;;  %770 = vrot.lane.b32.xlu1 %v1631_v42, %s2090_s11  ;;  %v664_v52 = vpop.f32.mrb[7].mxu0  ;;  %v1628_v4 = vpack.c.bf16 %v2540_v20, %v2540_v20 }
 0x2e3   : > { %829 = vst.msk [vmem:[%s2507_s13 + $0x14] sm:$0xf] %vm727_vm1, %v2547_v44  ;;  %v2563_v28 = vpack.c.bf16 %v661_v45, %v661_v45  ;;  %v665_v21 = vadd.f32 %v664_v52, %v2486_v6  ;;  %v678_v53 = vpop.f32.mrb[4].mxu1 }
 0x2e4   : > { %733 = vst.msk [vmem:[%s2516_s24 + $0x14] sm:$0xf] %vm727_vm1, %v2553_v47  ;;  %v2569_v54 = vpack.c.bf16 %v689_v50, %v689_v50  ;;  %v690_v55 = vmul.f32 0.25, %v2557_v51  ;;  %v2573_v29 = vadd.f32 %v678_v53, %v2484_v5  ;;  %865 = vrot.lane.b32.xlu0 %v2493_v12, %s2091_s1  ;;  %v680_v56 = vpop.f32.mrb[5].mxu1 }
 0x2e5   : > { %826 = vst.msk [vmem:[%s2507_s13 + $0x8] sm:$0xf] %vm727_vm1, %v2563_v28  ;;  %v2580_v57 = vpack.c.bf16 %v665_v21, %v665_v21  ;;  %v681_v38 = vadd.f32 %v680_v56, %v2486_v6  ;;  %v682_v58 = vpop.f32.mrb[6].mxu1 }
 0x2e6   : > { %730 = vst.msk [vmem:[%s2516_s24 + $0x8] sm:$0xf] %vm727_vm1, %v2569_v54  ;;  %v2586_v59 = vpack.c.bf16 %v690_v55, %v690_v55  ;;  %v693_v60 = vmul.f32 0.25, %v2573_v29  ;;  %v683_v39 = vadd.f32 %v682_v58, %v2484_v5  ;;  %867 = vrot.lane.b32.xlu1 %v2501_v22, %s2091_s1  ;;  %v684_v61 = vpop.f32.mrb[7].mxu1  ;;  %v1632_v3 = vpack.c.bf16 %v2573_v29, %v2573_v29 }
 0x2e7   : > { %827 = vst.msk [vmem:[%s2507_s13 + $0xc] sm:$0xf] %vm727_vm1, %v2580_v57  ;;  %v2595_v48 = vpack.c.bf16 %v681_v38, %v681_v38  ;;  %v685_v62 = vadd.f32 %v684_v61, %v2486_v6  ;;  %v1629_v5 = vpack.c.bf16 %v2557_v51, %v2557_v51 }
 0x2e8   : > { %731 = vst.msk [vmem:[%s2516_s24 + $0xc] sm:$0xf] %vm727_vm1, %v2586_v59  ;;  %v2601_v63 = vpack.c.bf16 %v693_v60, %v693_v60  ;;  %v694_v1 = vmul.f32 0.25, %v683_v39  ;;  %873 = vrot.lane.b32.xlu0 %v2523_v32, %s2091_s1  ;;  %v1633_v6 = vpack.c.bf16 %v683_v39, %v683_v39 }
 0x2e9   : > { %830 = vst.msk [vmem:[%s2507_s13 + $0x18] sm:$0xf] %vm727_vm1, %v2595_v48  ;;  %v2608_v2 = vpack.c.bf16 %v685_v62, %v685_v62 }
 0x2ea   : > { %734 = vst.msk [vmem:[%s2516_s24 + $0x18] sm:$0xf] %vm727_vm1, %v2601_v63  ;;  %v2613_v49 = vpack.c.bf16 %v694_v1, %v694_v1  ;;  %875 = vrot.lane.b32.xlu1 %v1631_v42, %s2091_s1 }
 0x2eb   : > { %831 = vst.msk [vmem:[%s2507_s13 + $0x1c] sm:$0xf] %vm727_vm1, %v2608_v2 }
 0x2ec   : > { %735 = vst.msk [vmem:[%s2516_s24 + $0x1c] sm:$0xf] %vm727_vm1, %v2613_v49  ;;  %964 = vrot.lane.b32.xlu0 %v2493_v12, %s2092_s18 }
 0x2ee   : > { %966 = vrot.lane.b32.xlu1 %v2501_v22, %s2092_s18 }
 0x2f0   : > { %972 = vrot.lane.b32.xlu0 %v2523_v32, %s2092_s18 }
 0x2f2   : > { %974 = vrot.lane.b32.xlu1 %v1631_v42, %s2092_s18 }
 0x2f4   : > { %1063 = vrot.lane.b32.xlu0 %v2493_v12, %s2093_s19 }
 0x2f6   : > { %1065 = vrot.lane.b32.xlu1 %v2501_v22, %s2093_s19 }
 0x2f8   : > { %1071 = vrot.lane.b32.xlu0 %v2523_v32, %s2093_s19 }
 0x2fa   : > { %1073 = vrot.lane.b32.xlu1 %v1631_v42, %s2093_s19 }
 0x2fc   : > { %898 = vrot.lane.b32.xlu0 %v2496_v15, %s2094_s15 }
 0x2fe   : > { %900 = vrot.lane.b32.xlu1 %v2512_v25, %s2094_s15 }
 0x300   : > { %906 = vrot.lane.b32.xlu0 %v2531_v35, %s2094_s15 }
 0x302   : > { %908 = vrot.lane.b32.xlu1 %v2547_v44, %s2094_s15 }
 0x304   : > { %997 = vrot.lane.b32.xlu0 %v2496_v15, %s2095_s21 }
 0x306   : > { %999 = vrot.lane.b32.xlu1 %v2512_v25, %s2095_s21 }
 0x308   : > { %1005 = vrot.lane.b32.xlu0 %v2531_v35, %s2095_s21 }
 0x30a   : > { %1007 = vrot.lane.b32.xlu1 %v2547_v44, %s2095_s21 }
 0x30c   : > { %1096 = vrot.lane.b32.xlu0 %v2496_v15, %s2096_s22 }
 0x30e   : > { %1098 = vrot.lane.b32.xlu1 %v2512_v25, %s2096_s22 }
 0x310   : > { %1104 = vrot.lane.b32.xlu0 %v2531_v35, %s2096_s22 }
 0x312   : > { %1106 = vrot.lane.b32.xlu1 %v2547_v44, %s2096_s22 }
 0x314   : > { %832 = vrot.lane.b32.xlu0 %v2499_v18, %s2094_s15 }
 0x316   : > { %834 = vrot.lane.b32.xlu1 %v2521_v30, %s2094_s15 }
 0x318   : > { %840 = vrot.lane.b32.xlu0 %v2537_v40, %s2094_s15 }
 0x31a   : > { %842 = vrot.lane.b32.xlu1 %v2553_v47, %s2094_s15 }
 0x31c   : > { %931 = vrot.lane.b32.xlu0 %v2499_v18, %s2095_s21 }
 0x31e   : > { %933 = vrot.lane.b32.xlu1 %v2521_v30, %s2095_s21 }
 0x320   : > { %939 = vrot.lane.b32.xlu0 %v2537_v40, %s2095_s21 }
 0x322   : > { %941 = vrot.lane.b32.xlu1 %v2553_v47, %s2095_s21 }
 0x324   : > { %1030 = vrot.lane.b32.xlu0 %v2499_v18, %s2096_s22 }
 0x326   : > { %1032 = vrot.lane.b32.xlu1 %v2521_v30, %s2096_s22 }
 0x328   : > { %1038 = vrot.lane.b32.xlu0 %v2537_v40, %s2096_s22 }
 0x32a   : > { %1040 = vrot.lane.b32.xlu1 %v2553_v47, %s2096_s22 }
 0x32c   : > { %772 = vrot.lane.b32.xlu0 %v1632_v3, %s2090_s11 }
 0x32e   : > { %764 = vrot.lane.b32.xlu1 %v1628_v4, %s2090_s11 }
 0x330   : > { %869 = vrot.lane.b32.xlu0 %v1628_v4, %s2091_s1 }
 0x332   : > { %766 = vrot.lane.b32.xlu1 %v1629_v5, %s2090_s11 }
 0x334   : > { %877 = vrot.lane.b32.xlu0 %v1632_v3, %s2091_s1 }
 0x336   : > { %774 = vrot.lane.b32.xlu1 %v1633_v6, %s2090_s11 }
 0x338   : > { %968 = vrot.lane.b32.xlu0 %v1628_v4, %s2092_s18 }
 0x33a   : > { %871 = vrot.lane.b32.xlu1 %v1629_v5, %s2091_s1 }
 0x33c   : > { %976 = vrot.lane.b32.xlu0 %v1632_v3, %s2092_s18 }
 0x33e   : > { %879 = vrot.lane.b32.xlu1 %v1633_v6, %s2091_s1 }
 0x340   : > { %1067 = vrot.lane.b32.xlu0 %v1628_v4, %s2093_s19 }
 0x342   : > { %970 = vrot.lane.b32.xlu1 %v1629_v5, %s2092_s18 }
 0x344   : > { %1075 = vrot.lane.b32.xlu0 %v1632_v3, %s2093_s19 }
 0x346   : > { %978 = vrot.lane.b32.xlu1 %v1633_v6, %s2092_s18 }
 0x348   : > { %902 = vrot.lane.b32.xlu0 %v2563_v28, %s2094_s15 }
 0x34a   : > { %1069 = vrot.lane.b32.xlu1 %v1629_v5, %s2093_s19 }
 0x34c   : > { %910 = vrot.lane.b32.xlu0 %v2595_v48, %s2094_s15 }
 0x34e   : > { %1077 = vrot.lane.b32.xlu1 %v1633_v6, %s2093_s19  ;;  %v761_v0 = vpop.permute.xlu0 %760 }
 0x34f   : > { %784 = vst.msk [vmem:[%s2711_s17] sm:$0xf] %vm727_vm1, %v761_v0 }
 0x350   : > { %v763_v7 = vpop.permute.xlu1 %762  ;;  %1001 = vrot.lane.b32.xlu0 %v2563_v28, %s2095_s21 }
 0x351   : > { %785 = vst.msk [vmem:[%s2711_s17 + $0x4] sm:$0xf] %vm727_vm1, %v763_v7 }
 0x352   : > { %904 = vrot.lane.b32.xlu1 %v2580_v57, %s2094_s15  ;;  %v769_v8 = vpop.permute.xlu0 %768 }
 0x353   : > { %788 = vst.msk [vmem:[%s2711_s17 + $0x10] sm:$0xf] %vm727_vm1, %v769_v8 }
 0x354   : > { %v771_v9 = vpop.permute.xlu1 %770  ;;  %1009 = vrot.lane.b32.xlu0 %v2595_v48, %s2095_s21 }
 0x355   : > { %789 = vst.msk [vmem:[%s2711_s17 + $0x14] sm:$0xf] %vm727_vm1, %v771_v9 }
 0x356   : > { %912 = vrot.lane.b32.xlu1 %v2608_v2, %s2094_s15  ;;  %v866_v10 = vpop.permute.xlu0 %865 }
 0x357   : > { %1540 = vst.msk [vmem:[%s2711_s17 + $0x20] sm:$0xf] %vm727_vm1, %v866_v10 }
 0x358   : > { %v868_v11 = vpop.permute.xlu1 %867  ;;  %1100 = vrot.lane.b32.xlu0 %v2563_v28, %s2096_s22 }
 0x359   : > { %1541 = vst.msk [vmem:[%s2711_s17 + $0x24] sm:$0xf] %vm727_vm1, %v868_v11 }
 0x35a   : > { %1003 = vrot.lane.b32.xlu1 %v2580_v57, %s2095_s21  ;;  %v874_v12 = vpop.permute.xlu0 %873 }
 0x35b   : > { %1544 = vst.msk [vmem:[%s2711_s17 + $0x30] sm:$0xf] %vm727_vm1, %v874_v12 }
 0x35c   : > { %v876_v13 = vpop.permute.xlu1 %875  ;;  %836 = vrot.lane.b32.xlu0 %v2569_v54, %s2094_s15 }
 0x35d   : > { %1545 = vst.msk [vmem:[%s2711_s17 + $0x34] sm:$0xf] %vm727_vm1, %v876_v13 }
 0x35e   : > { %1011 = vrot.lane.b32.xlu1 %v2608_v2, %s2095_s21  ;;  %v965_v14 = vpop.permute.xlu0 %964 }
 0x35f   : > { %1564 = vst.msk [vmem:[%s2711_s17 + $0x40] sm:$0xf] %vm727_vm1, %v965_v14 }
 0x360   : > { %v967_v15 = vpop.permute.xlu1 %966  ;;  %844 = vrot.lane.b32.xlu0 %v2601_v63, %s2094_s15 }
 0x361   : > { %1565 = vst.msk [vmem:[%s2711_s17 + $0x44] sm:$0xf] %vm727_vm1, %v967_v15 }
 0x362   : > { %1102 = vrot.lane.b32.xlu1 %v2580_v57, %s2096_s22  ;;  %v973_v16 = vpop.permute.xlu0 %972 }
 0x363   : > { %1568 = vst.msk [vmem:[%s2711_s17 + $0x50] sm:$0xf] %vm727_vm1, %v973_v16 }
 0x364   : > { %v975_v17 = vpop.permute.xlu1 %974  ;;  %935 = vrot.lane.b32.xlu0 %v2569_v54, %s2095_s21 }
 0x365   : > { %1569 = vst.msk [vmem:[%s2711_s17 + $0x54] sm:$0xf] %vm727_vm1, %v975_v17 }
 0x366   : > { %838 = vrot.lane.b32.xlu1 %v2586_v59, %s2094_s15  ;;  %v1064_v18 = vpop.permute.xlu0 %1063 }
 0x367   : > { %1588 = vst.msk [vmem:[%s2711_s17 + $0x60] sm:$0xf] %vm727_vm1, %v1064_v18 }
 0x368   : > { %v1066_v19 = vpop.permute.xlu1 %1065  ;;  %943 = vrot.lane.b32.xlu0 %v2601_v63, %s2095_s21 }
 0x369   : > { %1589 = vst.msk [vmem:[%s2711_s17 + $0x64] sm:$0xf] %vm727_vm1, %v1066_v19 }
 0x36a   : > { %846 = vrot.lane.b32.xlu1 %v2613_v49, %s2094_s15  ;;  %v1072_v22 = vpop.permute.xlu0 %1071 }
 0x36b   : > { %1592 = vst.msk [vmem:[%s2711_s17 + $0x70] sm:$0xf] %vm727_vm1, %v1072_v22 }
 0x36c   : > { %v1074_v23 = vpop.permute.xlu1 %1073  ;;  %1034 = vrot.lane.b32.xlu0 %v2569_v54, %s2096_s22 }
 0x36d   : > { %1593 = vst.msk [vmem:[%s2711_s17 + $0x74] sm:$0xf] %vm727_vm1, %v1074_v23 }
 0x36e   : > { %937 = vrot.lane.b32.xlu1 %v2586_v59, %s2095_s21  ;;  %v899_v24 = vpop.permute.xlu0 %898 }
 0x36f   : > { %1548 = vst.msk [vmem:[%s2507_s13 + $0x20] sm:$0xf] %vm727_vm1, %v899_v24 }
 0x370   : > { %v901_v25 = vpop.permute.xlu1 %900  ;;  %1042 = vrot.lane.b32.xlu0 %v2601_v63, %s2096_s22 }
 0x371   : > { %1549 = vst.msk [vmem:[%s2507_s13 + $0x24] sm:$0xf] %vm727_vm1, %v901_v25 }
 0x372   : > { %945 = vrot.lane.b32.xlu1 %v2613_v49, %s2095_s21  ;;  %v907_v26 = vpop.permute.xlu0 %906 }
 0x373   : > { %1552 = vst.msk [vmem:[%s2507_s13 + $0x30] sm:$0xf] %vm727_vm1, %v907_v26 }
 0x374   : > { %v909_v27 = vpop.permute.xlu1 %908  ;;  %1108 = vrot.lane.b32.xlu0 %v2595_v48, %s2096_s22 }
 0x375   : > { %1553 = vst.msk [vmem:[%s2507_s13 + $0x34] sm:$0xf] %vm727_vm1, %v909_v27 }
 0x376   : > { %1036 = vrot.lane.b32.xlu1 %v2586_v59, %s2096_s22  ;;  %v998_v30 = vpop.permute.xlu0 %997 }
 0x377   : > { %1572 = vst.msk [vmem:[%s2507_s13 + $0x40] sm:$0xf] %vm727_vm1, %v998_v30 }
 0x378   : > { %v1000_v31 = vpop.permute.xlu1 %999 }
 0x379   : > { %1573 = vst.msk [vmem:[%s2507_s13 + $0x44] sm:$0xf] %vm727_vm1, %v1000_v31 }
 0x37a   : > { %1044 = vrot.lane.b32.xlu1 %v2613_v49, %s2096_s22  ;;  %v1006_v32 = vpop.permute.xlu0 %1005 }
 0x37b   : > { %1576 = vst.msk [vmem:[%s2507_s13 + $0x50] sm:$0xf] %vm727_vm1, %v1006_v32 }
 0x37c   : > { %v1008_v33 = vpop.permute.xlu1 %1007 }
 0x37d   : > { %1577 = vst.msk [vmem:[%s2507_s13 + $0x54] sm:$0xf] %vm727_vm1, %v1008_v33 }
 0x37e   : > { %1110 = vrot.lane.b32.xlu1 %v2608_v2, %s2096_s22  ;;  %v1097_v34 = vpop.permute.xlu0 %1096 }
 0x37f   : > { %1596 = vst.msk [vmem:[%s2507_s13 + $0x60] sm:$0xf] %vm727_vm1, %v1097_v34 }
 0x380   : > { %v1099_v35 = vpop.permute.xlu1 %1098 }
 0x381   : > { %1597 = vst.msk [vmem:[%s2507_s13 + $0x64] sm:$0xf] %vm727_vm1, %v1099_v35 }
 0x382   : > { %v1105_v36 = vpop.permute.xlu0 %1104 }
 0x383   : > { %1600 = vst.msk [vmem:[%s2507_s13 + $0x70] sm:$0xf] %vm727_vm1, %v1105_v36 }
 0x384   : > { %v1107_v37 = vpop.permute.xlu1 %1106 }
 0x385   : > { %1601 = vst.msk [vmem:[%s2507_s13 + $0x74] sm:$0xf] %vm727_vm1, %v1107_v37 }
 0x386   : > { %v833_v40 = vpop.permute.xlu0 %832 }
 0x387   : > { %1532 = vst.msk [vmem:[%s2516_s24 + $0x20] sm:$0xf] %vm727_vm1, %v833_v40 }
 0x388   : > { %v835_v41 = vpop.permute.xlu1 %834 }
 0x389   : > { %1533 = vst.msk [vmem:[%s2516_s24 + $0x24] sm:$0xf] %vm727_vm1, %v835_v41 }
 0x38a   : > { %v841_v42 = vpop.permute.xlu0 %840 }
 0x38b   : > { %1536 = vst.msk [vmem:[%s2516_s24 + $0x30] sm:$0xf] %vm727_vm1, %v841_v42 }
 0x38c   : > { %v843_v20 = vpop.permute.xlu1 %842 }
 0x38d   : > { %1537 = vst.msk [vmem:[%s2516_s24 + $0x34] sm:$0xf] %vm727_vm1, %v843_v20 }
 0x38e   : > { %v932_v43 = vpop.permute.xlu0 %931 }
 0x38f   : > { %1556 = vst.msk [vmem:[%s2516_s24 + $0x40] sm:$0xf] %vm727_vm1, %v932_v43 }
 0x390   : > { %v934_v44 = vpop.permute.xlu1 %933 }
 0x391   : > { %1557 = vst.msk [vmem:[%s2516_s24 + $0x44] sm:$0xf] %vm727_vm1, %v934_v44 }
 0x392   : > { %v940_v45 = vpop.permute.xlu0 %939 }
 0x393   : > { %1560 = vst.msk [vmem:[%s2516_s24 + $0x50] sm:$0xf] %vm727_vm1, %v940_v45 }
 0x394   : > { %v942_v46 = vpop.permute.xlu1 %941 }
 0x395   : > { %1561 = vst.msk [vmem:[%s2516_s24 + $0x54] sm:$0xf] %vm727_vm1, %v942_v46 }
 0x396   : > { %v1031_v47 = vpop.permute.xlu0 %1030 }
 0x397   : > { %1580 = vst.msk [vmem:[%s2516_s24 + $0x60] sm:$0xf] %vm727_vm1, %v1031_v47 }
 0x398   : > { %v1033_v50 = vpop.permute.xlu1 %1032 }
 0x399   : > { %1581 = vst.msk [vmem:[%s2516_s24 + $0x64] sm:$0xf] %vm727_vm1, %v1033_v50 }
 0x39a   : > { %v1039_v51 = vpop.permute.xlu0 %1038 }
 0x39b   : > { %1584 = vst.msk [vmem:[%s2516_s24 + $0x70] sm:$0xf] %vm727_vm1, %v1039_v51 }
 0x39c   : > { %v1041_v52 = vpop.permute.xlu1 %1040 }
 0x39d   : > { %1585 = vst.msk [vmem:[%s2516_s24 + $0x74] sm:$0xf] %vm727_vm1, %v1041_v52 }
 0x39e   : > { %v773_v28 = vpop.permute.xlu0 %772 }
 0x39f   : > { %790 = vst.msk [vmem:[%s2711_s17 + $0x18] sm:$0xf] %vm727_vm1, %v773_v28 }
 0x3a0   : > { %v765_v21 = vpop.permute.xlu1 %764 }
 0x3a1   : > { %786 = vst.msk [vmem:[%s2711_s17 + $0x8] sm:$0xf] %vm727_vm1, %v765_v21 }
 0x3a2   : > { %v870_v53 = vpop.permute.xlu0 %869 }
 0x3a3   : > { %1542 = vst.msk [vmem:[%s2711_s17 + $0x28] sm:$0xf] %vm727_vm1, %v870_v53 }
 0x3a4   : > { %v767_v54 = vpop.permute.xlu1 %766 }
 0x3a5   : > { %787 = vst.msk [vmem:[%s2711_s17 + $0xc] sm:$0xf] %vm727_vm1, %v767_v54 }
 0x3a6   : > { %v878_v55 = vpop.permute.xlu0 %877 }
 0x3a7   : > { %1546 = vst.msk [vmem:[%s2711_s17 + $0x38] sm:$0xf] %vm727_vm1, %v878_v55 }
 0x3a8   : > { %v775_v29 = vpop.permute.xlu1 %774 }
 0x3a9   : > { %791 = vst.msk [vmem:[%s2711_s17 + $0x1c] sm:$0xf] %vm727_vm1, %v775_v29 }
 0x3aa   : > { %v969_v56 = vpop.permute.xlu0 %968 }
 0x3ab   : > { %1566 = vst.msk [vmem:[%s2711_s17 + $0x48] sm:$0xf] %vm727_vm1, %v969_v56 }
 0x3ac   : > { %v872_v57 = vpop.permute.xlu1 %871 }
 0x3ad   : > { %1543 = vst.msk [vmem:[%s2711_s17 + $0x2c] sm:$0xf] %vm727_vm1, %v872_v57 }
 0x3ae   : > { %v977_v38 = vpop.permute.xlu0 %976 }
 0x3af   : > { %1570 = vst.msk [vmem:[%s2711_s17 + $0x58] sm:$0xf] %vm727_vm1, %v977_v38 }
 0x3b0   : > { %v880_v58 = vpop.permute.xlu1 %879 }
 0x3b1   : > { %1547 = vst.msk [vmem:[%s2711_s17 + $0x3c] sm:$0xf] %vm727_vm1, %v880_v58 }
 0x3b2   : > { %v1068_v59 = vpop.permute.xlu0 %1067 }
 0x3b3   : > { %1590 = vst.msk [vmem:[%s2711_s17 + $0x68] sm:$0xf] %vm727_vm1, %v1068_v59 }
 0x3b4   : > { %v971_v60 = vpop.permute.xlu1 %970 }
 0x3b5   : > { %1567 = vst.msk [vmem:[%s2711_s17 + $0x4c] sm:$0xf] %vm727_vm1, %v971_v60 }
 0x3b6   : > { %v1076_v39 = vpop.permute.xlu0 %1075 }
 0x3b7   : > { %1594 = vst.msk [vmem:[%s2711_s17 + $0x78] sm:$0xf] %vm727_vm1, %v1076_v39 }
 0x3b8   : > { %v979_v61 = vpop.permute.xlu1 %978 }
 0x3b9   : > { %1571 = vst.msk [vmem:[%s2711_s17 + $0x5c] sm:$0xf] %vm727_vm1, %v979_v61 }
 0x3ba   : > { %v903_v48 = vpop.permute.xlu0 %902 }
 0x3bb   : > { %1550 = vst.msk [vmem:[%s2507_s13 + $0x28] sm:$0xf] %vm727_vm1, %v903_v48 }
 0x3bc   : > { %v1070_v62 = vpop.permute.xlu1 %1069 }
 0x3bd   : > { %1591 = vst.msk [vmem:[%s2711_s17 + $0x6c] sm:$0xf] %vm727_vm1, %v1070_v62 }
 0x3be   : > { %v911_v63 = vpop.permute.xlu0 %910 }
 0x3bf   : > { %1554 = vst.msk [vmem:[%s2507_s13 + $0x38] sm:$0xf] %vm727_vm1, %v911_v63 }
 0x3c0   : > { %v1078_v1 = vpop.permute.xlu1 %1077 }
 0x3c1   : > { %1595 = vst.msk [vmem:[%s2711_s17 + $0x7c] sm:$0xf] %vm727_vm1, %v1078_v1 }
 0x3c2   : > { %v1002_v2 = vpop.permute.xlu0 %1001 }
 0x3c3   : > { %1574 = vst.msk [vmem:[%s2507_s13 + $0x48] sm:$0xf] %vm727_vm1, %v1002_v2 }
 0x3c4   : > { %v905_v49 = vpop.permute.xlu1 %904 }
 0x3c5   : > { %1551 = vst.msk [vmem:[%s2507_s13 + $0x2c] sm:$0xf] %vm727_vm1, %v905_v49 }
 0x3c6   : > { %v1010_v3 = vpop.permute.xlu0 %1009 }
 0x3c7   : > { %1578 = vst.msk [vmem:[%s2507_s13 + $0x58] sm:$0xf] %vm727_vm1, %v1010_v3 }
 0x3c8   : > { %v913_v4 = vpop.permute.xlu1 %912 }
 0x3c9   : > { %1555 = vst.msk [vmem:[%s2507_s13 + $0x3c] sm:$0xf] %vm727_vm1, %v913_v4 }
 0x3ca   : > { %v1101_v5 = vpop.permute.xlu0 %1100 }
 0x3cb   : > { %1598 = vst.msk [vmem:[%s2507_s13 + $0x68] sm:$0xf] %vm727_vm1, %v1101_v5 }
 0x3cc   : > { %v1004_v6 = vpop.permute.xlu1 %1003 }
 0x3cd   : > { %1575 = vst.msk [vmem:[%s2507_s13 + $0x4c] sm:$0xf] %vm727_vm1, %v1004_v6 }
 0x3ce   : > { %v837_v0 = vpop.permute.xlu0 %836 }
 0x3cf   : > { %1534 = vst.msk [vmem:[%s2516_s24 + $0x28] sm:$0xf] %vm727_vm1, %v837_v0 }
 0x3d0   : > { %v1012_v7 = vpop.permute.xlu1 %1011 }
 0x3d1   : > { %1579 = vst.msk [vmem:[%s2507_s13 + $0x5c] sm:$0xf] %vm727_vm1, %v1012_v7 }
 0x3d2   : > { %v845_v8 = vpop.permute.xlu0 %844 }
 0x3d3   : > { %1538 = vst.msk [vmem:[%s2516_s24 + $0x38] sm:$0xf] %vm727_vm1, %v845_v8 }
 0x3d4   : > { %v1103_v9 = vpop.permute.xlu1 %1102 }
 0x3d5   : > { %1599 = vst.msk [vmem:[%s2507_s13 + $0x6c] sm:$0xf] %vm727_vm1, %v1103_v9 }
 0x3d6   : > { %v936_v10 = vpop.permute.xlu0 %935 }
 0x3d7   : > { %1558 = vst.msk [vmem:[%s2516_s24 + $0x48] sm:$0xf] %vm727_vm1, %v936_v10 }
 0x3d8   : > { %v839_v11 = vpop.permute.xlu1 %838 }
 0x3d9   : > { %1535 = vst.msk [vmem:[%s2516_s24 + $0x2c] sm:$0xf] %vm727_vm1, %v839_v11 }
 0x3da   : > { %v944_v12 = vpop.permute.xlu0 %943 }
 0x3db   : > { %1562 = vst.msk [vmem:[%s2516_s24 + $0x58] sm:$0xf] %vm727_vm1, %v944_v12 }
 0x3dc   : > { %v847_v13 = vpop.permute.xlu1 %846 }
 0x3dd   : > { %1539 = vst.msk [vmem:[%s2516_s24 + $0x3c] sm:$0xf] %vm727_vm1, %v847_v13 }
 0x3de   : > { %v1035_v14 = vpop.permute.xlu0 %1034 }
 0x3df   : > { %1582 = vst.msk [vmem:[%s2516_s24 + $0x68] sm:$0xf] %vm727_vm1, %v1035_v14 }
 0x3e0   : > { %v938_v15 = vpop.permute.xlu1 %937 }
 0x3e1   : > { %1559 = vst.msk [vmem:[%s2516_s24 + $0x4c] sm:$0xf] %vm727_vm1, %v938_v15 }
 0x3e2   : > { %v1043_v16 = vpop.permute.xlu0 %1042 }
 0x3e3   : > { %1586 = vst.msk [vmem:[%s2516_s24 + $0x78] sm:$0xf] %vm727_vm1, %v1043_v16 }
 0x3e4   : > { %v946_v17 = vpop.permute.xlu1 %945 }
 0x3e5   : > { %1563 = vst.msk [vmem:[%s2516_s24 + $0x5c] sm:$0xf] %vm727_vm1, %v946_v17 }
 0x3e6   : > { %v1109_v18 = vpop.permute.xlu0 %1108 }
 0x3e7   : > { %1602 = vst.msk [vmem:[%s2507_s13 + $0x78] sm:$0xf] %vm727_vm1, %v1109_v18 }
 0x3e8   : > { %v1037_v19 = vpop.permute.xlu1 %1036 }
 0x3e9   : > { %1583 = vst.msk [vmem:[%s2516_s24 + $0x6c] sm:$0xf] %vm727_vm1, %v1037_v19 }
 0x3ec   : > { %v1045_v22 = vpop.permute.xlu1 %1044 }
 0x3ed   : > { %1587 = vst.msk [vmem:[%s2516_s24 + $0x7c] sm:$0xf] %vm727_vm1, %v1045_v22 }
 0x3f0   : > { %v1111_v23 = vpop.permute.xlu1 %1110 }
 0x3f1   : > { %1603 = vst.msk [vmem:[%s2507_s13 + $0x7c] sm:$0xf] %vm727_vm1, %v1111_v23 }
 0x3f2   : > { %s1607_s3 = sshll.u32 %s2064_s27, 3  ;;  %s1608_s4 = sshll.u32 %s2068_s28, 6 }
 0x3f3   : > { %s1152_s16 = sadd.s32 %s1608_s4, %s1607_s3  ;;  %s1171_s6 = sshll.u32 %s2516_s24, 4  ;;  %s1172_s6 = int_to_ptr.vmem [resolvable:$true] %s1171_s6 }
 0x3f4   : > { %s2926_s11 = sshll.u32 %s1152_s16, 6  ;;  %s2097_s18 = smov 512  }
 0x3f5   : > { %s1154_s1 = scalar_lea.hbm %s3021_s5, %s2926_s11  ;;  %1668 = sst [smem:[#allocation16]] (%p2340_p4), %s2097_s18 }
 0x3f6   : > { %s2098_s19 = smov 1024   ;;  %s2099_s27 = smov 8  }
 0x3f7   : > { %1669 = sst [smem:[#allocation16 + $0x1]] (%p2340_p4), %s2098_s19  ;;  %s2100_s28 = smov 64  }
 0x3f8   : > { %1670 = sst [smem:[#allocation16 + $0x2]] (%p2340_p4), %s2099_s27  ;;  %s2101_s24 = smov 4  }
 0x3f9   : > { %1671 = sst [smem:[#allocation16 + $0x3]] (%p2340_p4), %s2100_s28  ;;  %s2102_s15 = smov [#allocation15]  }
 0x3fa   : > { %1672 = sst [smem:[#allocation16 + $0x4]] (%p2340_p4), %s2100_s28  ;;  %s2103_s21 = smov 0  }
 0x3fb   : > { %1673 = sst [smem:[#allocation16 + $0x5]] (%p2340_p4), %s2101_s24 }
 0x3fc   : > { %1674 = dma.general (%p2340_p4), %s1172_s6, 2048, %s1154_s1, %s1130_s7, %s2102_s15, [#allocation16], %s2103_s21, 0  }
 0x3fd   : > { %s3063_s3 = sld [smem:[#allocation33_spill]]  ;;  %s1218_s16 = sshll.u32 %s2711_s17, 4  ;;  %s1219_s16 = int_to_ptr.vmem [resolvable:$true] %s1218_s16 }
 0x3fe   : > { %s2104_s9 = smov 512   ;;  %s2105_s7 = smov 1024  }
 0x3ff   : > { %1675 = sst [smem:[#allocation18]] (%p2340_p4), %s2104_s9  ;;  %s2106_s6 = smov 8  }
 0x400   : > { %1676 = sst [smem:[#allocation18 + $0x1]] (%p2340_p4), %s2105_s7  ;;  %s2107_s10 = smov 64  }
 0x401   : > { %1677 = sst [smem:[#allocation18 + $0x2]] (%p2340_p4), %s2106_s6  ;;  %s2108_s1 = smov 4  }
 0x402   : > { %1678 = sst [smem:[#allocation18 + $0x3]] (%p2340_p4), %s2107_s10  ;;  %s2109_s18 = smov [#allocation17]  }
 0x403   : > { %s1201_s4 = scalar_lea.hbm %s3063_s3, %s2926_s11  ;;  %1679 = sst [smem:[#allocation18 + $0x4]] (%p2340_p4), %s2107_s10 }
 0x404   : > { %1680 = sst [smem:[#allocation18 + $0x5]] (%p2340_p4), %s2108_s1  ;;  %s2110_s17 = smov 0  }
 0x405   : > { %1681 = dma.general (%p2340_p4), %s1219_s16, 2048, %s1201_s4, %s2921_s14, %s2109_s18, [#allocation18], %s2110_s17, 0  }
 0x406   : > { %s3064_s28 = sld [smem:[#allocation34_spill]]  ;;  %s1265_s15 = sshll.u32 %s2507_s13, 4  ;;  %s1266_s15 = int_to_ptr.vmem [resolvable:$true] %s1265_s15 }
 0x407   : > { %s2111_s21 = smov 512   ;;  %s2112_s22 = smov 1024  }
 0x408   : > { %1682 = sst [smem:[#allocation20]] (%p2340_p4), %s2111_s21  ;;  %s2113_s20 = smov 8  }
 0x409   : > { %1683 = sst [smem:[#allocation20 + $0x1]] (%p2340_p4), %s2112_s22  ;;  %s2114_s3 = smov 64  }
 0x40a   : > { %1684 = sst [smem:[#allocation20 + $0x2]] (%p2340_p4), %s2113_s20  ;;  %s2115_s4 = smov 4  }
 0x40b   : > { %1685 = sst [smem:[#allocation20 + $0x3]] (%p2340_p4), %s2114_s3  ;;  %s2117_s13 = smov 0  }
 0x40c   : > { %s1248_s24 = scalar_lea.hbm %s3064_s28, %s2926_s11  ;;  %1686 = sst [smem:[#allocation20 + $0x4]] (%p2340_p4), %s2114_s3 }
 0x40d   : > { %1687 = sst [smem:[#allocation20 + $0x5]] (%p2340_p4), %s2115_s4  ;;  %s2116_s11 = smov [#allocation19]  }
 0x40e   : > { %1688 = dma.general (%p2340_p4), %s1266_s15, 2048, %s1248_s24, %s2921_s14, %s2116_s11, [#allocation20], %s2117_s13, 0  }
 0x40f PF: > { %s3065_s16 = sld [smem:[#allocation26_spill]]  ;;  %s3066_s9 = sld [smem:[#allocation27_spill]] }
 0x410   : > { %p1728_p6 = scmp.ge.s32.totalorder %s2080_s8, 2 }
 0x415   : > { %s1293_s7 = sand.u32 1, %s3065_s16   ;;  %p3067_p8 = scmp.ne.s32.totalorder %s3066_s9, 0 }
 0x416   : > { %s1294_s6 = scalar_lea.sflag [#allocation4], %s1293_s7 }
 0x417   : > { %p1710_p3 = pnand %p1728_p6, %p3067_p8 }
 0x419   : > { %2043 = dma.done.wait (!%p1710_p3), %s1294_s6, 2048  }
 0x41a   : > { %2045 = vsyncadd (!%p1710_p3), %s1294_s6, 4294965248  ;;  %s3068_s10 = sadd.s32 4294967294, %s2080_s8  }
 0x41b   : > { %s1302_s1 = sand.u32 1, %s3068_s10  }
 0x41c   : > { %s1303_s18 = scalar_lea.sflag [#allocation13], %s1302_s1 }
 0x41d   : > { %2047 = dma.done.wait (!%p1710_p3), %s1303_s18, 4096  }
 0x41e   : > { %2049 = vsyncadd (!%p1710_p3), %s1303_s18, 4294963200  ;;  %s29_s8 = sadd.s32 1, %s2080_s8   ;;  %s3069_s23 = sld [smem:[#allocation28_spill]] }
 0x41f   : > { %p26_p4 = scmp.ge.s32.totalorder %s29_s8, 6   ;;  %s3070_s24 = smov %s2056_s25 }
 0x420   : > { %s3071_s25 = smov %s2060_s26  ;;  %s3072_s26 = smov %s2353_s2 }
 0x421   : > { %s3073_s27 = smov %s2072_s29  ;;  %s3074_s28 = smov %s2076_s30 }
 0x422   : > { %s3076_s30 = smov %s3082_s12  ;;  %28 = sbr.rel (!%p26_p4) target bundleno = 18 (0x12), region = 157 }
 0x424   : > { %s3075_s29 = smov %s3069_s23 }
 0x429   :  { %1317 = vsyncpa [#allocation3], 1 }
 0x42a   :  { %1319 = vsyncpa [#allocation3 + $0x1], 1 }
 0x42b   :  { %1320 = vsyncpa [#allocation6], 1 }
 0x42c   :  { %1321 = vsyncpa [#allocation9], 1 }
 0x42d   :  { %1322 = vsyncpa [#allocation4], 1 }
 0x42e   :  { %1324 = vsyncpa [#allocation4 + $0x1], 1 }
 0x42f   :  { %1325 = vsyncpa [#allocation13], 1 }
 0x430   :  { %1327 = vsyncpa [#allocation13 + $0x1], 1 }

</bundles_post_ra>
